<compile_context>
chip_gen: v5e
topology: v5e:2x2
jax: 0.10.0
libtpu: 0.0.40
codegen_flags: <defaults>
</compile_context>

<pallas_src>
import functools

import numpy as np
import jax
import jax.numpy as jnp
from jax import lax
from jax.experimental import pallas as pl
from jax.experimental.pallas import tpu as pltpu


def root_six(d1, d2):
    return np.sqrt(6.0 / (d1 + d2))


def _tile_padded_bytes(shape, itemsize):
    """(8,128)-tile-padded VMEM footprint of a block with the given trailing
    shape (leading dims are dense)."""
    shape = tuple(int(s) for s in shape)
    if len(shape) == 1:
        shape = (1,) + shape
    lead = 1
    for s in shape[:-2]:
        lead *= s
    sub = -(-shape[-2] // 8) * 8
    lan = -(-shape[-1] // 128) * 128
    return lead * sub * lan * itemsize


# ---------------------------------------------------------------------------
# Pallas kernel: one (batch-block, time-block) tile per grid step.  The time
# grid axis is sequential ("arbitrary"); h / chain-memory state is carried in
# VMEM scratch across time blocks (re-initialized at the first time block of
# every batch block).  U is held as a single VMEM copy (no pipelined stream).
# ---------------------------------------------------------------------------
def _coref_gru_kernel(xpb_ref, m_ref, agg_ref, meo_ref, oo_ref, u_hbm_ref,
                      outs_ref, mems_ref,
                      h_sc, mem_sc, u_sc, u_sem,
                      *, time_block, num_relations, rdims, unroll):
    R = num_relations

    @pl.when(pl.program_id(1) == 0)   # first time-block of this batch block
    def _init():
        h_sc[...] = jnp.zeros(h_sc.shape, h_sc.dtype)
        mem_sc[...] = jnp.zeros(mem_sc.shape, mem_sc.dtype)
        # Grid-invariant recurrence weight: copy HBM -> VMEM exactly once per
        # batch block (single buffer, no per-step DMA / double buffering).
        cp = pltpu.make_async_copy(u_hbm_ref, u_sc, u_sem)
        cp.start()
        cp.wait()

    def step(s, carry):
        xpb = xpb_ref[s].astype(jnp.float32)      # (BB, Dout)   x@W + b
        m = m_ref[s].astype(jnp.float32)          # (BB, 1)      token mask
        agg = agg_ref[s].astype(jnp.float32)      # (BB, N, R)   alphas*1hot(Ri)
        meo = meo_ref[s].astype(jnp.float32)      # (BB, N, 1)   m * Eo
        oo = oo_ref[s].astype(jnp.float32)        # (BB, N, R)   1hot(Ro)

        hprev = h_sc[...]                         # (BB, Dout)       f32
        mprev = mem_sc[...]                       # (BB, N, rdims)   f32

        # prev[:, r*rdims:(r+1)*rdims] = sum_n agg[:, n, r] * mprev[:, n, :]
        # Per-relation VPU broadcast-multiply + reduce over chains; R is small
        # and static, keeping the tiny contraction off the MXU.
        parts = []
        for r in range(R):
            a_r = agg[:, :, r:r + 1]                        # (BB, N, 1)
            parts.append(jnp.sum(a_r * mprev, axis=1))      # (BB, rdims)
        prev = jnp.concatenate(parts, axis=-1)              # (BB, Dout)

        # Tied-gate GRU: W/U/b are shared across gates in this module, so a
        # single Dout-wide matmul serves all three gate slices (r == z).
        u = u_sc[...]
        h2h = jnp.dot(prev.astype(u.dtype), u,
                      preferred_element_type=jnp.float32)   # (BB, Dout)
        g = jax.nn.sigmoid(xpb + h2h)                       # reset == update
        ht = jnp.tanh(xpb + g * h2h)
        hg = prev + g * (ht - prev)                         # (BB, Dout)

        # Scatter hg into per-chain memories via the Ro one-hot: per-relation
        # broadcast MACs, no reshape of hg, no MXU micro-matmuls.
        mnew_pre = jnp.zeros_like(mprev)
        for r in range(R):
            hg_r = hg[:, r * rdims:(r + 1) * rdims]         # (BB, rdims)
            mnew_pre = mnew_pre + oo[:, :, r:r + 1] * hg_r[:, None, :]

        # Fused masked state updates.
        hnew = hprev + m * (hg - hprev)                     # (BB, Dout)
        mnew = mprev + meo * (mnew_pre - mprev)             # (BB, N, rdims)

        h_sc[...] = hnew
        mem_sc[...] = mnew
        outs_ref[s] = hnew.astype(outs_ref.dtype)
        mems_ref[s] = mnew.astype(mems_ref.dtype)           # scratch layout
        return carry

    lax.fori_loop(0, time_block, step, None, unroll=unroll)


# ---------------------------------------------------------------------------
# Wrapper
# ---------------------------------------------------------------------------
def coref_gru_pallas(X, M, Ei, Eo, Ri, Ro, W, U, b, Watt,
                     num_relations, rdims, *, reverse=False,
                     time_block=None, stream_dtype=jnp.float32,
                     weight_dtype=None,
                     vmem_budget_bytes=40 * 1024 * 1024,
                     attention_eps=1e-100):
    """CorefGRU forward.  W:(Din,Dout), U:(Dout,Dout), b:(Dout,), Watt:(R,Din)
    are the module's raw (gate-shared) parameters; Wstacked/Ustacked of the
    PyTorch module are [W|W|W] / [U|U|U]."""
    B, T, Din = X.shape
    N = Ri.shape[2]
    R = num_relations
    Dout = R * rdims
    if weight_dtype is None:
        weight_dtype = stream_dtype

    f32 = jnp.float32
    X = X.astype(f32)
    M = M.astype(f32)
    Ei = Ei.astype(f32)
    Eo = Eo.astype(f32)
    Ri = Ri.astype(jnp.int32)
    Ro = Ro.astype(jnp.int32)
    W = W.astype(f32)
    U_c = U.astype(weight_dtype)
    b = b.astype(f32)
    Watt = Watt.astype(f32)

    # ---- non-recurrent precompute, generated directly time-major ----------
    Mt = jnp.transpose(M, (1, 0))                       # (T, B)
    Eit = jnp.transpose(Ei, (1, 0, 2))                  # (T, B, N)
    Eot = jnp.transpose(Eo, (1, 0, 2))
    Rit = jnp.transpose(Ri, (1, 0, 2))
    Rot = jnp.transpose(Ro, (1, 0, 2))

    xpb_t = jnp.einsum('btd,de->tbe', X, W) + b         # (T, B, Dout), b folded
    xW_t = jnp.einsum('btd,rd->tbr', X, Watt)           # (T, B, R)
    actvs = jnp.take_along_axis(xW_t, Rit, axis=2)      # (T, B, N)
    alphas_m = jnp.exp(actvs) * Eit + attention_eps
    alphas = alphas_m / jnp.sum(alphas_m, axis=2, keepdims=True)
    onehot_i = jax.nn.one_hot(Rit, R, dtype=f32)        # (T, B, N, R)
    onehot_o = jax.nn.one_hot(Rot, R, dtype=f32)        # (T, B, N, R)
    agg_t = alphas[..., None] * onehot_i                # (T, B, N, R)
    aggs = jnp.transpose(jnp.sum(agg_t, axis=2), (1, 0, 2))   # (B, T, R)
    meo_t = (Mt[..., None] * Eot)[..., None]            # (T, B, N, 1)
    m_t = Mt[..., None]                                 # (T, B, 1)

    # stream dtype (carried state & accumulation stay f32 in-kernel)
    xpb_t = xpb_t.astype(stream_dtype)
    agg_t = agg_t.astype(stream_dtype)
    meo_t = meo_t.astype(stream_dtype)
    oo_t = onehot_o.astype(stream_dtype)

    if reverse:
        xpb_t = jnp.flip(xpb_t, 0)
        m_t = jnp.flip(m_t, 0)
        agg_t = jnp.flip(agg_t, 0)
        meo_t = jnp.flip(meo_t, 0)
        oo_t = jnp.flip(oo_t, 0)

    # ---- block sizing ------------------------------------------------------
    sb = jnp.dtype(stream_dtype).itemsize
    wb = jnp.dtype(weight_dtype).itemsize

    # Megacore: split the batch across 2 "parallel" blocks only if each block
    # still feeds the MXU >= 128 rows.
    BB = B // 2 if (B % 2 == 0 and B // 2 >= 128) else B

    per_step = (_tile_padded_bytes((BB, Dout), sb)            # xpb
                + _tile_padded_bytes((BB, 1), 4)              # m
                + _tile_padded_bytes((BB, N, R), sb)          # agg
                + _tile_padded_bytes((BB, N, 1), sb)          # meo
                + _tile_padded_bytes((BB, N, R), sb)          # oo
                + _tile_padded_bytes((BB, Dout), 4)           # outs
                + _tile_padded_bytes((BB, N, rdims), 4))      # mems
    fixed = (_tile_padded_bytes((Dout, Dout), wb)             # single U copy
             + _tile_padded_bytes((BB, Dout), 4)
             + _tile_padded_bytes((BB, N, rdims), 4))
    if time_block is None:
        TB = 1
        for tb in range(1, T + 1):
            if T % tb == 0 and fixed + 2 * tb * per_step <= vmem_budget_bytes:
                TB = tb
    else:
        TB = time_block
    assert T % TB == 0, "time_block must divide T"
    est = fixed + 2 * TB * per_step
    vmem_limit = int(min(max(32 << 20, est + est // 4 + (4 << 20)), 112 << 20))
    unroll = True if TB <= 8 else 8

    kernel = functools.partial(_coref_gru_kernel, time_block=TB,
                               num_relations=R, rdims=rdims, unroll=unroll)

    grid_spec = pltpu.PrefetchScalarGridSpec(
        num_scalar_prefetch=0,
        grid=(B // BB, T // TB),
        in_specs=[
            pl.BlockSpec((TB, BB, Dout), lambda bi, ti: (ti, bi, 0)),
            pl.BlockSpec((TB, BB, 1), lambda bi, ti: (ti, bi, 0)),
            pl.BlockSpec((TB, BB, N, R), lambda bi, ti: (ti, bi, 0, 0)),
            pl.BlockSpec((TB, BB, N, 1), lambda bi, ti: (ti, bi, 0, 0)),
            pl.BlockSpec((TB, BB, N, R), lambda bi, ti: (ti, bi, 0, 0)),
            pl.BlockSpec(memory_space=pl.ANY),       # U stays in HBM
        ],
        out_specs=[
            pl.BlockSpec((TB, BB, Dout), lambda bi, ti: (ti, bi, 0)),
            pl.BlockSpec((TB, BB, N, rdims), lambda bi, ti: (ti, bi, 0, 0)),
        ],
        scratch_shapes=[
            pltpu.VMEM((BB, Dout), jnp.float32),      # carried hidden state
            pltpu.VMEM((BB, N, rdims), jnp.float32),  # carried chain memory
            pltpu.VMEM((Dout, Dout), weight_dtype),   # single-buffered U
            pltpu.SemaphoreType.DMA,                  # U copy semaphore
        ],
    )

    outs_t, mems_t = pl.pallas_call(
        kernel,
        grid_spec=grid_spec,
        out_shape=(
            jax.ShapeDtypeStruct((T, B, Dout), jnp.float32),
            jax.ShapeDtypeStruct((T, B, N, rdims), jnp.float32),
        ),
        compiler_params=pltpu.CompilerParams(
            dimension_semantics=("parallel", "arbitrary"),
            vmem_limit_bytes=vmem_limit),
    )(xpb_t, m_t, agg_t, meo_t, oo_t, U_c)

    if reverse:
        outs_t = jnp.flip(outs_t, 0)
        mems_t = jnp.flip(mems_t, 0)

    outs = jnp.transpose(outs_t, (1, 0, 2))                  # (B, T, Dout)
    mems = jnp.transpose(mems_t, (1, 0, 2, 3))               # (B, T, N, rdims)
    return outs, mems, aggs


# ---------------------------------------------------------------------------
# Pure-JAX reference (literal mirror of the PyTorch forward, with the full
# Wstacked/Ustacked) for the correctness check of the tied-gate kernel.
# ---------------------------------------------------------------------------
def coref_gru_ref(X, M, Ei, Eo, Ri, Ro, Wstacked, Ustacked, b, Watt,
                  num_relations, rdims):
    B, T, _ = X.shape
    N = Ri.shape[2]
    R = num_relations
    Dout = R * rdims
    h = jnp.zeros((B, Dout), jnp.float32)
    mem = jnp.zeros((B, N, rdims), jnp.float32)
    outs, mems, aggs = [], [], []
    for t in range(T):
        x = X[:, t]; m = M[:, t]; ei = Ei[:, t]; eo = Eo[:, t]
        ri = Ri[:, t]; ro = Ro[:, t]
        r1hot = jax.nn.one_hot(ri, R, dtype=jnp.float32)
        ro1hot = jax.nn.one_hot(ro, R, dtype=jnp.float32)
        v = jnp.einsum('bnr,rd->bnd', r1hot, Watt)
        actvs = jnp.einsum('bnd,bd->bn', v, x)
        alphas_m = jnp.exp(actvs) * ei + 1e-100
        alphas = alphas_m / jnp.sum(alphas_m, axis=1, keepdims=True)
        agg = jnp.transpose(alphas[:, :, None] * r1hot, (0, 2, 1))   # (B,R,N)
        prev = jnp.einsum('brn,bnk->brk', agg, mem).reshape(B, Dout)
        agg_sum = jnp.sum(agg, axis=2)
        xp = x @ Wstacked
        h2h = prev @ Ustacked
        rg = jax.nn.sigmoid(xp[:, :Dout] + h2h[:, :Dout] + b)
        zg = jax.nn.sigmoid(xp[:, Dout:2 * Dout] + h2h[:, Dout:2 * Dout] + b)
        htil = jnp.tanh(xp[:, 2 * Dout:] + rg * h2h[:, 2 * Dout:] + b)
        hg = (1.0 - zg) * prev + zg * htil
        mnew_pre = jnp.einsum('bnr,brk->bnk', ro1hot, hg.reshape(B, R, rdims))
        m_r = m[:, None]
        hnew = (1.0 - m_r) * h + m_r * hg
        eo_r = (m_r * eo)[:, :, None]
        mnew = (1.0 - eo_r) * mem + eo_r * mnew_pre
        h, mem = hnew, mnew
        outs.append(hnew); mems.append(mnew); aggs.append(agg_sum)
    return jnp.stack(outs, 1), jnp.stack(mems, 1), jnp.stack(aggs, 1)


if __name__ == "__main__":
    # Small but lane-dense config (Dout = 256, rdims = 128 multiples of 128).
    B, T = 2, 8
    num_relations, rdims, input_dim, max_chains = 2, 128, 32, 4
    Dout = num_relations * rdims

    key = jax.random.PRNGKey(0)
    ks = jax.random.split(key, 10)

    X = jax.random.normal(ks[0], (B, T, input_dim), jnp.float32)
    M = jax.random.bernoulli(ks[1], 0.8, (B, T)).astype(jnp.float32)
    Ei = jax.random.bernoulli(ks[2], 0.6, (B, T, max_chains)).astype(jnp.float32)
    Ei = Ei.at[:, :, 0].set(1.0)   # avoid empty attention rows (0/0 -> NaN,
                                   # same behaviour as the f32 torch module)
    Eo = jax.random.bernoulli(ks[3], 0.6, (B, T, max_chains)).astype(jnp.float32)
    Ri = jax.random.randint(ks[4], (B, T, max_chains), 0, num_relations, jnp.int32)
    Ro = jax.random.randint(ks[5], (B, T, max_chains), 0, num_relations, jnp.int32)

    # gate-shared parameters, as in the module's __init__
    W = jax.random.normal(ks[6], (input_dim, Dout), jnp.float32) * root_six(input_dim, Dout)
    U = jax.random.normal(ks[7], (Dout, Dout), jnp.float32) * root_six(Dout, Dout)
    bvec = 0.1 * jax.random.normal(ks[9], (Dout,), jnp.float32)
    Watt = jax.random.normal(ks[8], (num_relations, input_dim), jnp.float32) * 0.1
    Wstacked = jnp.concatenate([W, W, W], axis=1)     # [W|W|W]
    Ustacked = jnp.concatenate([U, U, U], axis=1)     # [U|U|U]

    # f32 run + correctness check against the literal-forward reference
    outs, mems, aggs = coref_gru_pallas(X, M, Ei, Eo, Ri, Ro, W, U, bvec, Watt,
                                        num_relations, rdims)
    jax.block_until_ready((outs, mems, aggs))

    outs_r, mems_r, aggs_r = coref_gru_ref(X, M, Ei, Eo, Ri, Ro,
                                           Wstacked, Ustacked, bvec, Watt,
                                           num_relations, rdims)
    np.testing.assert_allclose(np.asarray(outs), np.asarray(outs_r), rtol=1e-2, atol=1e-2)
    np.testing.assert_allclose(np.asarray(mems), np.asarray(mems_r), rtol=1e-2, atol=1e-2)
    np.testing.assert_allclose(np.asarray(aggs), np.asarray(aggs_r), rtol=1e-2, atol=1e-2)

    # bf16 input streams + bf16 U (v6e/v7x recommendation); state/accum stay f32.
    outs_h, mems_h, _ = coref_gru_pallas(
        X, M, Ei, Eo, Ri, Ro, W, U, bvec, Watt, num_relations, rdims,
        stream_dtype=jnp.bfloat16, weight_dtype=jnp.bfloat16)
    jax.block_until_ready((outs_h, mems_h))
    np.testing.assert_allclose(np.asarray(outs_h), np.asarray(outs_r), rtol=0.1, atol=0.1)
    np.testing.assert_allclose(np.asarray(mems_h), np.asarray(mems_r), rtol=0.1, atol=0.1)

    print("KERNEL_OK")
</pallas_src>

<mosaic_0001>
module attributes {stable_mosaic.version = 11 : i64} {
  func.func @_coref_gru_kernel(%arg0: i32, %arg1: i32, %arg2: memref<8x2x256xf32, #tpu.memory_space<vmem>>, %arg3: memref<8x2x1xf32, #tpu.memory_space<vmem>>, %arg4: memref<8x2x4x2xf32, #tpu.memory_space<vmem>>, %arg5: memref<8x2x4x1xf32, #tpu.memory_space<vmem>>, %arg6: memref<8x2x4x2xf32, #tpu.memory_space<vmem>>, %arg7: memref<256x256xf32, #tpu.memory_space<any>>, %arg8: memref<8x2x256xf32, #tpu.memory_space<vmem>>, %arg9: memref<8x2x4x128xf32, #tpu.memory_space<vmem>>, %arg10: memref<2x256xf32, #tpu.memory_space<vmem>>, %arg11: memref<2x4x128xf32, #tpu.memory_space<vmem>>, %arg12: memref<256x256xf32, #tpu.memory_space<vmem>>, %arg13: memref<!tpu.dma_semaphore, #tpu.memory_space<semaphore_mem>>) attributes {dimension_semantics = [#tpu.dimension_semantics<parallel>, #tpu.dimension_semantics<arbitrary>], iteration_bounds = array<i64: 1, 1>, scalar_prefetch = 0 : i64, scratch_operands = 4 : i64, tpu.core_type = #tpu.core_type<tc>, window_params = [{transform_indices = @transform_0, window_bounds = array<i64: 8, 2, 256>}, {transform_indices = @transform_1, window_bounds = array<i64: 8, 2, 1>}, {transform_indices = @transform_2, window_bounds = array<i64: 8, 2, 4, 2>}, {transform_indices = @transform_3, window_bounds = array<i64: 8, 2, 4, 1>}, {transform_indices = @transform_4, window_bounds = array<i64: 8, 2, 4, 2>}, {}, {transform_indices = @transform_6, window_bounds = array<i64: 8, 2, 256>}, {transform_indices = @transform_7, window_bounds = array<i64: 8, 2, 4, 128>}]} {
    %c0_i32 = arith.constant 0 : i32
    %0 = arith.cmpi eq, %arg1, %c0_i32 : i32
    %1 = arith.extui %0 : i1 to i32
    %c0_i32_0 = arith.constant 0 : i32
    %2 = arith.cmpi ne, %1, %c0_i32_0 : i32
    scf.if %2 {
      %cst_280 = arith.constant 0.000000e+00 : f32
      %587 = vector.broadcast %cst_280 : f32 to vector<2x256xf32>
      %c0_281 = arith.constant 0 : index
      %c0_282 = arith.constant 0 : index
      %588 = vector.load %arg10[%c0_281, %c0_282] : memref<2x256xf32, #tpu.memory_space<vmem>>, vector<2x256xf32>
      tpu.vector_store %arg10[%c0_281, %c0_282], %587 {strides = array<i32>} : memref<2x256xf32, #tpu.memory_space<vmem>>, vector<2x256xf32>,
      %cst_283 = arith.constant 0.000000e+00 : f32
      %589 = vector.broadcast %cst_283 : f32 to vector<2x4x128xf32>
      %c0_284 = arith.constant 0 : index
      %c0_285 = arith.constant 0 : index
      %c0_286 = arith.constant 0 : index
      %590 = vector.load %arg11[%c0_284, %c0_285, %c0_286] : memref<2x4x128xf32, #tpu.memory_space<vmem>>, vector<2x4x128xf32>
      tpu.vector_store %arg11[%c0_284, %c0_285, %c0_286], %589 {strides = array<i32>} : memref<2x4x128xf32, #tpu.memory_space<vmem>>, vector<2x4x128xf32>,
      tpu.enqueue_dma source(%arg7 : memref<256x256xf32, #tpu.memory_space<any>>) target(%arg12 : memref<256x256xf32, #tpu.memory_space<vmem>>) target_semaphore(%arg13 : memref<!tpu.dma_semaphore, #tpu.memory_space<semaphore_mem>>)
      tpu.wait_dma2 semaphore(%arg13 : memref<!tpu.dma_semaphore, #tpu.memory_space<semaphore_mem>>) src(%arg7 : memref<256x256xf32, #tpu.memory_space<any>>) dst(%arg12 : memref<256x256xf32, #tpu.memory_space<vmem>>)
    } else {
    }
    %c0_i32_1 = arith.constant 0 : i32
    %3 = arith.index_cast %c0_i32_1 : i32 to index
    %c0 = arith.constant 0 : index
    %c0_2 = arith.constant 0 : index
    %4 = vector.load %arg2[%3, %c0, %c0_2] : memref<8x2x256xf32, #tpu.memory_space<vmem>>, vector<1x2x256xf32>
    %5 = vector.shape_cast %4 : vector<1x2x256xf32> to vector<2x256xf32>
    %6 = arith.index_cast %c0_i32_1 : i32 to index
    %c0_3 = arith.constant 0 : index
    %c0_4 = arith.constant 0 : index
    %7 = vector.load %arg3[%6, %c0_3, %c0_4] : memref<8x2x1xf32, #tpu.memory_space<vmem>>, vector<1x2x1xf32>
    %8 = vector.shape_cast %7 : vector<1x2x1xf32> to vector<2x1xf32>
    %9 = arith.index_cast %c0_i32_1 : i32 to index
    %c0_5 = arith.constant 0 : index
    %c0_6 = arith.constant 0 : index
    %c0_7 = arith.constant 0 : index
    %10 = vector.load %arg4[%9, %c0_5, %c0_6, %c0_7] : memref<8x2x4x2xf32, #tpu.memory_space<vmem>>, vector<1x2x4x2xf32>
    %11 = vector.shape_cast %10 : vector<1x2x4x2xf32> to vector<2x4x2xf32>
    %12 = arith.index_cast %c0_i32_1 : i32 to index
    %c0_8 = arith.constant 0 : index
    %c0_9 = arith.constant 0 : index
    %c0_10 = arith.constant 0 : index
    %13 = vector.load %arg5[%12, %c0_8, %c0_9, %c0_10] : memref<8x2x4x1xf32, #tpu.memory_space<vmem>>, vector<1x2x4x1xf32>
    %14 = vector.shape_cast %13 : vector<1x2x4x1xf32> to vector<2x4x1xf32>
    %15 = arith.index_cast %c0_i32_1 : i32 to index
    %c0_11 = arith.constant 0 : index
    %c0_12 = arith.constant 0 : index
    %c0_13 = arith.constant 0 : index
    %16 = vector.load %arg6[%15, %c0_11, %c0_12, %c0_13] : memref<8x2x4x2xf32, #tpu.memory_space<vmem>>, vector<1x2x4x2xf32>
    %17 = vector.shape_cast %16 : vector<1x2x4x2xf32> to vector<2x4x2xf32>
    %c0_14 = arith.constant 0 : index
    %c0_15 = arith.constant 0 : index
    %18 = vector.load %arg10[%c0_14, %c0_15] : memref<2x256xf32, #tpu.memory_space<vmem>>, vector<2x256xf32>
    %c0_16 = arith.constant 0 : index
    %c0_17 = arith.constant 0 : index
    %c0_18 = arith.constant 0 : index
    %19 = vector.load %arg11[%c0_16, %c0_17, %c0_18] : memref<2x4x128xf32, #tpu.memory_space<vmem>>, vector<2x4x128xf32>
    %20 = vector.extract_strided_slice %11 {offsets = [0, 0, 0], sizes = [2, 4, 1], strides = [1, 1, 1]} : vector<2x4x2xf32> to vector<2x4x1xf32>
    %21 = vector.broadcast %20 : vector<2x4x1xf32> to vector<2x4x128xf32>
    %22 = arith.mulf %21, %19 : vector<2x4x128xf32>
    %cst = arith.constant dense<0.000000e+00> : vector<2x128xf32>
    %23 = vector.multi_reduction <add>, %22, %cst [1] : vector<2x4x128xf32> to vector<2x128xf32>
    %24 = vector.extract_strided_slice %11 {offsets = [0, 0, 1], sizes = [2, 4, 1], strides = [1, 1, 1]} : vector<2x4x2xf32> to vector<2x4x1xf32>
    %25 = vector.broadcast %24 : vector<2x4x1xf32> to vector<2x4x128xf32>
    %26 = arith.mulf %25, %19 : vector<2x4x128xf32>
    %cst_19 = arith.constant dense<0.000000e+00> : vector<2x128xf32>
    %27 = vector.multi_reduction <add>, %26, %cst_19 [1] : vector<2x4x128xf32> to vector<2x128xf32>
    %28 = tpu.concatenate %23, %27 in 1 : vector<2x128xf32>, vector<2x128xf32> -> vector<2x256xf32>
    %c0_20 = arith.constant 0 : index
    %c0_21 = arith.constant 0 : index
    %29 = vector.load %arg12[%c0_20, %c0_21] : memref<256x256xf32, #tpu.memory_space<vmem>>, vector<256x256xf32>
    %cst_22 = arith.constant dense<0.000000e+00> : vector<2x256xf32>
    %30 = tpu.matmul %28, %29, %cst_22 {dimension_numbers = #tpu.dot_dimension_numbers<[1], [0], [0], [1], [0, 0, 1, 1], [], []>} : vector<2x256xf32>, vector<256x256xf32>, vector<2x256xf32> -> vector<2x256xf32>
    %31 = arith.addf %5, %30 : vector<2x256xf32>
    %32 = arith.negf %31 : vector<2x256xf32>
    %33 = math.exp %32 : vector<2x256xf32>
    %cst_23 = arith.constant 1.000000e+00 : f32
    %34 = vector.broadcast %cst_23 : f32 to vector<2x256xf32>
    %35 = arith.addf %34, %33 : vector<2x256xf32>
    %36 = arith.divf %34, %35 : vector<2x256xf32>
    %37 = arith.mulf %36, %30 : vector<2x256xf32>
    %38 = arith.addf %5, %37 : vector<2x256xf32>
    %39 = math.tanh %38 : vector<2x256xf32>
    %40 = arith.subf %39, %28 : vector<2x256xf32>
    %41 = arith.mulf %36, %40 : vector<2x256xf32>
    %42 = arith.addf %28, %41 : vector<2x256xf32>
    %cst_24 = arith.constant 0.000000e+00 : f32
    %43 = vector.broadcast %cst_24 : f32 to vector<2x4x128xf32>
    %44 = vector.extract_strided_slice %42 {offsets = [0, 0], sizes = [2, 128], strides = [1, 1]} : vector<2x256xf32> to vector<2x128xf32>
    %45 = vector.extract_strided_slice %17 {offsets = [0, 0, 0], sizes = [2, 4, 1], strides = [1, 1, 1]} : vector<2x4x2xf32> to vector<2x4x1xf32>
    %46 = vector.shape_cast %44 : vector<2x128xf32> to vector<2x1x128xf32>
    %47 = vector.broadcast %45 : vector<2x4x1xf32> to vector<2x4x128xf32>
    %48 = vector.broadcast %46 : vector<2x1x128xf32> to vector<2x4x128xf32>
    %49 = arith.mulf %47, %48 : vector<2x4x128xf32>
    %50 = arith.addf %43, %49 : vector<2x4x128xf32>
    %51 = vector.extract_strided_slice %42 {offsets = [0, 128], sizes = [2, 128], strides = [1, 1]} : vector<2x256xf32> to vector<2x128xf32>
    %52 = vector.extract_strided_slice %17 {offsets = [0, 0, 1], sizes = [2, 4, 1], strides = [1, 1, 1]} : vector<2x4x2xf32> to vector<2x4x1xf32>
    %53 = vector.shape_cast %51 : vector<2x128xf32> to vector<2x1x128xf32>
    %54 = vector.broadcast %52 : vector<2x4x1xf32> to vector<2x4x128xf32>
    %55 = vector.broadcast %53 : vector<2x1x128xf32> to vector<2x4x128xf32>
    %56 = arith.mulf %54, %55 : vector<2x4x128xf32>
    %57 = arith.addf %50, %56 : vector<2x4x128xf32>
    %58 = arith.subf %42, %18 : vector<2x256xf32>
    %59 = vector.broadcast %8 : vector<2x1xf32> to vector<2x256xf32>
    %60 = arith.mulf %59, %58 : vector<2x256xf32>
    %61 = arith.addf %18, %60 : vector<2x256xf32>
    %62 = arith.subf %57, %19 : vector<2x4x128xf32>
    %63 = vector.broadcast %14 : vector<2x4x1xf32> to vector<2x4x128xf32>
    %64 = arith.mulf %63, %62 : vector<2x4x128xf32>
    %65 = arith.addf %19, %64 : vector<2x4x128xf32>
    %c0_25 = arith.constant 0 : index
    %c0_26 = arith.constant 0 : index
    %66 = vector.load %arg10[%c0_25, %c0_26] : memref<2x256xf32, #tpu.memory_space<vmem>>, vector<2x256xf32>
    tpu.vector_store %arg10[%c0_25, %c0_26], %61 {strides = array<i32>} : memref<2x256xf32, #tpu.memory_space<vmem>>, vector<2x256xf32>,
    %c0_27 = arith.constant 0 : index
    %c0_28 = arith.constant 0 : index
    %c0_29 = arith.constant 0 : index
    %67 = vector.load %arg11[%c0_27, %c0_28, %c0_29] : memref<2x4x128xf32, #tpu.memory_space<vmem>>, vector<2x4x128xf32>
    tpu.vector_store %arg11[%c0_27, %c0_28, %c0_29], %65 {strides = array<i32>} : memref<2x4x128xf32, #tpu.memory_space<vmem>>, vector<2x4x128xf32>,
    %68 = arith.index_cast %c0_i32_1 : i32 to index
    %c0_30 = arith.constant 0 : index
    %c0_31 = arith.constant 0 : index
    %69 = vector.load %arg8[%68, %c0_30, %c0_31] : memref<8x2x256xf32, #tpu.memory_space<vmem>>, vector<1x2x256xf32>
    %70 = vector.shape_cast %69 : vector<1x2x256xf32> to vector<2x256xf32>
    %71 = vector.shape_cast %61 : vector<2x256xf32> to vector<1x2x256xf32>
    tpu.vector_store %arg8[%68, %c0_30, %c0_31], %71 {strides = array<i32>} : memref<8x2x256xf32, #tpu.memory_space<vmem>>, vector<1x2x256xf32>,
    %72 = arith.index_cast %c0_i32_1 : i32 to index
    %c0_32 = arith.constant 0 : index
    %c0_33 = arith.constant 0 : index
    %c0_34 = arith.constant 0 : index
    %73 = vector.load %arg9[%72, %c0_32, %c0_33, %c0_34] : memref<8x2x4x128xf32, #tpu.memory_space<vmem>>, vector<1x2x4x128xf32>
    %74 = vector.shape_cast %73 : vector<1x2x4x128xf32> to vector<2x4x128xf32>
    %75 = vector.shape_cast %65 : vector<2x4x128xf32> to vector<1x2x4x128xf32>
    tpu.vector_store %arg9[%72, %c0_32, %c0_33, %c0_34], %75 {strides = array<i32>} : memref<8x2x4x128xf32, #tpu.memory_space<vmem>>, vector<1x2x4x128xf32>,
    %c1_i32 = arith.constant 1 : i32
    %76 = arith.index_cast %c1_i32 : i32 to index
    %c0_35 = arith.constant 0 : index
    %c0_36 = arith.constant 0 : index
    %77 = vector.load %arg2[%76, %c0_35, %c0_36] : memref<8x2x256xf32, #tpu.memory_space<vmem>>, vector<1x2x256xf32>
    %78 = vector.shape_cast %77 : vector<1x2x256xf32> to vector<2x256xf32>
    %79 = arith.index_cast %c1_i32 : i32 to index
    %c0_37 = arith.constant 0 : index
    %c0_38 = arith.constant 0 : index
    %80 = vector.load %arg3[%79, %c0_37, %c0_38] : memref<8x2x1xf32, #tpu.memory_space<vmem>>, vector<1x2x1xf32>
    %81 = vector.shape_cast %80 : vector<1x2x1xf32> to vector<2x1xf32>
    %82 = arith.index_cast %c1_i32 : i32 to index
    %c0_39 = arith.constant 0 : index
    %c0_40 = arith.constant 0 : index
    %c0_41 = arith.constant 0 : index
    %83 = vector.load %arg4[%82, %c0_39, %c0_40, %c0_41] : memref<8x2x4x2xf32, #tpu.memory_space<vmem>>, vector<1x2x4x2xf32>
    %84 = vector.shape_cast %83 : vector<1x2x4x2xf32> to vector<2x4x2xf32>
    %85 = arith.index_cast %c1_i32 : i32 to index
    %c0_42 = arith.constant 0 : index
    %c0_43 = arith.constant 0 : index
    %c0_44 = arith.constant 0 : index
    %86 = vector.load %arg5[%85, %c0_42, %c0_43, %c0_44] : memref<8x2x4x1xf32, #tpu.memory_space<vmem>>, vector<1x2x4x1xf32>
    %87 = vector.shape_cast %86 : vector<1x2x4x1xf32> to vector<2x4x1xf32>
    %88 = arith.index_cast %c1_i32 : i32 to index
    %c0_45 = arith.constant 0 : index
    %c0_46 = arith.constant 0 : index
    %c0_47 = arith.constant 0 : index
    %89 = vector.load %arg6[%88, %c0_45, %c0_46, %c0_47] : memref<8x2x4x2xf32, #tpu.memory_space<vmem>>, vector<1x2x4x2xf32>
    %90 = vector.shape_cast %89 : vector<1x2x4x2xf32> to vector<2x4x2xf32>
    %c0_48 = arith.constant 0 : index
    %c0_49 = arith.constant 0 : index
    %91 = vector.load %arg10[%c0_48, %c0_49] : memref<2x256xf32, #tpu.memory_space<vmem>>, vector<2x256xf32>
    %c0_50 = arith.constant 0 : index
    %c0_51 = arith.constant 0 : index
    %c0_52 = arith.constant 0 : index
    %92 = vector.load %arg11[%c0_50, %c0_51, %c0_52] : memref<2x4x128xf32, #tpu.memory_space<vmem>>, vector<2x4x128xf32>
    %93 = vector.extract_strided_slice %84 {offsets = [0, 0, 0], sizes = [2, 4, 1], strides = [1, 1, 1]} : vector<2x4x2xf32> to vector<2x4x1xf32>
    %94 = vector.broadcast %93 : vector<2x4x1xf32> to vector<2x4x128xf32>
    %95 = arith.mulf %94, %92 : vector<2x4x128xf32>
    %cst_53 = arith.constant dense<0.000000e+00> : vector<2x128xf32>
    %96 = vector.multi_reduction <add>, %95, %cst_53 [1] : vector<2x4x128xf32> to vector<2x128xf32>
    %97 = vector.extract_strided_slice %84 {offsets = [0, 0, 1], sizes = [2, 4, 1], strides = [1, 1, 1]} : vector<2x4x2xf32> to vector<2x4x1xf32>
    %98 = vector.broadcast %97 : vector<2x4x1xf32> to vector<2x4x128xf32>
    %99 = arith.mulf %98, %92 : vector<2x4x128xf32>
    %cst_54 = arith.constant dense<0.000000e+00> : vector<2x128xf32>
    %100 = vector.multi_reduction <add>, %99, %cst_54 [1] : vector<2x4x128xf32> to vector<2x128xf32>
    %101 = tpu.concatenate %96, %100 in 1 : vector<2x128xf32>, vector<2x128xf32> -> vector<2x256xf32>
    %c0_55 = arith.constant 0 : index
    %c0_56 = arith.constant 0 : index
    %102 = vector.load %arg12[%c0_55, %c0_56] : memref<256x256xf32, #tpu.memory_space<vmem>>, vector<256x256xf32>
    %cst_57 = arith.constant dense<0.000000e+00> : vector<2x256xf32>
    %103 = tpu.matmul %101, %102, %cst_57 {dimension_numbers = #tpu.dot_dimension_numbers<[1], [0], [0], [1], [0, 0, 1, 1], [], []>} : vector<2x256xf32>, vector<256x256xf32>, vector<2x256xf32> -> vector<2x256xf32>
    %104 = arith.addf %78, %103 : vector<2x256xf32>
    %105 = arith.negf %104 : vector<2x256xf32>
    %106 = math.exp %105 : vector<2x256xf32>
    %cst_58 = arith.constant 1.000000e+00 : f32
    %107 = vector.broadcast %cst_58 : f32 to vector<2x256xf32>
    %108 = arith.addf %107, %106 : vector<2x256xf32>
    %109 = arith.divf %107, %108 : vector<2x256xf32>
    %110 = arith.mulf %109, %103 : vector<2x256xf32>
    %111 = arith.addf %78, %110 : vector<2x256xf32>
    %112 = math.tanh %111 : vector<2x256xf32>
    %113 = arith.subf %112, %101 : vector<2x256xf32>
    %114 = arith.mulf %109, %113 : vector<2x256xf32>
    %115 = arith.addf %101, %114 : vector<2x256xf32>
    %cst_59 = arith.constant 0.000000e+00 : f32
    %116 = vector.broadcast %cst_59 : f32 to vector<2x4x128xf32>
    %117 = vector.extract_strided_slice %115 {offsets = [0, 0], sizes = [2, 128], strides = [1, 1]} : vector<2x256xf32> to vector<2x128xf32>
    %118 = vector.extract_strided_slice %90 {offsets = [0, 0, 0], sizes = [2, 4, 1], strides = [1, 1, 1]} : vector<2x4x2xf32> to vector<2x4x1xf32>
    %119 = vector.shape_cast %117 : vector<2x128xf32> to vector<2x1x128xf32>
    %120 = vector.broadcast %118 : vector<2x4x1xf32> to vector<2x4x128xf32>
    %121 = vector.broadcast %119 : vector<2x1x128xf32> to vector<2x4x128xf32>
    %122 = arith.mulf %120, %121 : vector<2x4x128xf32>
    %123 = arith.addf %116, %122 : vector<2x4x128xf32>
    %124 = vector.extract_strided_slice %115 {offsets = [0, 128], sizes = [2, 128], strides = [1, 1]} : vector<2x256xf32> to vector<2x128xf32>
    %125 = vector.extract_strided_slice %90 {offsets = [0, 0, 1], sizes = [2, 4, 1], strides = [1, 1, 1]} : vector<2x4x2xf32> to vector<2x4x1xf32>
    %126 = vector.shape_cast %124 : vector<2x128xf32> to vector<2x1x128xf32>
    %127 = vector.broadcast %125 : vector<2x4x1xf32> to vector<2x4x128xf32>
    %128 = vector.broadcast %126 : vector<2x1x128xf32> to vector<2x4x128xf32>
    %129 = arith.mulf %127, %128 : vector<2x4x128xf32>
    %130 = arith.addf %123, %129 : vector<2x4x128xf32>
    %131 = arith.subf %115, %91 : vector<2x256xf32>
    %132 = vector.broadcast %81 : vector<2x1xf32> to vector<2x256xf32>
    %133 = arith.mulf %132, %131 : vector<2x256xf32>
    %134 = arith.addf %91, %133 : vector<2x256xf32>
    %135 = arith.subf %130, %92 : vector<2x4x128xf32>
    %136 = vector.broadcast %87 : vector<2x4x1xf32> to vector<2x4x128xf32>
    %137 = arith.mulf %136, %135 : vector<2x4x128xf32>
    %138 = arith.addf %92, %137 : vector<2x4x128xf32>
    %c0_60 = arith.constant 0 : index
    %c0_61 = arith.constant 0 : index
    %139 = vector.load %arg10[%c0_60, %c0_61] : memref<2x256xf32, #tpu.memory_space<vmem>>, vector<2x256xf32>
    tpu.vector_store %arg10[%c0_60, %c0_61], %134 {strides = array<i32>} : memref<2x256xf32, #tpu.memory_space<vmem>>, vector<2x256xf32>,
    %c0_62 = arith.constant 0 : index
    %c0_63 = arith.constant 0 : index
    %c0_64 = arith.constant 0 : index
    %140 = vector.load %arg11[%c0_62, %c0_63, %c0_64] : memref<2x4x128xf32, #tpu.memory_space<vmem>>, vector<2x4x128xf32>
    tpu.vector_store %arg11[%c0_62, %c0_63, %c0_64], %138 {strides = array<i32>} : memref<2x4x128xf32, #tpu.memory_space<vmem>>, vector<2x4x128xf32>,
    %141 = arith.index_cast %c1_i32 : i32 to index
    %c0_65 = arith.constant 0 : index
    %c0_66 = arith.constant 0 : index
    %142 = vector.load %arg8[%141, %c0_65, %c0_66] : memref<8x2x256xf32, #tpu.memory_space<vmem>>, vector<1x2x256xf32>
    %143 = vector.shape_cast %142 : vector<1x2x256xf32> to vector<2x256xf32>
    %144 = vector.shape_cast %134 : vector<2x256xf32> to vector<1x2x256xf32>
    tpu.vector_store %arg8[%141, %c0_65, %c0_66], %144 {strides = array<i32>} : memref<8x2x256xf32, #tpu.memory_space<vmem>>, vector<1x2x256xf32>,
    %145 = arith.index_cast %c1_i32 : i32 to index
    %c0_67 = arith.constant 0 : index
    %c0_68 = arith.constant 0 : index
    %c0_69 = arith.constant 0 : index
    %146 = vector.load %arg9[%145, %c0_67, %c0_68, %c0_69] : memref<8x2x4x128xf32, #tpu.memory_space<vmem>>, vector<1x2x4x128xf32>
    %147 = vector.shape_cast %146 : vector<1x2x4x128xf32> to vector<2x4x128xf32>
    %148 = vector.shape_cast %138 : vector<2x4x128xf32> to vector<1x2x4x128xf32>
    tpu.vector_store %arg9[%145, %c0_67, %c0_68, %c0_69], %148 {strides = array<i32>} : memref<8x2x4x128xf32, #tpu.memory_space<vmem>>, vector<1x2x4x128xf32>,
    %c2_i32 = arith.constant 2 : i32
    %149 = arith.index_cast %c2_i32 : i32 to index
    %c0_70 = arith.constant 0 : index
    %c0_71 = arith.constant 0 : index
    %150 = vector.load %arg2[%149, %c0_70, %c0_71] : memref<8x2x256xf32, #tpu.memory_space<vmem>>, vector<1x2x256xf32>
    %151 = vector.shape_cast %150 : vector<1x2x256xf32> to vector<2x256xf32>
    %152 = arith.index_cast %c2_i32 : i32 to index
    %c0_72 = arith.constant 0 : index
    %c0_73 = arith.constant 0 : index
    %153 = vector.load %arg3[%152, %c0_72, %c0_73] : memref<8x2x1xf32, #tpu.memory_space<vmem>>, vector<1x2x1xf32>
    %154 = vector.shape_cast %153 : vector<1x2x1xf32> to vector<2x1xf32>
    %155 = arith.index_cast %c2_i32 : i32 to index
    %c0_74 = arith.constant 0 : index
    %c0_75 = arith.constant 0 : index
    %c0_76 = arith.constant 0 : index
    %156 = vector.load %arg4[%155, %c0_74, %c0_75, %c0_76] : memref<8x2x4x2xf32, #tpu.memory_space<vmem>>, vector<1x2x4x2xf32>
    %157 = vector.shape_cast %156 : vector<1x2x4x2xf32> to vector<2x4x2xf32>
    %158 = arith.index_cast %c2_i32 : i32 to index
    %c0_77 = arith.constant 0 : index
    %c0_78 = arith.constant 0 : index
    %c0_79 = arith.constant 0 : index
    %159 = vector.load %arg5[%158, %c0_77, %c0_78, %c0_79] : memref<8x2x4x1xf32, #tpu.memory_space<vmem>>, vector<1x2x4x1xf32>
    %160 = vector.shape_cast %159 : vector<1x2x4x1xf32> to vector<2x4x1xf32>
    %161 = arith.index_cast %c2_i32 : i32 to index
    %c0_80 = arith.constant 0 : index
    %c0_81 = arith.constant 0 : index
    %c0_82 = arith.constant 0 : index
    %162 = vector.load %arg6[%161, %c0_80, %c0_81, %c0_82] : memref<8x2x4x2xf32, #tpu.memory_space<vmem>>, vector<1x2x4x2xf32>
    %163 = vector.shape_cast %162 : vector<1x2x4x2xf32> to vector<2x4x2xf32>
    %c0_83 = arith.constant 0 : index
    %c0_84 = arith.constant 0 : index
    %164 = vector.load %arg10[%c0_83, %c0_84] : memref<2x256xf32, #tpu.memory_space<vmem>>, vector<2x256xf32>
    %c0_85 = arith.constant 0 : index
    %c0_86 = arith.constant 0 : index
    %c0_87 = arith.constant 0 : index
    %165 = vector.load %arg11[%c0_85, %c0_86, %c0_87] : memref<2x4x128xf32, #tpu.memory_space<vmem>>, vector<2x4x128xf32>
    %166 = vector.extract_strided_slice %157 {offsets = [0, 0, 0], sizes = [2, 4, 1], strides = [1, 1, 1]} : vector<2x4x2xf32> to vector<2x4x1xf32>
    %167 = vector.broadcast %166 : vector<2x4x1xf32> to vector<2x4x128xf32>
    %168 = arith.mulf %167, %165 : vector<2x4x128xf32>
    %cst_88 = arith.constant dense<0.000000e+00> : vector<2x128xf32>
    %169 = vector.multi_reduction <add>, %168, %cst_88 [1] : vector<2x4x128xf32> to vector<2x128xf32>
    %170 = vector.extract_strided_slice %157 {offsets = [0, 0, 1], sizes = [2, 4, 1], strides = [1, 1, 1]} : vector<2x4x2xf32> to vector<2x4x1xf32>
    %171 = vector.broadcast %170 : vector<2x4x1xf32> to vector<2x4x128xf32>
    %172 = arith.mulf %171, %165 : vector<2x4x128xf32>
    %cst_89 = arith.constant dense<0.000000e+00> : vector<2x128xf32>
    %173 = vector.multi_reduction <add>, %172, %cst_89 [1] : vector<2x4x128xf32> to vector<2x128xf32>
    %174 = tpu.concatenate %169, %173 in 1 : vector<2x128xf32>, vector<2x128xf32> -> vector<2x256xf32>
    %c0_90 = arith.constant 0 : index
    %c0_91 = arith.constant 0 : index
    %175 = vector.load %arg12[%c0_90, %c0_91] : memref<256x256xf32, #tpu.memory_space<vmem>>, vector<256x256xf32>
    %cst_92 = arith.constant dense<0.000000e+00> : vector<2x256xf32>
    %176 = tpu.matmul %174, %175, %cst_92 {dimension_numbers = #tpu.dot_dimension_numbers<[1], [0], [0], [1], [0, 0, 1, 1], [], []>} : vector<2x256xf32>, vector<256x256xf32>, vector<2x256xf32> -> vector<2x256xf32>
    %177 = arith.addf %151, %176 : vector<2x256xf32>
    %178 = arith.negf %177 : vector<2x256xf32>
    %179 = math.exp %178 : vector<2x256xf32>
    %cst_93 = arith.constant 1.000000e+00 : f32
    %180 = vector.broadcast %cst_93 : f32 to vector<2x256xf32>
    %181 = arith.addf %180, %179 : vector<2x256xf32>
    %182 = arith.divf %180, %181 : vector<2x256xf32>
    %183 = arith.mulf %182, %176 : vector<2x256xf32>
    %184 = arith.addf %151, %183 : vector<2x256xf32>
    %185 = math.tanh %184 : vector<2x256xf32>
    %186 = arith.subf %185, %174 : vector<2x256xf32>
    %187 = arith.mulf %182, %186 : vector<2x256xf32>
    %188 = arith.addf %174, %187 : vector<2x256xf32>
    %cst_94 = arith.constant 0.000000e+00 : f32
    %189 = vector.broadcast %cst_94 : f32 to vector<2x4x128xf32>
    %190 = vector.extract_strided_slice %188 {offsets = [0, 0], sizes = [2, 128], strides = [1, 1]} : vector<2x256xf32> to vector<2x128xf32>
    %191 = vector.extract_strided_slice %163 {offsets = [0, 0, 0], sizes = [2, 4, 1], strides = [1, 1, 1]} : vector<2x4x2xf32> to vector<2x4x1xf32>
    %192 = vector.shape_cast %190 : vector<2x128xf32> to vector<2x1x128xf32>
    %193 = vector.broadcast %191 : vector<2x4x1xf32> to vector<2x4x128xf32>
    %194 = vector.broadcast %192 : vector<2x1x128xf32> to vector<2x4x128xf32>
    %195 = arith.mulf %193, %194 : vector<2x4x128xf32>
    %196 = arith.addf %189, %195 : vector<2x4x128xf32>
    %197 = vector.extract_strided_slice %188 {offsets = [0, 128], sizes = [2, 128], strides = [1, 1]} : vector<2x256xf32> to vector<2x128xf32>
    %198 = vector.extract_strided_slice %163 {offsets = [0, 0, 1], sizes = [2, 4, 1], strides = [1, 1, 1]} : vector<2x4x2xf32> to vector<2x4x1xf32>
    %199 = vector.shape_cast %197 : vector<2x128xf32> to vector<2x1x128xf32>
    %200 = vector.broadcast %198 : vector<2x4x1xf32> to vector<2x4x128xf32>
    %201 = vector.broadcast %199 : vector<2x1x128xf32> to vector<2x4x128xf32>
    %202 = arith.mulf %200, %201 : vector<2x4x128xf32>
    %203 = arith.addf %196, %202 : vector<2x4x128xf32>
    %204 = arith.subf %188, %164 : vector<2x256xf32>
    %205 = vector.broadcast %154 : vector<2x1xf32> to vector<2x256xf32>
    %206 = arith.mulf %205, %204 : vector<2x256xf32>
    %207 = arith.addf %164, %206 : vector<2x256xf32>
    %208 = arith.subf %203, %165 : vector<2x4x128xf32>
    %209 = vector.broadcast %160 : vector<2x4x1xf32> to vector<2x4x128xf32>
    %210 = arith.mulf %209, %208 : vector<2x4x128xf32>
    %211 = arith.addf %165, %210 : vector<2x4x128xf32>
    %c0_95 = arith.constant 0 : index
    %c0_96 = arith.constant 0 : index
    %212 = vector.load %arg10[%c0_95, %c0_96] : memref<2x256xf32, #tpu.memory_space<vmem>>, vector<2x256xf32>
    tpu.vector_store %arg10[%c0_95, %c0_96], %207 {strides = array<i32>} : memref<2x256xf32, #tpu.memory_space<vmem>>, vector<2x256xf32>,
    %c0_97 = arith.constant 0 : index
    %c0_98 = arith.constant 0 : index
    %c0_99 = arith.constant 0 : index
    %213 = vector.load %arg11[%c0_97, %c0_98, %c0_99] : memref<2x4x128xf32, #tpu.memory_space<vmem>>, vector<2x4x128xf32>
    tpu.vector_store %arg11[%c0_97, %c0_98, %c0_99], %211 {strides = array<i32>} : memref<2x4x128xf32, #tpu.memory_space<vmem>>, vector<2x4x128xf32>,
    %214 = arith.index_cast %c2_i32 : i32 to index
    %c0_100 = arith.constant 0 : index
    %c0_101 = arith.constant 0 : index
    %215 = vector.load %arg8[%214, %c0_100, %c0_101] : memref<8x2x256xf32, #tpu.memory_space<vmem>>, vector<1x2x256xf32>
    %216 = vector.shape_cast %215 : vector<1x2x256xf32> to vector<2x256xf32>
    %217 = vector.shape_cast %207 : vector<2x256xf32> to vector<1x2x256xf32>
    tpu.vector_store %arg8[%214, %c0_100, %c0_101], %217 {strides = array<i32>} : memref<8x2x256xf32, #tpu.memory_space<vmem>>, vector<1x2x256xf32>,
    %218 = arith.index_cast %c2_i32 : i32 to index
    %c0_102 = arith.constant 0 : index
    %c0_103 = arith.constant 0 : index
    %c0_104 = arith.constant 0 : index
    %219 = vector.load %arg9[%218, %c0_102, %c0_103, %c0_104] : memref<8x2x4x128xf32, #tpu.memory_space<vmem>>, vector<1x2x4x128xf32>
    %220 = vector.shape_cast %219 : vector<1x2x4x128xf32> to vector<2x4x128xf32>
    %221 = vector.shape_cast %211 : vector<2x4x128xf32> to vector<1x2x4x128xf32>
    tpu.vector_store %arg9[%218, %c0_102, %c0_103, %c0_104], %221 {strides = array<i32>} : memref<8x2x4x128xf32, #tpu.memory_space<vmem>>, vector<1x2x4x128xf32>,
    %c3_i32 = arith.constant 3 : i32
    %222 = arith.index_cast %c3_i32 : i32 to index
    %c0_105 = arith.constant 0 : index
    %c0_106 = arith.constant 0 : index
    %223 = vector.load %arg2[%222, %c0_105, %c0_106] : memref<8x2x256xf32, #tpu.memory_space<vmem>>, vector<1x2x256xf32>
    %224 = vector.shape_cast %223 : vector<1x2x256xf32> to vector<2x256xf32>
    %225 = arith.index_cast %c3_i32 : i32 to index
    %c0_107 = arith.constant 0 : index
    %c0_108 = arith.constant 0 : index
    %226 = vector.load %arg3[%225, %c0_107, %c0_108] : memref<8x2x1xf32, #tpu.memory_space<vmem>>, vector<1x2x1xf32>
    %227 = vector.shape_cast %226 : vector<1x2x1xf32> to vector<2x1xf32>
    %228 = arith.index_cast %c3_i32 : i32 to index
    %c0_109 = arith.constant 0 : index
    %c0_110 = arith.constant 0 : index
    %c0_111 = arith.constant 0 : index
    %229 = vector.load %arg4[%228, %c0_109, %c0_110, %c0_111] : memref<8x2x4x2xf32, #tpu.memory_space<vmem>>, vector<1x2x4x2xf32>
    %230 = vector.shape_cast %229 : vector<1x2x4x2xf32> to vector<2x4x2xf32>
    %231 = arith.index_cast %c3_i32 : i32 to index
    %c0_112 = arith.constant 0 : index
    %c0_113 = arith.constant 0 : index
    %c0_114 = arith.constant 0 : index
    %232 = vector.load %arg5[%231, %c0_112, %c0_113, %c0_114] : memref<8x2x4x1xf32, #tpu.memory_space<vmem>>, vector<1x2x4x1xf32>
    %233 = vector.shape_cast %232 : vector<1x2x4x1xf32> to vector<2x4x1xf32>
    %234 = arith.index_cast %c3_i32 : i32 to index
    %c0_115 = arith.constant 0 : index
    %c0_116 = arith.constant 0 : index
    %c0_117 = arith.constant 0 : index
    %235 = vector.load %arg6[%234, %c0_115, %c0_116, %c0_117] : memref<8x2x4x2xf32, #tpu.memory_space<vmem>>, vector<1x2x4x2xf32>
    %236 = vector.shape_cast %235 : vector<1x2x4x2xf32> to vector<2x4x2xf32>
    %c0_118 = arith.constant 0 : index
    %c0_119 = arith.constant 0 : index
    %237 = vector.load %arg10[%c0_118, %c0_119] : memref<2x256xf32, #tpu.memory_space<vmem>>, vector<2x256xf32>
    %c0_120 = arith.constant 0 : index
    %c0_121 = arith.constant 0 : index
    %c0_122 = arith.constant 0 : index
    %238 = vector.load %arg11[%c0_120, %c0_121, %c0_122] : memref<2x4x128xf32, #tpu.memory_space<vmem>>, vector<2x4x128xf32>
    %239 = vector.extract_strided_slice %230 {offsets = [0, 0, 0], sizes = [2, 4, 1], strides = [1, 1, 1]} : vector<2x4x2xf32> to vector<2x4x1xf32>
    %240 = vector.broadcast %239 : vector<2x4x1xf32> to vector<2x4x128xf32>
    %241 = arith.mulf %240, %238 : vector<2x4x128xf32>
    %cst_123 = arith.constant dense<0.000000e+00> : vector<2x128xf32>
    %242 = vector.multi_reduction <add>, %241, %cst_123 [1] : vector<2x4x128xf32> to vector<2x128xf32>
    %243 = vector.extract_strided_slice %230 {offsets = [0, 0, 1], sizes = [2, 4, 1], strides = [1, 1, 1]} : vector<2x4x2xf32> to vector<2x4x1xf32>
    %244 = vector.broadcast %243 : vector<2x4x1xf32> to vector<2x4x128xf32>
    %245 = arith.mulf %244, %238 : vector<2x4x128xf32>
    %cst_124 = arith.constant dense<0.000000e+00> : vector<2x128xf32>
    %246 = vector.multi_reduction <add>, %245, %cst_124 [1] : vector<2x4x128xf32> to vector<2x128xf32>
    %247 = tpu.concatenate %242, %246 in 1 : vector<2x128xf32>, vector<2x128xf32> -> vector<2x256xf32>
    %c0_125 = arith.constant 0 : index
    %c0_126 = arith.constant 0 : index
    %248 = vector.load %arg12[%c0_125, %c0_126] : memref<256x256xf32, #tpu.memory_space<vmem>>, vector<256x256xf32>
    %cst_127 = arith.constant dense<0.000000e+00> : vector<2x256xf32>
    %249 = tpu.matmul %247, %248, %cst_127 {dimension_numbers = #tpu.dot_dimension_numbers<[1], [0], [0], [1], [0, 0, 1, 1], [], []>} : vector<2x256xf32>, vector<256x256xf32>, vector<2x256xf32> -> vector<2x256xf32>
    %250 = arith.addf %224, %249 : vector<2x256xf32>
    %251 = arith.negf %250 : vector<2x256xf32>
    %252 = math.exp %251 : vector<2x256xf32>
    %cst_128 = arith.constant 1.000000e+00 : f32
    %253 = vector.broadcast %cst_128 : f32 to vector<2x256xf32>
    %254 = arith.addf %253, %252 : vector<2x256xf32>
    %255 = arith.divf %253, %254 : vector<2x256xf32>
    %256 = arith.mulf %255, %249 : vector<2x256xf32>
    %257 = arith.addf %224, %256 : vector<2x256xf32>
    %258 = math.tanh %257 : vector<2x256xf32>
    %259 = arith.subf %258, %247 : vector<2x256xf32>
    %260 = arith.mulf %255, %259 : vector<2x256xf32>
    %261 = arith.addf %247, %260 : vector<2x256xf32>
    %cst_129 = arith.constant 0.000000e+00 : f32
    %262 = vector.broadcast %cst_129 : f32 to vector<2x4x128xf32>
    %263 = vector.extract_strided_slice %261 {offsets = [0, 0], sizes = [2, 128], strides = [1, 1]} : vector<2x256xf32> to vector<2x128xf32>
    %264 = vector.extract_strided_slice %236 {offsets = [0, 0, 0], sizes = [2, 4, 1], strides = [1, 1, 1]} : vector<2x4x2xf32> to vector<2x4x1xf32>
    %265 = vector.shape_cast %263 : vector<2x128xf32> to vector<2x1x128xf32>
    %266 = vector.broadcast %264 : vector<2x4x1xf32> to vector<2x4x128xf32>
    %267 = vector.broadcast %265 : vector<2x1x128xf32> to vector<2x4x128xf32>
    %268 = arith.mulf %266, %267 : vector<2x4x128xf32>
    %269 = arith.addf %262, %268 : vector<2x4x128xf32>
    %270 = vector.extract_strided_slice %261 {offsets = [0, 128], sizes = [2, 128], strides = [1, 1]} : vector<2x256xf32> to vector<2x128xf32>
    %271 = vector.extract_strided_slice %236 {offsets = [0, 0, 1], sizes = [2, 4, 1], strides = [1, 1, 1]} : vector<2x4x2xf32> to vector<2x4x1xf32>
    %272 = vector.shape_cast %270 : vector<2x128xf32> to vector<2x1x128xf32>
    %273 = vector.broadcast %271 : vector<2x4x1xf32> to vector<2x4x128xf32>
    %274 = vector.broadcast %272 : vector<2x1x128xf32> to vector<2x4x128xf32>
    %275 = arith.mulf %273, %274 : vector<2x4x128xf32>
    %276 = arith.addf %269, %275 : vector<2x4x128xf32>
    %277 = arith.subf %261, %237 : vector<2x256xf32>
    %278 = vector.broadcast %227 : vector<2x1xf32> to vector<2x256xf32>
    %279 = arith.mulf %278, %277 : vector<2x256xf32>
    %280 = arith.addf %237, %279 : vector<2x256xf32>
    %281 = arith.subf %276, %238 : vector<2x4x128xf32>
    %282 = vector.broadcast %233 : vector<2x4x1xf32> to vector<2x4x128xf32>
    %283 = arith.mulf %282, %281 : vector<2x4x128xf32>
    %284 = arith.addf %238, %283 : vector<2x4x128xf32>
    %c0_130 = arith.constant 0 : index
    %c0_131 = arith.constant 0 : index
    %285 = vector.load %arg10[%c0_130, %c0_131] : memref<2x256xf32, #tpu.memory_space<vmem>>, vector<2x256xf32>
    tpu.vector_store %arg10[%c0_130, %c0_131], %280 {strides = array<i32>} : memref<2x256xf32, #tpu.memory_space<vmem>>, vector<2x256xf32>,
    %c0_132 = arith.constant 0 : index
    %c0_133 = arith.constant 0 : index
    %c0_134 = arith.constant 0 : index
    %286 = vector.load %arg11[%c0_132, %c0_133, %c0_134] : memref<2x4x128xf32, #tpu.memory_space<vmem>>, vector<2x4x128xf32>
    tpu.vector_store %arg11[%c0_132, %c0_133, %c0_134], %284 {strides = array<i32>} : memref<2x4x128xf32, #tpu.memory_space<vmem>>, vector<2x4x128xf32>,
    %287 = arith.index_cast %c3_i32 : i32 to index
    %c0_135 = arith.constant 0 : index
    %c0_136 = arith.constant 0 : index
    %288 = vector.load %arg8[%287, %c0_135, %c0_136] : memref<8x2x256xf32, #tpu.memory_space<vmem>>, vector<1x2x256xf32>
    %289 = vector.shape_cast %288 : vector<1x2x256xf32> to vector<2x256xf32>
    %290 = vector.shape_cast %280 : vector<2x256xf32> to vector<1x2x256xf32>
    tpu.vector_store %arg8[%287, %c0_135, %c0_136], %290 {strides = array<i32>} : memref<8x2x256xf32, #tpu.memory_space<vmem>>, vector<1x2x256xf32>,
    %291 = arith.index_cast %c3_i32 : i32 to index
    %c0_137 = arith.constant 0 : index
    %c0_138 = arith.constant 0 : index
    %c0_139 = arith.constant 0 : index
    %292 = vector.load %arg9[%291, %c0_137, %c0_138, %c0_139] : memref<8x2x4x128xf32, #tpu.memory_space<vmem>>, vector<1x2x4x128xf32>
    %293 = vector.shape_cast %292 : vector<1x2x4x128xf32> to vector<2x4x128xf32>
    %294 = vector.shape_cast %284 : vector<2x4x128xf32> to vector<1x2x4x128xf32>
    tpu.vector_store %arg9[%291, %c0_137, %c0_138, %c0_139], %294 {strides = array<i32>} : memref<8x2x4x128xf32, #tpu.memory_space<vmem>>, vector<1x2x4x128xf32>,
    %c4_i32 = arith.constant 4 : i32
    %295 = arith.index_cast %c4_i32 : i32 to index
    %c0_140 = arith.constant 0 : index
    %c0_141 = arith.constant 0 : index
    %296 = vector.load %arg2[%295, %c0_140, %c0_141] : memref<8x2x256xf32, #tpu.memory_space<vmem>>, vector<1x2x256xf32>
    %297 = vector.shape_cast %296 : vector<1x2x256xf32> to vector<2x256xf32>
    %298 = arith.index_cast %c4_i32 : i32 to index
    %c0_142 = arith.constant 0 : index
    %c0_143 = arith.constant 0 : index
    %299 = vector.load %arg3[%298, %c0_142, %c0_143] : memref<8x2x1xf32, #tpu.memory_space<vmem>>, vector<1x2x1xf32>
    %300 = vector.shape_cast %299 : vector<1x2x1xf32> to vector<2x1xf32>
    %301 = arith.index_cast %c4_i32 : i32 to index
    %c0_144 = arith.constant 0 : index
    %c0_145 = arith.constant 0 : index
    %c0_146 = arith.constant 0 : index
    %302 = vector.load %arg4[%301, %c0_144, %c0_145, %c0_146] : memref<8x2x4x2xf32, #tpu.memory_space<vmem>>, vector<1x2x4x2xf32>
    %303 = vector.shape_cast %302 : vector<1x2x4x2xf32> to vector<2x4x2xf32>
    %304 = arith.index_cast %c4_i32 : i32 to index
    %c0_147 = arith.constant 0 : index
    %c0_148 = arith.constant 0 : index
    %c0_149 = arith.constant 0 : index
    %305 = vector.load %arg5[%304, %c0_147, %c0_148, %c0_149] : memref<8x2x4x1xf32, #tpu.memory_space<vmem>>, vector<1x2x4x1xf32>
    %306 = vector.shape_cast %305 : vector<1x2x4x1xf32> to vector<2x4x1xf32>
    %307 = arith.index_cast %c4_i32 : i32 to index
    %c0_150 = arith.constant 0 : index
    %c0_151 = arith.constant 0 : index
    %c0_152 = arith.constant 0 : index
    %308 = vector.load %arg6[%307, %c0_150, %c0_151, %c0_152] : memref<8x2x4x2xf32, #tpu.memory_space<vmem>>, vector<1x2x4x2xf32>
    %309 = vector.shape_cast %308 : vector<1x2x4x2xf32> to vector<2x4x2xf32>
    %c0_153 = arith.constant 0 : index
    %c0_154 = arith.constant 0 : index
    %310 = vector.load %arg10[%c0_153, %c0_154] : memref<2x256xf32, #tpu.memory_space<vmem>>, vector<2x256xf32>
    %c0_155 = arith.constant 0 : index
    %c0_156 = arith.constant 0 : index
    %c0_157 = arith.constant 0 : index
    %311 = vector.load %arg11[%c0_155, %c0_156, %c0_157] : memref<2x4x128xf32, #tpu.memory_space<vmem>>, vector<2x4x128xf32>
    %312 = vector.extract_strided_slice %303 {offsets = [0, 0, 0], sizes = [2, 4, 1], strides = [1, 1, 1]} : vector<2x4x2xf32> to vector<2x4x1xf32>
    %313 = vector.broadcast %312 : vector<2x4x1xf32> to vector<2x4x128xf32>
    %314 = arith.mulf %313, %311 : vector<2x4x128xf32>
    %cst_158 = arith.constant dense<0.000000e+00> : vector<2x128xf32>
    %315 = vector.multi_reduction <add>, %314, %cst_158 [1] : vector<2x4x128xf32> to vector<2x128xf32>
    %316 = vector.extract_strided_slice %303 {offsets = [0, 0, 1], sizes = [2, 4, 1], strides = [1, 1, 1]} : vector<2x4x2xf32> to vector<2x4x1xf32>
    %317 = vector.broadcast %316 : vector<2x4x1xf32> to vector<2x4x128xf32>
    %318 = arith.mulf %317, %311 : vector<2x4x128xf32>
    %cst_159 = arith.constant dense<0.000000e+00> : vector<2x128xf32>
    %319 = vector.multi_reduction <add>, %318, %cst_159 [1] : vector<2x4x128xf32> to vector<2x128xf32>
    %320 = tpu.concatenate %315, %319 in 1 : vector<2x128xf32>, vector<2x128xf32> -> vector<2x256xf32>
    %c0_160 = arith.constant 0 : index
    %c0_161 = arith.constant 0 : index
    %321 = vector.load %arg12[%c0_160, %c0_161] : memref<256x256xf32, #tpu.memory_space<vmem>>, vector<256x256xf32>
    %cst_162 = arith.constant dense<0.000000e+00> : vector<2x256xf32>
    %322 = tpu.matmul %320, %321, %cst_162 {dimension_numbers = #tpu.dot_dimension_numbers<[1], [0], [0], [1], [0, 0, 1, 1], [], []>} : vector<2x256xf32>, vector<256x256xf32>, vector<2x256xf32> -> vector<2x256xf32>
    %323 = arith.addf %297, %322 : vector<2x256xf32>
    %324 = arith.negf %323 : vector<2x256xf32>
    %325 = math.exp %324 : vector<2x256xf32>
    %cst_163 = arith.constant 1.000000e+00 : f32
    %326 = vector.broadcast %cst_163 : f32 to vector<2x256xf32>
    %327 = arith.addf %326, %325 : vector<2x256xf32>
    %328 = arith.divf %326, %327 : vector<2x256xf32>
    %329 = arith.mulf %328, %322 : vector<2x256xf32>
    %330 = arith.addf %297, %329 : vector<2x256xf32>
    %331 = math.tanh %330 : vector<2x256xf32>
    %332 = arith.subf %331, %320 : vector<2x256xf32>
    %333 = arith.mulf %328, %332 : vector<2x256xf32>
    %334 = arith.addf %320, %333 : vector<2x256xf32>
    %cst_164 = arith.constant 0.000000e+00 : f32
    %335 = vector.broadcast %cst_164 : f32 to vector<2x4x128xf32>
    %336 = vector.extract_strided_slice %334 {offsets = [0, 0], sizes = [2, 128], strides = [1, 1]} : vector<2x256xf32> to vector<2x128xf32>
    %337 = vector.extract_strided_slice %309 {offsets = [0, 0, 0], sizes = [2, 4, 1], strides = [1, 1, 1]} : vector<2x4x2xf32> to vector<2x4x1xf32>
    %338 = vector.shape_cast %336 : vector<2x128xf32> to vector<2x1x128xf32>
    %339 = vector.broadcast %337 : vector<2x4x1xf32> to vector<2x4x128xf32>
    %340 = vector.broadcast %338 : vector<2x1x128xf32> to vector<2x4x128xf32>
    %341 = arith.mulf %339, %340 : vector<2x4x128xf32>
    %342 = arith.addf %335, %341 : vector<2x4x128xf32>
    %343 = vector.extract_strided_slice %334 {offsets = [0, 128], sizes = [2, 128], strides = [1, 1]} : vector<2x256xf32> to vector<2x128xf32>
    %344 = vector.extract_strided_slice %309 {offsets = [0, 0, 1], sizes = [2, 4, 1], strides = [1, 1, 1]} : vector<2x4x2xf32> to vector<2x4x1xf32>
    %345 = vector.shape_cast %343 : vector<2x128xf32> to vector<2x1x128xf32>
    %346 = vector.broadcast %344 : vector<2x4x1xf32> to vector<2x4x128xf32>
    %347 = vector.broadcast %345 : vector<2x1x128xf32> to vector<2x4x128xf32>
    %348 = arith.mulf %346, %347 : vector<2x4x128xf32>
    %349 = arith.addf %342, %348 : vector<2x4x128xf32>
    %350 = arith.subf %334, %310 : vector<2x256xf32>
    %351 = vector.broadcast %300 : vector<2x1xf32> to vector<2x256xf32>
    %352 = arith.mulf %351, %350 : vector<2x256xf32>
    %353 = arith.addf %310, %352 : vector<2x256xf32>
    %354 = arith.subf %349, %311 : vector<2x4x128xf32>
    %355 = vector.broadcast %306 : vector<2x4x1xf32> to vector<2x4x128xf32>
    %356 = arith.mulf %355, %354 : vector<2x4x128xf32>
    %357 = arith.addf %311, %356 : vector<2x4x128xf32>
    %c0_165 = arith.constant 0 : index
    %c0_166 = arith.constant 0 : index
    %358 = vector.load %arg10[%c0_165, %c0_166] : memref<2x256xf32, #tpu.memory_space<vmem>>, vector<2x256xf32>
    tpu.vector_store %arg10[%c0_165, %c0_166], %353 {strides = array<i32>} : memref<2x256xf32, #tpu.memory_space<vmem>>, vector<2x256xf32>,
    %c0_167 = arith.constant 0 : index
    %c0_168 = arith.constant 0 : index
    %c0_169 = arith.constant 0 : index
    %359 = vector.load %arg11[%c0_167, %c0_168, %c0_169] : memref<2x4x128xf32, #tpu.memory_space<vmem>>, vector<2x4x128xf32>
    tpu.vector_store %arg11[%c0_167, %c0_168, %c0_169], %357 {strides = array<i32>} : memref<2x4x128xf32, #tpu.memory_space<vmem>>, vector<2x4x128xf32>,
    %360 = arith.index_cast %c4_i32 : i32 to index
    %c0_170 = arith.constant 0 : index
    %c0_171 = arith.constant 0 : index
    %361 = vector.load %arg8[%360, %c0_170, %c0_171] : memref<8x2x256xf32, #tpu.memory_space<vmem>>, vector<1x2x256xf32>
    %362 = vector.shape_cast %361 : vector<1x2x256xf32> to vector<2x256xf32>
    %363 = vector.shape_cast %353 : vector<2x256xf32> to vector<1x2x256xf32>
    tpu.vector_store %arg8[%360, %c0_170, %c0_171], %363 {strides = array<i32>} : memref<8x2x256xf32, #tpu.memory_space<vmem>>, vector<1x2x256xf32>,
    %364 = arith.index_cast %c4_i32 : i32 to index
    %c0_172 = arith.constant 0 : index
    %c0_173 = arith.constant 0 : index
    %c0_174 = arith.constant 0 : index
    %365 = vector.load %arg9[%364, %c0_172, %c0_173, %c0_174] : memref<8x2x4x128xf32, #tpu.memory_space<vmem>>, vector<1x2x4x128xf32>
    %366 = vector.shape_cast %365 : vector<1x2x4x128xf32> to vector<2x4x128xf32>
    %367 = vector.shape_cast %357 : vector<2x4x128xf32> to vector<1x2x4x128xf32>
    tpu.vector_store %arg9[%364, %c0_172, %c0_173, %c0_174], %367 {strides = array<i32>} : memref<8x2x4x128xf32, #tpu.memory_space<vmem>>, vector<1x2x4x128xf32>,
    %c5_i32 = arith.constant 5 : i32
    %368 = arith.index_cast %c5_i32 : i32 to index
    %c0_175 = arith.constant 0 : index
    %c0_176 = arith.constant 0 : index
    %369 = vector.load %arg2[%368, %c0_175, %c0_176] : memref<8x2x256xf32, #tpu.memory_space<vmem>>, vector<1x2x256xf32>
    %370 = vector.shape_cast %369 : vector<1x2x256xf32> to vector<2x256xf32>
    %371 = arith.index_cast %c5_i32 : i32 to index
    %c0_177 = arith.constant 0 : index
    %c0_178 = arith.constant 0 : index
    %372 = vector.load %arg3[%371, %c0_177, %c0_178] : memref<8x2x1xf32, #tpu.memory_space<vmem>>, vector<1x2x1xf32>
    %373 = vector.shape_cast %372 : vector<1x2x1xf32> to vector<2x1xf32>
    %374 = arith.index_cast %c5_i32 : i32 to index
    %c0_179 = arith.constant 0 : index
    %c0_180 = arith.constant 0 : index
    %c0_181 = arith.constant 0 : index
    %375 = vector.load %arg4[%374, %c0_179, %c0_180, %c0_181] : memref<8x2x4x2xf32, #tpu.memory_space<vmem>>, vector<1x2x4x2xf32>
    %376 = vector.shape_cast %375 : vector<1x2x4x2xf32> to vector<2x4x2xf32>
    %377 = arith.index_cast %c5_i32 : i32 to index
    %c0_182 = arith.constant 0 : index
    %c0_183 = arith.constant 0 : index
    %c0_184 = arith.constant 0 : index
    %378 = vector.load %arg5[%377, %c0_182, %c0_183, %c0_184] : memref<8x2x4x1xf32, #tpu.memory_space<vmem>>, vector<1x2x4x1xf32>
    %379 = vector.shape_cast %378 : vector<1x2x4x1xf32> to vector<2x4x1xf32>
    %380 = arith.index_cast %c5_i32 : i32 to index
    %c0_185 = arith.constant 0 : index
    %c0_186 = arith.constant 0 : index
    %c0_187 = arith.constant 0 : index
    %381 = vector.load %arg6[%380, %c0_185, %c0_186, %c0_187] : memref<8x2x4x2xf32, #tpu.memory_space<vmem>>, vector<1x2x4x2xf32>
    %382 = vector.shape_cast %381 : vector<1x2x4x2xf32> to vector<2x4x2xf32>
    %c0_188 = arith.constant 0 : index
    %c0_189 = arith.constant 0 : index
    %383 = vector.load %arg10[%c0_188, %c0_189] : memref<2x256xf32, #tpu.memory_space<vmem>>, vector<2x256xf32>
    %c0_190 = arith.constant 0 : index
    %c0_191 = arith.constant 0 : index
    %c0_192 = arith.constant 0 : index
    %384 = vector.load %arg11[%c0_190, %c0_191, %c0_192] : memref<2x4x128xf32, #tpu.memory_space<vmem>>, vector<2x4x128xf32>
    %385 = vector.extract_strided_slice %376 {offsets = [0, 0, 0], sizes = [2, 4, 1], strides = [1, 1, 1]} : vector<2x4x2xf32> to vector<2x4x1xf32>
    %386 = vector.broadcast %385 : vector<2x4x1xf32> to vector<2x4x128xf32>
    %387 = arith.mulf %386, %384 : vector<2x4x128xf32>
    %cst_193 = arith.constant dense<0.000000e+00> : vector<2x128xf32>
    %388 = vector.multi_reduction <add>, %387, %cst_193 [1] : vector<2x4x128xf32> to vector<2x128xf32>
    %389 = vector.extract_strided_slice %376 {offsets = [0, 0, 1], sizes = [2, 4, 1], strides = [1, 1, 1]} : vector<2x4x2xf32> to vector<2x4x1xf32>
    %390 = vector.broadcast %389 : vector<2x4x1xf32> to vector<2x4x128xf32>
    %391 = arith.mulf %390, %384 : vector<2x4x128xf32>
    %cst_194 = arith.constant dense<0.000000e+00> : vector<2x128xf32>
    %392 = vector.multi_reduction <add>, %391, %cst_194 [1] : vector<2x4x128xf32> to vector<2x128xf32>
    %393 = tpu.concatenate %388, %392 in 1 : vector<2x128xf32>, vector<2x128xf32> -> vector<2x256xf32>
    %c0_195 = arith.constant 0 : index
    %c0_196 = arith.constant 0 : index
    %394 = vector.load %arg12[%c0_195, %c0_196] : memref<256x256xf32, #tpu.memory_space<vmem>>, vector<256x256xf32>
    %cst_197 = arith.constant dense<0.000000e+00> : vector<2x256xf32>
    %395 = tpu.matmul %393, %394, %cst_197 {dimension_numbers = #tpu.dot_dimension_numbers<[1], [0], [0], [1], [0, 0, 1, 1], [], []>} : vector<2x256xf32>, vector<256x256xf32>, vector<2x256xf32> -> vector<2x256xf32>
    %396 = arith.addf %370, %395 : vector<2x256xf32>
    %397 = arith.negf %396 : vector<2x256xf32>
    %398 = math.exp %397 : vector<2x256xf32>
    %cst_198 = arith.constant 1.000000e+00 : f32
    %399 = vector.broadcast %cst_198 : f32 to vector<2x256xf32>
    %400 = arith.addf %399, %398 : vector<2x256xf32>
    %401 = arith.divf %399, %400 : vector<2x256xf32>
    %402 = arith.mulf %401, %395 : vector<2x256xf32>
    %403 = arith.addf %370, %402 : vector<2x256xf32>
    %404 = math.tanh %403 : vector<2x256xf32>
    %405 = arith.subf %404, %393 : vector<2x256xf32>
    %406 = arith.mulf %401, %405 : vector<2x256xf32>
    %407 = arith.addf %393, %406 : vector<2x256xf32>
    %cst_199 = arith.constant 0.000000e+00 : f32
    %408 = vector.broadcast %cst_199 : f32 to vector<2x4x128xf32>
    %409 = vector.extract_strided_slice %407 {offsets = [0, 0], sizes = [2, 128], strides = [1, 1]} : vector<2x256xf32> to vector<2x128xf32>
    %410 = vector.extract_strided_slice %382 {offsets = [0, 0, 0], sizes = [2, 4, 1], strides = [1, 1, 1]} : vector<2x4x2xf32> to vector<2x4x1xf32>
    %411 = vector.shape_cast %409 : vector<2x128xf32> to vector<2x1x128xf32>
    %412 = vector.broadcast %410 : vector<2x4x1xf32> to vector<2x4x128xf32>
    %413 = vector.broadcast %411 : vector<2x1x128xf32> to vector<2x4x128xf32>
    %414 = arith.mulf %412, %413 : vector<2x4x128xf32>
    %415 = arith.addf %408, %414 : vector<2x4x128xf32>
    %416 = vector.extract_strided_slice %407 {offsets = [0, 128], sizes = [2, 128], strides = [1, 1]} : vector<2x256xf32> to vector<2x128xf32>
    %417 = vector.extract_strided_slice %382 {offsets = [0, 0, 1], sizes = [2, 4, 1], strides = [1, 1, 1]} : vector<2x4x2xf32> to vector<2x4x1xf32>
    %418 = vector.shape_cast %416 : vector<2x128xf32> to vector<2x1x128xf32>
    %419 = vector.broadcast %417 : vector<2x4x1xf32> to vector<2x4x128xf32>
    %420 = vector.broadcast %418 : vector<2x1x128xf32> to vector<2x4x128xf32>
    %421 = arith.mulf %419, %420 : vector<2x4x128xf32>
    %422 = arith.addf %415, %421 : vector<2x4x128xf32>
    %423 = arith.subf %407, %383 : vector<2x256xf32>
    %424 = vector.broadcast %373 : vector<2x1xf32> to vector<2x256xf32>
    %425 = arith.mulf %424, %423 : vector<2x256xf32>
    %426 = arith.addf %383, %425 : vector<2x256xf32>
    %427 = arith.subf %422, %384 : vector<2x4x128xf32>
    %428 = vector.broadcast %379 : vector<2x4x1xf32> to vector<2x4x128xf32>
    %429 = arith.mulf %428, %427 : vector<2x4x128xf32>
    %430 = arith.addf %384, %429 : vector<2x4x128xf32>
    %c0_200 = arith.constant 0 : index
    %c0_201 = arith.constant 0 : index
    %431 = vector.load %arg10[%c0_200, %c0_201] : memref<2x256xf32, #tpu.memory_space<vmem>>, vector<2x256xf32>
    tpu.vector_store %arg10[%c0_200, %c0_201], %426 {strides = array<i32>} : memref<2x256xf32, #tpu.memory_space<vmem>>, vector<2x256xf32>,
    %c0_202 = arith.constant 0 : index
    %c0_203 = arith.constant 0 : index
    %c0_204 = arith.constant 0 : index
    %432 = vector.load %arg11[%c0_202, %c0_203, %c0_204] : memref<2x4x128xf32, #tpu.memory_space<vmem>>, vector<2x4x128xf32>
    tpu.vector_store %arg11[%c0_202, %c0_203, %c0_204], %430 {strides = array<i32>} : memref<2x4x128xf32, #tpu.memory_space<vmem>>, vector<2x4x128xf32>,
    %433 = arith.index_cast %c5_i32 : i32 to index
    %c0_205 = arith.constant 0 : index
    %c0_206 = arith.constant 0 : index
    %434 = vector.load %arg8[%433, %c0_205, %c0_206] : memref<8x2x256xf32, #tpu.memory_space<vmem>>, vector<1x2x256xf32>
    %435 = vector.shape_cast %434 : vector<1x2x256xf32> to vector<2x256xf32>
    %436 = vector.shape_cast %426 : vector<2x256xf32> to vector<1x2x256xf32>
    tpu.vector_store %arg8[%433, %c0_205, %c0_206], %436 {strides = array<i32>} : memref<8x2x256xf32, #tpu.memory_space<vmem>>, vector<1x2x256xf32>,
    %437 = arith.index_cast %c5_i32 : i32 to index
    %c0_207 = arith.constant 0 : index
    %c0_208 = arith.constant 0 : index
    %c0_209 = arith.constant 0 : index
    %438 = vector.load %arg9[%437, %c0_207, %c0_208, %c0_209] : memref<8x2x4x128xf32, #tpu.memory_space<vmem>>, vector<1x2x4x128xf32>
    %439 = vector.shape_cast %438 : vector<1x2x4x128xf32> to vector<2x4x128xf32>
    %440 = vector.shape_cast %430 : vector<2x4x128xf32> to vector<1x2x4x128xf32>
    tpu.vector_store %arg9[%437, %c0_207, %c0_208, %c0_209], %440 {strides = array<i32>} : memref<8x2x4x128xf32, #tpu.memory_space<vmem>>, vector<1x2x4x128xf32>,
    %c6_i32 = arith.constant 6 : i32
    %441 = arith.index_cast %c6_i32 : i32 to index
    %c0_210 = arith.constant 0 : index
    %c0_211 = arith.constant 0 : index
    %442 = vector.load %arg2[%441, %c0_210, %c0_211] : memref<8x2x256xf32, #tpu.memory_space<vmem>>, vector<1x2x256xf32>
    %443 = vector.shape_cast %442 : vector<1x2x256xf32> to vector<2x256xf32>
    %444 = arith.index_cast %c6_i32 : i32 to index
    %c0_212 = arith.constant 0 : index
    %c0_213 = arith.constant 0 : index
    %445 = vector.load %arg3[%444, %c0_212, %c0_213] : memref<8x2x1xf32, #tpu.memory_space<vmem>>, vector<1x2x1xf32>
    %446 = vector.shape_cast %445 : vector<1x2x1xf32> to vector<2x1xf32>
    %447 = arith.index_cast %c6_i32 : i32 to index
    %c0_214 = arith.constant 0 : index
    %c0_215 = arith.constant 0 : index
    %c0_216 = arith.constant 0 : index
    %448 = vector.load %arg4[%447, %c0_214, %c0_215, %c0_216] : memref<8x2x4x2xf32, #tpu.memory_space<vmem>>, vector<1x2x4x2xf32>
    %449 = vector.shape_cast %448 : vector<1x2x4x2xf32> to vector<2x4x2xf32>
    %450 = arith.index_cast %c6_i32 : i32 to index
    %c0_217 = arith.constant 0 : index
    %c0_218 = arith.constant 0 : index
    %c0_219 = arith.constant 0 : index
    %451 = vector.load %arg5[%450, %c0_217, %c0_218, %c0_219] : memref<8x2x4x1xf32, #tpu.memory_space<vmem>>, vector<1x2x4x1xf32>
    %452 = vector.shape_cast %451 : vector<1x2x4x1xf32> to vector<2x4x1xf32>
    %453 = arith.index_cast %c6_i32 : i32 to index
    %c0_220 = arith.constant 0 : index
    %c0_221 = arith.constant 0 : index
    %c0_222 = arith.constant 0 : index
    %454 = vector.load %arg6[%453, %c0_220, %c0_221, %c0_222] : memref<8x2x4x2xf32, #tpu.memory_space<vmem>>, vector<1x2x4x2xf32>
    %455 = vector.shape_cast %454 : vector<1x2x4x2xf32> to vector<2x4x2xf32>
    %c0_223 = arith.constant 0 : index
    %c0_224 = arith.constant 0 : index
    %456 = vector.load %arg10[%c0_223, %c0_224] : memref<2x256xf32, #tpu.memory_space<vmem>>, vector<2x256xf32>
    %c0_225 = arith.constant 0 : index
    %c0_226 = arith.constant 0 : index
    %c0_227 = arith.constant 0 : index
    %457 = vector.load %arg11[%c0_225, %c0_226, %c0_227] : memref<2x4x128xf32, #tpu.memory_space<vmem>>, vector<2x4x128xf32>
    %458 = vector.extract_strided_slice %449 {offsets = [0, 0, 0], sizes = [2, 4, 1], strides = [1, 1, 1]} : vector<2x4x2xf32> to vector<2x4x1xf32>
    %459 = vector.broadcast %458 : vector<2x4x1xf32> to vector<2x4x128xf32>
    %460 = arith.mulf %459, %457 : vector<2x4x128xf32>
    %cst_228 = arith.constant dense<0.000000e+00> : vector<2x128xf32>
    %461 = vector.multi_reduction <add>, %460, %cst_228 [1] : vector<2x4x128xf32> to vector<2x128xf32>
    %462 = vector.extract_strided_slice %449 {offsets = [0, 0, 1], sizes = [2, 4, 1], strides = [1, 1, 1]} : vector<2x4x2xf32> to vector<2x4x1xf32>
    %463 = vector.broadcast %462 : vector<2x4x1xf32> to vector<2x4x128xf32>
    %464 = arith.mulf %463, %457 : vector<2x4x128xf32>
    %cst_229 = arith.constant dense<0.000000e+00> : vector<2x128xf32>
    %465 = vector.multi_reduction <add>, %464, %cst_229 [1] : vector<2x4x128xf32> to vector<2x128xf32>
    %466 = tpu.concatenate %461, %465 in 1 : vector<2x128xf32>, vector<2x128xf32> -> vector<2x256xf32>
    %c0_230 = arith.constant 0 : index
    %c0_231 = arith.constant 0 : index
    %467 = vector.load %arg12[%c0_230, %c0_231] : memref<256x256xf32, #tpu.memory_space<vmem>>, vector<256x256xf32>
    %cst_232 = arith.constant dense<0.000000e+00> : vector<2x256xf32>
    %468 = tpu.matmul %466, %467, %cst_232 {dimension_numbers = #tpu.dot_dimension_numbers<[1], [0], [0], [1], [0, 0, 1, 1], [], []>} : vector<2x256xf32>, vector<256x256xf32>, vector<2x256xf32> -> vector<2x256xf32>
    %469 = arith.addf %443, %468 : vector<2x256xf32>
    %470 = arith.negf %469 : vector<2x256xf32>
    %471 = math.exp %470 : vector<2x256xf32>
    %cst_233 = arith.constant 1.000000e+00 : f32
    %472 = vector.broadcast %cst_233 : f32 to vector<2x256xf32>
    %473 = arith.addf %472, %471 : vector<2x256xf32>
    %474 = arith.divf %472, %473 : vector<2x256xf32>
    %475 = arith.mulf %474, %468 : vector<2x256xf32>
    %476 = arith.addf %443, %475 : vector<2x256xf32>
    %477 = math.tanh %476 : vector<2x256xf32>
    %478 = arith.subf %477, %466 : vector<2x256xf32>
    %479 = arith.mulf %474, %478 : vector<2x256xf32>
    %480 = arith.addf %466, %479 : vector<2x256xf32>
    %cst_234 = arith.constant 0.000000e+00 : f32
    %481 = vector.broadcast %cst_234 : f32 to vector<2x4x128xf32>
    %482 = vector.extract_strided_slice %480 {offsets = [0, 0], sizes = [2, 128], strides = [1, 1]} : vector<2x256xf32> to vector<2x128xf32>
    %483 = vector.extract_strided_slice %455 {offsets = [0, 0, 0], sizes = [2, 4, 1], strides = [1, 1, 1]} : vector<2x4x2xf32> to vector<2x4x1xf32>
    %484 = vector.shape_cast %482 : vector<2x128xf32> to vector<2x1x128xf32>
    %485 = vector.broadcast %483 : vector<2x4x1xf32> to vector<2x4x128xf32>
    %486 = vector.broadcast %484 : vector<2x1x128xf32> to vector<2x4x128xf32>
    %487 = arith.mulf %485, %486 : vector<2x4x128xf32>
    %488 = arith.addf %481, %487 : vector<2x4x128xf32>
    %489 = vector.extract_strided_slice %480 {offsets = [0, 128], sizes = [2, 128], strides = [1, 1]} : vector<2x256xf32> to vector<2x128xf32>
    %490 = vector.extract_strided_slice %455 {offsets = [0, 0, 1], sizes = [2, 4, 1], strides = [1, 1, 1]} : vector<2x4x2xf32> to vector<2x4x1xf32>
    %491 = vector.shape_cast %489 : vector<2x128xf32> to vector<2x1x128xf32>
    %492 = vector.broadcast %490 : vector<2x4x1xf32> to vector<2x4x128xf32>
    %493 = vector.broadcast %491 : vector<2x1x128xf32> to vector<2x4x128xf32>
    %494 = arith.mulf %492, %493 : vector<2x4x128xf32>
    %495 = arith.addf %488, %494 : vector<2x4x128xf32>
    %496 = arith.subf %480, %456 : vector<2x256xf32>
    %497 = vector.broadcast %446 : vector<2x1xf32> to vector<2x256xf32>
    %498 = arith.mulf %497, %496 : vector<2x256xf32>
    %499 = arith.addf %456, %498 : vector<2x256xf32>
    %500 = arith.subf %495, %457 : vector<2x4x128xf32>
    %501 = vector.broadcast %452 : vector<2x4x1xf32> to vector<2x4x128xf32>
    %502 = arith.mulf %501, %500 : vector<2x4x128xf32>
    %503 = arith.addf %457, %502 : vector<2x4x128xf32>
    %c0_235 = arith.constant 0 : index
    %c0_236 = arith.constant 0 : index
    %504 = vector.load %arg10[%c0_235, %c0_236] : memref<2x256xf32, #tpu.memory_space<vmem>>, vector<2x256xf32>
    tpu.vector_store %arg10[%c0_235, %c0_236], %499 {strides = array<i32>} : memref<2x256xf32, #tpu.memory_space<vmem>>, vector<2x256xf32>,
    %c0_237 = arith.constant 0 : index
    %c0_238 = arith.constant 0 : index
    %c0_239 = arith.constant 0 : index
    %505 = vector.load %arg11[%c0_237, %c0_238, %c0_239] : memref<2x4x128xf32, #tpu.memory_space<vmem>>, vector<2x4x128xf32>
    tpu.vector_store %arg11[%c0_237, %c0_238, %c0_239], %503 {strides = array<i32>} : memref<2x4x128xf32, #tpu.memory_space<vmem>>, vector<2x4x128xf32>,
    %506 = arith.index_cast %c6_i32 : i32 to index
    %c0_240 = arith.constant 0 : index
    %c0_241 = arith.constant 0 : index
    %507 = vector.load %arg8[%506, %c0_240, %c0_241] : memref<8x2x256xf32, #tpu.memory_space<vmem>>, vector<1x2x256xf32>
    %508 = vector.shape_cast %507 : vector<1x2x256xf32> to vector<2x256xf32>
    %509 = vector.shape_cast %499 : vector<2x256xf32> to vector<1x2x256xf32>
    tpu.vector_store %arg8[%506, %c0_240, %c0_241], %509 {strides = array<i32>} : memref<8x2x256xf32, #tpu.memory_space<vmem>>, vector<1x2x256xf32>,
    %510 = arith.index_cast %c6_i32 : i32 to index
    %c0_242 = arith.constant 0 : index
    %c0_243 = arith.constant 0 : index
    %c0_244 = arith.constant 0 : index
    %511 = vector.load %arg9[%510, %c0_242, %c0_243, %c0_244] : memref<8x2x4x128xf32, #tpu.memory_space<vmem>>, vector<1x2x4x128xf32>
    %512 = vector.shape_cast %511 : vector<1x2x4x128xf32> to vector<2x4x128xf32>
    %513 = vector.shape_cast %503 : vector<2x4x128xf32> to vector<1x2x4x128xf32>
    tpu.vector_store %arg9[%510, %c0_242, %c0_243, %c0_244], %513 {strides = array<i32>} : memref<8x2x4x128xf32, #tpu.memory_space<vmem>>, vector<1x2x4x128xf32>,
    %c7_i32 = arith.constant 7 : i32
    %514 = arith.index_cast %c7_i32 : i32 to index
    %c0_245 = arith.constant 0 : index
    %c0_246 = arith.constant 0 : index
    %515 = vector.load %arg2[%514, %c0_245, %c0_246] : memref<8x2x256xf32, #tpu.memory_space<vmem>>, vector<1x2x256xf32>
    %516 = vector.shape_cast %515 : vector<1x2x256xf32> to vector<2x256xf32>
    %517 = arith.index_cast %c7_i32 : i32 to index
    %c0_247 = arith.constant 0 : index
    %c0_248 = arith.constant 0 : index
    %518 = vector.load %arg3[%517, %c0_247, %c0_248] : memref<8x2x1xf32, #tpu.memory_space<vmem>>, vector<1x2x1xf32>
    %519 = vector.shape_cast %518 : vector<1x2x1xf32> to vector<2x1xf32>
    %520 = arith.index_cast %c7_i32 : i32 to index
    %c0_249 = arith.constant 0 : index
    %c0_250 = arith.constant 0 : index
    %c0_251 = arith.constant 0 : index
    %521 = vector.load %arg4[%520, %c0_249, %c0_250, %c0_251] : memref<8x2x4x2xf32, #tpu.memory_space<vmem>>, vector<1x2x4x2xf32>
    %522 = vector.shape_cast %521 : vector<1x2x4x2xf32> to vector<2x4x2xf32>
    %523 = arith.index_cast %c7_i32 : i32 to index
    %c0_252 = arith.constant 0 : index
    %c0_253 = arith.constant 0 : index
    %c0_254 = arith.constant 0 : index
    %524 = vector.load %arg5[%523, %c0_252, %c0_253, %c0_254] : memref<8x2x4x1xf32, #tpu.memory_space<vmem>>, vector<1x2x4x1xf32>
    %525 = vector.shape_cast %524 : vector<1x2x4x1xf32> to vector<2x4x1xf32>
    %526 = arith.index_cast %c7_i32 : i32 to index
    %c0_255 = arith.constant 0 : index
    %c0_256 = arith.constant 0 : index
    %c0_257 = arith.constant 0 : index
    %527 = vector.load %arg6[%526, %c0_255, %c0_256, %c0_257] : memref<8x2x4x2xf32, #tpu.memory_space<vmem>>, vector<1x2x4x2xf32>
    %528 = vector.shape_cast %527 : vector<1x2x4x2xf32> to vector<2x4x2xf32>
    %c0_258 = arith.constant 0 : index
    %c0_259 = arith.constant 0 : index
    %529 = vector.load %arg10[%c0_258, %c0_259] : memref<2x256xf32, #tpu.memory_space<vmem>>, vector<2x256xf32>
    %c0_260 = arith.constant 0 : index
    %c0_261 = arith.constant 0 : index
    %c0_262 = arith.constant 0 : index
    %530 = vector.load %arg11[%c0_260, %c0_261, %c0_262] : memref<2x4x128xf32, #tpu.memory_space<vmem>>, vector<2x4x128xf32>
    %531 = vector.extract_strided_slice %522 {offsets = [0, 0, 0], sizes = [2, 4, 1], strides = [1, 1, 1]} : vector<2x4x2xf32> to vector<2x4x1xf32>
    %532 = vector.broadcast %531 : vector<2x4x1xf32> to vector<2x4x128xf32>
    %533 = arith.mulf %532, %530 : vector<2x4x128xf32>
    %cst_263 = arith.constant dense<0.000000e+00> : vector<2x128xf32>
    %534 = vector.multi_reduction <add>, %533, %cst_263 [1] : vector<2x4x128xf32> to vector<2x128xf32>
    %535 = vector.extract_strided_slice %522 {offsets = [0, 0, 1], sizes = [2, 4, 1], strides = [1, 1, 1]} : vector<2x4x2xf32> to vector<2x4x1xf32>
    %536 = vector.broadcast %535 : vector<2x4x1xf32> to vector<2x4x128xf32>
    %537 = arith.mulf %536, %530 : vector<2x4x128xf32>
    %cst_264 = arith.constant dense<0.000000e+00> : vector<2x128xf32>
    %538 = vector.multi_reduction <add>, %537, %cst_264 [1] : vector<2x4x128xf32> to vector<2x128xf32>
    %539 = tpu.concatenate %534, %538 in 1 : vector<2x128xf32>, vector<2x128xf32> -> vector<2x256xf32>
    %c0_265 = arith.constant 0 : index
    %c0_266 = arith.constant 0 : index
    %540 = vector.load %arg12[%c0_265, %c0_266] : memref<256x256xf32, #tpu.memory_space<vmem>>, vector<256x256xf32>
    %cst_267 = arith.constant dense<0.000000e+00> : vector<2x256xf32>
    %541 = tpu.matmul %539, %540, %cst_267 {dimension_numbers = #tpu.dot_dimension_numbers<[1], [0], [0], [1], [0, 0, 1, 1], [], []>} : vector<2x256xf32>, vector<256x256xf32>, vector<2x256xf32> -> vector<2x256xf32>
    %542 = arith.addf %516, %541 : vector<2x256xf32>
    %543 = arith.negf %542 : vector<2x256xf32>
    %544 = math.exp %543 : vector<2x256xf32>
    %cst_268 = arith.constant 1.000000e+00 : f32
    %545 = vector.broadcast %cst_268 : f32 to vector<2x256xf32>
    %546 = arith.addf %545, %544 : vector<2x256xf32>
    %547 = arith.divf %545, %546 : vector<2x256xf32>
    %548 = arith.mulf %547, %541 : vector<2x256xf32>
    %549 = arith.addf %516, %548 : vector<2x256xf32>
    %550 = math.tanh %549 : vector<2x256xf32>
    %551 = arith.subf %550, %539 : vector<2x256xf32>
    %552 = arith.mulf %547, %551 : vector<2x256xf32>
    %553 = arith.addf %539, %552 : vector<2x256xf32>
    %cst_269 = arith.constant 0.000000e+00 : f32
    %554 = vector.broadcast %cst_269 : f32 to vector<2x4x128xf32>
    %555 = vector.extract_strided_slice %553 {offsets = [0, 0], sizes = [2, 128], strides = [1, 1]} : vector<2x256xf32> to vector<2x128xf32>
    %556 = vector.extract_strided_slice %528 {offsets = [0, 0, 0], sizes = [2, 4, 1], strides = [1, 1, 1]} : vector<2x4x2xf32> to vector<2x4x1xf32>
    %557 = vector.shape_cast %555 : vector<2x128xf32> to vector<2x1x128xf32>
    %558 = vector.broadcast %556 : vector<2x4x1xf32> to vector<2x4x128xf32>
    %559 = vector.broadcast %557 : vector<2x1x128xf32> to vector<2x4x128xf32>
    %560 = arith.mulf %558, %559 : vector<2x4x128xf32>
    %561 = arith.addf %554, %560 : vector<2x4x128xf32>
    %562 = vector.extract_strided_slice %553 {offsets = [0, 128], sizes = [2, 128], strides = [1, 1]} : vector<2x256xf32> to vector<2x128xf32>
    %563 = vector.extract_strided_slice %528 {offsets = [0, 0, 1], sizes = [2, 4, 1], strides = [1, 1, 1]} : vector<2x4x2xf32> to vector<2x4x1xf32>
    %564 = vector.shape_cast %562 : vector<2x128xf32> to vector<2x1x128xf32>
    %565 = vector.broadcast %563 : vector<2x4x1xf32> to vector<2x4x128xf32>
    %566 = vector.broadcast %564 : vector<2x1x128xf32> to vector<2x4x128xf32>
    %567 = arith.mulf %565, %566 : vector<2x4x128xf32>
    %568 = arith.addf %561, %567 : vector<2x4x128xf32>
    %569 = arith.subf %553, %529 : vector<2x256xf32>
    %570 = vector.broadcast %519 : vector<2x1xf32> to vector<2x256xf32>
    %571 = arith.mulf %570, %569 : vector<2x256xf32>
    %572 = arith.addf %529, %571 : vector<2x256xf32>
    %573 = arith.subf %568, %530 : vector<2x4x128xf32>
    %574 = vector.broadcast %525 : vector<2x4x1xf32> to vector<2x4x128xf32>
    %575 = arith.mulf %574, %573 : vector<2x4x128xf32>
    %576 = arith.addf %530, %575 : vector<2x4x128xf32>
    %c0_270 = arith.constant 0 : index
    %c0_271 = arith.constant 0 : index
    %577 = vector.load %arg10[%c0_270, %c0_271] : memref<2x256xf32, #tpu.memory_space<vmem>>, vector<2x256xf32>
    tpu.vector_store %arg10[%c0_270, %c0_271], %572 {strides = array<i32>} : memref<2x256xf32, #tpu.memory_space<vmem>>, vector<2x256xf32>,
    %c0_272 = arith.constant 0 : index
    %c0_273 = arith.constant 0 : index
    %c0_274 = arith.constant 0 : index
    %578 = vector.load %arg11[%c0_272, %c0_273, %c0_274] : memref<2x4x128xf32, #tpu.memory_space<vmem>>, vector<2x4x128xf32>
    tpu.vector_store %arg11[%c0_272, %c0_273, %c0_274], %576 {strides = array<i32>} : memref<2x4x128xf32, #tpu.memory_space<vmem>>, vector<2x4x128xf32>,
    %579 = arith.index_cast %c7_i32 : i32 to index
    %c0_275 = arith.constant 0 : index
    %c0_276 = arith.constant 0 : index
    %580 = vector.load %arg8[%579, %c0_275, %c0_276] : memref<8x2x256xf32, #tpu.memory_space<vmem>>, vector<1x2x256xf32>
    %581 = vector.shape_cast %580 : vector<1x2x256xf32> to vector<2x256xf32>
    %582 = vector.shape_cast %572 : vector<2x256xf32> to vector<1x2x256xf32>
    tpu.vector_store %arg8[%579, %c0_275, %c0_276], %582 {strides = array<i32>} : memref<8x2x256xf32, #tpu.memory_space<vmem>>, vector<1x2x256xf32>,
    %583 = arith.index_cast %c7_i32 : i32 to index
    %c0_277 = arith.constant 0 : index
    %c0_278 = arith.constant 0 : index
    %c0_279 = arith.constant 0 : index
    %584 = vector.load %arg9[%583, %c0_277, %c0_278, %c0_279] : memref<8x2x4x128xf32, #tpu.memory_space<vmem>>, vector<1x2x4x128xf32>
    %585 = vector.shape_cast %584 : vector<1x2x4x128xf32> to vector<2x4x128xf32>
    %586 = vector.shape_cast %576 : vector<2x4x128xf32> to vector<1x2x4x128xf32>
    tpu.vector_store %arg9[%583, %c0_277, %c0_278, %c0_279], %586 {strides = array<i32>} : memref<8x2x4x128xf32, #tpu.memory_space<vmem>>, vector<1x2x4x128xf32>,
    %c8_i32 = arith.constant 8 : i32
    return
  }
  func.func @transform_0(%arg0: i32, %arg1: i32) -> (i32, i32, i32) {
    %c0_i32 = arith.constant 0 : i32
    %c0_i32_0 = arith.constant 0 : i32
    return %arg1, %arg0, %c0_i32 : i32, i32, i32
  }
  func.func @transform_1(%arg0: i32, %arg1: i32) -> (i32, i32, i32) {
    %c0_i32 = arith.constant 0 : i32
    %c0_i32_0 = arith.constant 0 : i32
    return %arg1, %arg0, %c0_i32 : i32, i32, i32
  }
  func.func @transform_2(%arg0: i32, %arg1: i32) -> (i32, i32, i32, i32) {
    %c0_i32 = arith.constant 0 : i32
    %c0_i32_0 = arith.constant 0 : i32
    %c0_i32_1 = arith.constant 0 : i32
    return %arg1, %arg0, %c0_i32, %c0_i32_0 : i32, i32, i32, i32
  }
  func.func @transform_3(%arg0: i32, %arg1: i32) -> (i32, i32, i32, i32) {
    %c0_i32 = arith.constant 0 : i32
    %c0_i32_0 = arith.constant 0 : i32
    %c0_i32_1 = arith.constant 0 : i32
    return %arg1, %arg0, %c0_i32, %c0_i32_0 : i32, i32, i32, i32
  }
  func.func @transform_4(%arg0: i32, %arg1: i32) -> (i32, i32, i32, i32) {
    %c0_i32 = arith.constant 0 : i32
    %c0_i32_0 = arith.constant 0 : i32
    %c0_i32_1 = arith.constant 0 : i32
    return %arg1, %arg0, %c0_i32, %c0_i32_0 : i32, i32, i32, i32
  }
  func.func @transform_6(%arg0: i32, %arg1: i32) -> (i32, i32, i32) {
    %c0_i32 = arith.constant 0 : i32
    %c0_i32_0 = arith.constant 0 : i32
    return %arg1, %arg0, %c0_i32 : i32, i32, i32
  }
  func.func @transform_7(%arg0: i32, %arg1: i32) -> (i32, i32, i32, i32) {
    %c0_i32 = arith.constant 0 : i32
    %c0_i32_0 = arith.constant 0 : i32
    %c0_i32_1 = arith.constant 0 : i32
    return %arg1, %arg0, %c0_i32, %c0_i32_0 : i32, i32, i32, i32
  }
}

</mosaic_0001>

<bundles_post_ra>
// kernel: tpu_custom_call.1
= control target key start
LH: loop header
LB: loop body
LE: loop exit
PB: predicated region body
PF: predicated region fallthrough
CT: control target
= control target key end

     0   :  { %13 = vsyncpa [#allocation7], 0  ;;  %s4876_s0 = inlined_call_operand.vmem [shape: f32[8,2,256], index: 0, kind: input, shape index: {}]   ;;  %s4877_s1 = inlined_call_operand.vmem [shape: f32[8,2,1], index: 1, kind: input, shape index: {}]   ;;  %s4878_s2 = inlined_call_operand.vmem [shape: f32[8,2,4,2], index: 2, kind: input, shape index: {}]   ;;  %s4879_s3 = inlined_call_operand.vmem [shape: f32[8,2,4,1], index: 3, kind: input, shape index: {}]   ;;  %s4880_s4 = inlined_call_operand.vmem [shape: f32[8,2,4,2], index: 4, kind: input, shape index: {}]   ;;  %s4881_s5 = inlined_call_operand.hbm [shape: f32[256,256], index: 5, kind: input, shape index: {}]   ;;  %s4882_s6 = inlined_call_operand.hbm [shape: f32[8,2,256], index: 6, kind: output, shape index: {0}]   ;;  %s4883_s7 = inlined_call_operand.hbm [shape: f32[8,2,4,128], index: 7, kind: output, shape index: {1}]  }
   0x1   :  { %14 = vsyncpa [#allocation9], 0  ;;  %s39_s26 = sshll.u32 %s4881_s5, 4  ;;  %v3084_v0 = vmov 0.0   ;;  %s3085_s27 = smov [#allocation4]   ;;  %s40_s26 = int_to_ptr.hbm [resolvable:$true] %s39_s26 }
   0x2   :  { %29 = vst [vmem:[#allocation2] sm:$0xf] %v3084_v0  ;;  %s41_s28 = sshll.u32 %s3085_s27, 4  ;;  %s42_s28 = int_to_ptr.vmem [resolvable:$true] %s41_s28 }
   0x3   :  { %30 = vst [vmem:[#allocation3] sm:$0xf] %v3084_v0  ;;  %44 = dma.hbm_to_vmem [thread:$0]  %s40_s26, 8192, %s42_s28, [#allocation5] }
   0x4   :  { %31 = vst [vmem:[#allocation3 + $0x4] sm:$0xf] %v3084_v0 }
   0x5   :  { %3078 = dma.done.wait [#allocation5], 8192 }
   0x6   :  { %3079 = vsyncadd [#allocation5], 4294959104  ;;  %v4886_v1 = vmov 1   ;;  %v4884_v2 = vmov 0   ;;  %v51_v3 = vld [vmem:[%s4878_s2] sm:$0xf] }
   0x7   :  { %2897 = vset.pattern.permute.xlu1 %v4886_v1  ;;  %2896 = vset.pattern.permute.xlu0 %v4884_v2  ;;  %v3141_v4 = vld [vmem:[#allocation4 + $0xf0] sm:$0xff]  ;;  %v3145_v6 = vld [vmem:[#allocation4 + $0xf8] sm:$0xff]  ;;  %v3151_v8 = vld [vmem:[#allocation4 + $0xe0] sm:$0xff]  ;;  %vm72_vm0 = vcmask 1043456   ;;  %vm113_vm1 = vcmask 1041409   ;;  %vm267_vm2 = vcmask 1041408  }
   0x8   :  { %2898 = vset.pattern.permute.xlu2 %v4884_v2  ;;  %88 = vperm.xlu1 %2897, %v51_v3   ;;  %v3143_v5 = vld [vmem:[#allocation4 + $0x1f0] sm:$0xff]  ;;  %v3149_v7 = vld [vmem:[#allocation4 + $0x1f8] sm:$0xff]  ;;  %v3153_v9 = vld [vmem:[#allocation4 + $0x1e0] sm:$0xff]  ;;  %s2787_s12 = sshll.u32 %s4882_s6, 4  ;;  %s3089_s13 = smov [#allocation8]   ;;  %s2788_s12 = int_to_ptr.hbm [resolvable:$true] %s2787_s12 }
   0x9   :  { %62 = vperm.xlu0 %2896, %v51_v3   ;;  %184 = vmatpush.msra.mxu0 %v3141_v4  ;;  %v3157_v10 = vld [vmem:[#allocation4 + $0xe8] sm:$0xff]  ;;  %v3161_v12 = vld [vmem:[#allocation4 + $0xd0] sm:$0xff]  ;;  %v3167_v14 = vld [vmem:[#allocation4 + $0xd8] sm:$0xff]  ;;  %s2798_s14 = sshll.u32 %s3089_s13, 4  ;;  %s2800_s17 = sshll.u32 %s4883_s7, 4  ;;  %s2799_s14 = int_to_ptr.vmem [resolvable:$true] %s2798_s14  ;;  %s2801_s17 = int_to_ptr.hbm [resolvable:$true] %s2800_s17 }
   0xa   :  { %204 = vmatpush.msra.mxu1 %v3143_v5  ;;  %224 = vmatpush.msra.mxu2 %v3145_v6  ;;  %v3159_v11 = vld [vmem:[#allocation4 + $0x1e8] sm:$0xff]  ;;  %v3165_v13 = vld [vmem:[#allocation4 + $0x1d0] sm:$0xff]  ;;  %v3169_v15 = vld [vmem:[#allocation4 + $0x1d8] sm:$0xff]  ;;  %s3090_s6 = smov 64   ;;  %s3091_s18 = smov 4  }
   0xb   :  { %244 = vmatpush.msra.mxu3 %v3149_v7  ;;  %185 = vmatpush.msra.mxu0 %v3151_v8  ;;  %v3173_v16 = vld [vmem:[#allocation4 + $0xc0] sm:$0xff]  ;;  %v52_v18 = vld [vmem:[%s4878_s2 + $0x4] sm:$0xf]  ;;  %v3184_v19 = vld [vmem:[#allocation4 + $0xc8] sm:$0xff] }
   0xc   :  { %205 = vmatpush.msra.mxu1 %v3153_v9  ;;  %225 = vmatpush.msra.mxu2 %v3157_v10  ;;  %v3175_v17 = vld [vmem:[#allocation4 + $0x1c0] sm:$0xff]  ;;  %v3186_v20 = vld [vmem:[#allocation4 + $0x1c8] sm:$0xff]  ;;  %v3195_v21 = vld [vmem:[%s4880_s4 + $0x4] sm:$0xf] }
   0xd   :  { %245 = vmatpush.msra.mxu3 %v3159_v11  ;;  %186 = vmatpush.msra.mxu0 %v3161_v12  ;;  %v3200_v22 = vld [vmem:[#allocation4 + $0xb0] sm:$0xff]  ;;  %v3204_v24 = vld [vmem:[#allocation4 + $0xb8] sm:$0xff]  ;;  %v3212_v26 = vld [vmem:[#allocation4 + $0xa0] sm:$0xff] }
   0xe   :  { %206 = vmatpush.msra.mxu1 %v3165_v13  ;;  %226 = vmatpush.msra.mxu2 %v3167_v14  ;;  %v3202_v23 = vld [vmem:[#allocation4 + $0x1b0] sm:$0xff]  ;;  %v3208_v25 = vld [vmem:[#allocation4 + $0x1b8] sm:$0xff]  ;;  %v3214_v27 = vld [vmem:[#allocation4 + $0x1a0] sm:$0xff] }
   0xf   :  { %246 = vmatpush.msra.mxu3 %v3169_v15  ;;  %187 = vmatpush.msra.mxu0 %v3173_v16  ;;  %v3216_v28 = vld [vmem:[#allocation4 + $0xa8] sm:$0xff]  ;;  %v3224_v30 = vld [vmem:[#allocation4 + $0x90] sm:$0xff]  ;;  %v3228_v32 = vld [vmem:[#allocation4 + $0x98] sm:$0xff] }
  0x10   :  { %207 = vmatpush.msra.mxu1 %v3175_v17  ;;  %92 = vperm.xlu1 %2897, %v52_v18   ;;  %v3220_v29 = vld [vmem:[#allocation4 + $0x1a8] sm:$0xff]  ;;  %v3226_v31 = vld [vmem:[#allocation4 + $0x190] sm:$0xff]  ;;  %v3232_v33 = vld [vmem:[#allocation4 + $0x198] sm:$0xff] }
  0x11   :  { %67 = vperm.xlu0 %2896, %v52_v18   ;;  %227 = vmatpush.msra.mxu2 %v3184_v19  ;;  %v3236_v34 = vld [vmem:[#allocation4 + $0x80] sm:$0xff]  ;;  %v3240_v36 = vld [vmem:[#allocation4 + $0x88] sm:$0xff]  ;;  %v3248_v38 = vld [vmem:[#allocation4 + $0x70] sm:$0xff] }
  0x12   :  { %247 = vmatpush.msra.mxu3 %v3186_v20  ;;  %188 = vmatpush.msra.mxu0 %v3200_v22  ;;  %v3238_v35 = vld [vmem:[#allocation4 + $0x180] sm:$0xff]  ;;  %v3244_v37 = vld [vmem:[#allocation4 + $0x188] sm:$0xff]  ;;  %v3250_v39 = vld [vmem:[#allocation4 + $0x170] sm:$0xff] }
  0x13   :  { %208 = vmatpush.msra.mxu1 %v3202_v23  ;;  %228 = vmatpush.msra.mxu2 %v3204_v24  ;;  %v3252_v40 = vld [vmem:[#allocation4 + $0x78] sm:$0xff]  ;;  %v3260_v42 = vld [vmem:[#allocation4 + $0x60] sm:$0xff]  ;;  %v3264_v44 = vld [vmem:[#allocation4 + $0x68] sm:$0xff] }
  0x14   :  { %248 = vmatpush.msra.mxu3 %v3208_v25  ;;  %189 = vmatpush.msra.mxu0 %v3212_v26  ;;  %v3256_v41 = vld [vmem:[#allocation4 + $0x178] sm:$0xff]  ;;  %v3262_v43 = vld [vmem:[#allocation4 + $0x160] sm:$0xff]  ;;  %v3268_v45 = vld [vmem:[#allocation4 + $0x168] sm:$0xff] }
  0x15   :  { %209 = vmatpush.msra.mxu1 %v3214_v27  ;;  %229 = vmatpush.msra.mxu2 %v3216_v28  ;;  %v3272_v46 = vld [vmem:[#allocation4 + $0x50] sm:$0xff]  ;;  %v3276_v48 = vld [vmem:[#allocation4 + $0x58] sm:$0xff]  ;;  %v3284_v50 = vld [vmem:[#allocation4 + $0x40] sm:$0xff] }
  0x16   :  { %249 = vmatpush.msra.mxu3 %v3220_v29  ;;  %190 = vmatpush.msra.mxu0 %v3224_v30  ;;  %v3274_v47 = vld [vmem:[#allocation4 + $0x150] sm:$0xff]  ;;  %v3280_v49 = vld [vmem:[#allocation4 + $0x158] sm:$0xff]  ;;  %v3286_v51 = vld [vmem:[#allocation4 + $0x140] sm:$0xff] }
  0x17   :  { %210 = vmatpush.msra.mxu1 %v3226_v31  ;;  %230 = vmatpush.msra.mxu2 %v3228_v32  ;;  %v3288_v52 = vld [vmem:[#allocation4 + $0x48] sm:$0xff]  ;;  %v3296_v54 = vld [vmem:[#allocation4 + $0x30] sm:$0xff]  ;;  %v3300_v56 = vld [vmem:[#allocation4 + $0x38] sm:$0xff] }
  0x18   :  { %333 = vperm.xlu1 %2897, %v3195_v21   ;;  %250 = vmatpush.msra.mxu3 %v3232_v33  ;;  %v3292_v53 = vld [vmem:[#allocation4 + $0x148] sm:$0xff]  ;;  %v3298_v55 = vld [vmem:[#allocation4 + $0x130] sm:$0xff]  ;;  %v3304_v57 = vld [vmem:[#allocation4 + $0x138] sm:$0xff] }
  0x19   :  { %2899 = vset.pattern.permute.xlu0 %v4886_v1  ;;  %191 = vmatpush.msra.mxu0 %v3236_v34  ;;  %v3308_v58 = vld [vmem:[#allocation4 + $0x20] sm:$0xff]  ;;  %v3312_v60 = vld [vmem:[#allocation4 + $0x28] sm:$0xff]  ;;  %v3320_v62 = vld [vmem:[#allocation4 + $0x10] sm:$0xff] }
  0x1a   :  { %211 = vmatpush.msra.mxu1 %v3238_v35  ;;  %231 = vmatpush.msra.mxu2 %v3240_v36  ;;  %v3310_v59 = vld [vmem:[#allocation4 + $0x120] sm:$0xff]  ;;  %v3316_v61 = vld [vmem:[#allocation4 + $0x128] sm:$0xff]  ;;  %v3322_v63 = vld [vmem:[#allocation4 + $0x110] sm:$0xff] }
  0x1b   :  { %251 = vmatpush.msra.mxu3 %v3244_v37  ;;  %192 = vmatpush.msra.mxu0 %v3248_v38  ;;  %4967 = vst [vmem:[#allocation17_spill] sm:$0xff] %v3316_v61  ;;  %v3324_v0 = vld [vmem:[#allocation4 + $0x18] sm:$0xff]  ;;  %v3330_v18 = vld [vmem:[#allocation4] sm:$0xff]  ;;  %v3336_v1 = vld [vmem:[#allocation4 + $0x8] sm:$0xff] }
  0x1c   :  { %212 = vmatpush.msra.mxu1 %v3250_v39  ;;  %232 = vmatpush.msra.mxu2 %v3252_v40  ;;  %4968 = vst [vmem:[#allocation18_spill] sm:$0xff] %v3322_v63  ;;  %v3328_v3 = vld [vmem:[#allocation4 + $0x118] sm:$0xff] }
  0x1d   :  { %252 = vmatpush.msra.mxu3 %v3256_v41  ;;  %193 = vmatpush.msra.mxu0 %v3260_v42  ;;  %4969 = vst [vmem:[#allocation19_spill] sm:$0xff] %v3328_v3 }
  0x1e   :  { %213 = vmatpush.msra.mxu1 %v3262_v43  ;;  %233 = vmatpush.msra.mxu2 %v3264_v44 }
  0x1f   :  { %253 = vmatpush.msra.mxu3 %v3268_v45  ;;  %194 = vmatpush.msra.mxu0 %v3272_v46 }
  0x20   :  { %2900 = vset.pattern.permute.xlu1 %v4884_v2  ;;  %214 = vmatpush.msra.mxu1 %v3274_v47  ;;  %v3332_v2 = vld [vmem:[#allocation4 + $0x100] sm:$0xff] }
  0x21   :  { %234 = vmatpush.msra.mxu2 %v3276_v48  ;;  %254 = vmatpush.msra.mxu3 %v3280_v49 }
  0x22   :  { %195 = vmatpush.msra.mxu0 %v3284_v50  ;;  %215 = vmatpush.msra.mxu1 %v3286_v51 }
  0x23   :  { %235 = vmatpush.msra.mxu2 %v3288_v52  ;;  %255 = vmatpush.msra.mxu3 %v3292_v53 }
  0x24   :  { %196 = vmatpush.msra.mxu0 %v3296_v54  ;;  %216 = vmatpush.msra.mxu1 %v3298_v55 }
  0x25   :  { %236 = vmatpush.msra.mxu2 %v3300_v56  ;;  %256 = vmatpush.msra.mxu3 %v3304_v57 }
  0x26   :  { %197 = vmatpush.msra.mxu0 %v3308_v58  ;;  %217 = vmatpush.msra.mxu1 %v3310_v59 }
  0x27   :  { %237 = vmatpush.msra.mxu2 %v3312_v60  ;;  %257 = vmatpush.msra.mxu3 %v3316_v61  ;;  %v3338_v61 = vld [vmem:[#allocation4 + $0x108] sm:$0xff] }
  0x28   :  { %198 = vmatpush.msra.mxu0 %v3320_v62  ;;  %218 = vmatpush.msra.mxu1 %v3322_v63  ;;  %4970 = vst [vmem:[#allocation20_spill] sm:$0xff] %v3338_v61  ;;  %v54_v63 = vld [vmem:[%s4879_s3 + $0x4] sm:$0xf] }
  0x29   :  { %238 = vmatpush.msra.mxu2 %v3324_v0  ;;  %258 = vmatpush.msra.mxu3 %v3328_v3  ;;  %v55_v3 = vld [vmem:[%s4880_s4] sm:$0xf] }
  0x2a   :  { %199 = vmatpush.msra.mxu0 %v3330_v18  ;;  %219 = vmatpush.msra.mxu1 %v3332_v2 }
  0x2b   :  { %239 = vmatpush.msra.mxu2 %v3336_v1  ;;  %259 = vmatpush.msra.mxu3 %v3338_v61  ;;  %v3355_v61 = vld [vmem:[#allocation3] sm:$0xf] }
  0x2c   :  { %525 = vmatpush.msrb.mxu0 %v3141_v4  ;;  %545 = vmatpush.msrb.mxu1 %v3143_v5 }
  0x2d   :  { %374 = vperm.xlu1 %2900, %v54_v63   ;;  %565 = vmatpush.msrb.mxu2 %v3145_v6 }
  0x2e   :  { %310 = vperm.xlu2 %2898, %v55_v3   ;;  %329 = vperm.xlu0 %2899, %v55_v3  }
  0x2f   :  { %585 = vmatpush.msrb.mxu3 %v3149_v7  ;;  %526 = vmatpush.msrb.mxu0 %v3151_v8  ;;  %v3368_v8 = vld [vmem:[%s4878_s2 + $0x8] sm:$0xf] }
  0x30   :  { %546 = vmatpush.msrb.mxu1 %v3153_v9  ;;  %566 = vmatpush.msrb.mxu2 %v3157_v10 }
  0x31   :  { %586 = vmatpush.msrb.mxu3 %v3159_v11  ;;  %527 = vmatpush.msrb.mxu0 %v3161_v12  ;;  %v4971_v11 = vmov 1  }
  0x32   :  { %547 = vmatpush.msrb.mxu1 %v3165_v13  ;;  %567 = vmatpush.msrb.mxu2 %v3167_v14  ;;  %v4972_v14 = vmov 0  }
  0x33   :  { %587 = vmatpush.msrb.mxu3 %v3169_v15  ;;  %528 = vmatpush.msrb.mxu0 %v3173_v16 }
  0x34   :  { %548 = vmatpush.msrb.mxu1 %v3175_v17  ;;  %568 = vmatpush.msrb.mxu2 %v3184_v19  ;;  %v3382_v17 = vld [vmem:[#allocation3 + $0x4] sm:$0xf] }
  0x35   :  { %2902 = vset.pattern.permute.xlu1 %v4971_v11  ;;  %588 = vmatpush.msrb.mxu3 %v3186_v20 }
  0x36   :  { %430 = vperm.xlu1 %2902, %v3368_v8   ;;  %315 = vperm.xlu2 %2898, %v3195_v21  }
  0x37   :  { %2901 = vset.pattern.permute.xlu0 %v4972_v14  ;;  %529 = vmatpush.msrb.mxu0 %v3200_v22 }
  0x38   :  { %549 = vmatpush.msrb.mxu1 %v3202_v23  ;;  %569 = vmatpush.msrb.mxu2 %v3204_v24  ;;  %v53_v23 = vld [vmem:[%s4879_s3] sm:$0xf] }
  0x39   :  { %589 = vmatpush.msrb.mxu3 %v3208_v25  ;;  %530 = vmatpush.msrb.mxu0 %v3212_v26  ;;  %v3400_v25 = vld [vmem:[%s4880_s4 + $0x8] sm:$0xf] }
  0x3a   :  { %550 = vmatpush.msrb.mxu1 %v3214_v27  ;;  %570 = vmatpush.msrb.mxu2 %v3216_v28 }
  0x3b   :  { %590 = vmatpush.msrb.mxu3 %v3220_v29  ;;  %531 = vmatpush.msrb.mxu0 %v3224_v30 }
  0x3c   :  { %551 = vmatpush.msrb.mxu1 %v3226_v31  ;;  %571 = vmatpush.msrb.mxu2 %v3228_v32 }
  0x3d   :  { %591 = vmatpush.msrb.mxu3 %v3232_v33  ;;  %532 = vmatpush.msrb.mxu0 %v3236_v34 }
  0x3e   :  { %2904 = vset.pattern.permute.xlu1 %v4972_v14  ;;  %369 = vperm.xlu2 %2898, %v53_v23  }
  0x3f   :  { %650 = vperm.xlu1 %2904, %v3400_v25   ;;  %552 = vmatpush.msrb.mxu1 %v3238_v35  ;;  %v2827_v35 = vld [vmem:[%s4878_s2 + $0xc] sm:$0xf] }
  0x40   :  { %572 = vmatpush.msrb.mxu2 %v3240_v36  ;;  %592 = vmatpush.msrb.mxu3 %v3244_v37 }
  0x41   :  { %533 = vmatpush.msrb.mxu0 %v3248_v38  ;;  %553 = vmatpush.msrb.mxu1 %v3250_v39  ;;  %v2831_v38 = vld [vmem:[%s4880_s4 + $0xc] sm:$0xf] }
  0x42   :  { %573 = vmatpush.msrb.mxu2 %v3252_v40  ;;  %593 = vmatpush.msrb.mxu3 %v3256_v41 }
  0x43   :  { %534 = vmatpush.msrb.mxu0 %v3260_v42  ;;  %410 = vperm.xlu0 %2901, %v2827_v35  }
  0x44   :  { %554 = vmatpush.msrb.mxu1 %v3262_v43  ;;  %574 = vmatpush.msrb.mxu2 %v3264_v44 }
  0x45   :  { %594 = vmatpush.msrb.mxu3 %v3268_v45  ;;  %535 = vmatpush.msrb.mxu0 %v3272_v46  ;;  %v2829_v46 = vld [vmem:[%s4879_s3 + $0xc] sm:$0xf] }
  0x46   :  { %405 = vperm.xlu2 %2898, %v3368_v8   ;;  %555 = vmatpush.msrb.mxu1 %v3274_v47  ;;  %v4973_v47 = vld [vmem:[#allocation17_spill] sm:$0xff] }
  0x47   :  { %2907 = vset.pattern.permute.xlu1 %v4971_v11  ;;  %575 = vmatpush.msrb.mxu2 %v3276_v48  ;;  %v4974_v48 = vld [vmem:[#allocation18_spill] sm:$0xff] }
  0x48   :  { %673 = vperm.xlu1 %2907, %v2831_v38   ;;  %595 = vmatpush.msrb.mxu3 %v3280_v49  ;;  %v4975_v49 = vld [vmem:[#allocation19_spill] sm:$0xff] }
  0x49   :  { %536 = vmatpush.msrb.mxu0 %v3284_v50  ;;  %556 = vmatpush.msrb.mxu1 %v3286_v51  ;;  %v3470_v50 = vld [vmem:[%s4878_s2 + $0x10] sm:$0xf] }
  0x4a   :  { %576 = vmatpush.msrb.mxu2 %v3288_v52  ;;  %596 = vmatpush.msrb.mxu3 %v3292_v53  ;;  %v4976_v51 = vld [vmem:[#allocation20_spill] sm:$0xff] }
  0x4b   :  { %537 = vmatpush.msrb.mxu0 %v3296_v54  ;;  %557 = vmatpush.msrb.mxu1 %v3298_v55 }
  0x4c   :  { %577 = vmatpush.msrb.mxu2 %v3300_v56  ;;  %597 = vmatpush.msrb.mxu3 %v3304_v57 }
  0x4d   :  { %538 = vmatpush.msrb.mxu0 %v3308_v58  ;;  %558 = vmatpush.msrb.mxu1 %v3310_v59  ;;  %v49_v58 = vld [vmem:[%s4876_s0] sm:$0xf] }
  0x4e   :  { %2903 = vset.pattern.permute.xlu2 %v4971_v11  ;;  %578 = vmatpush.msrb.mxu2 %v3312_v60 }
  0x4f   :  { %434 = vperm.xlu2 %2903, %v2827_v35   ;;  %598 = vmatpush.msrb.mxu3 %v4973_v47 }
  0x50   :  { %2908 = vset.pattern.permute.xlu1 %v4972_v14  ;;  %539 = vmatpush.msrb.mxu0 %v3320_v62 }
  0x51   :  { %714 = vperm.xlu1 %2908, %v2829_v46   ;;  %559 = vmatpush.msrb.mxu1 %v4974_v48 }
  0x52   :  { %579 = vmatpush.msrb.mxu2 %v3324_v0  ;;  %599 = vmatpush.msrb.mxu3 %v4975_v49 }
  0x53   :  { %540 = vmatpush.msrb.mxu0 %v3330_v18  ;;  %560 = vmatpush.msrb.mxu1 %v3332_v2 }
  0x54   :  { %580 = vmatpush.msrb.mxu2 %v3336_v1  ;;  %600 = vmatpush.msrb.mxu3 %v4976_v51  ;;  %v50_v1 = vld [vmem:[%s4877_s1] sm:$0x3] }
  0x55   :  { %2906 = vset.pattern.permute.xlu0 %v4971_v11 }
  0x56   :  { %669 = vperm.xlu0 %2906, %v3400_v25  }
  0x57   :  { %2905 = vset.pattern.permute.xlu2 %v4972_v14 }
  0x58   :  { %655 = vperm.xlu2 %2905, %v2831_v38  }
  0x59   :  { %2910 = vset.pattern.permute.xlu1 %v4971_v11 }
  0x5a   :  { %772 = vperm.xlu1 %2910, %v3470_v50  }
  0x5e   :  { %2909 = vset.pattern.permute.xlu0 %v4972_v14 }
  0x62   :  { %2912 = vset.pattern.permute.xlu1 %v4972_v14 }
  0x63   :  { %354 = vperm.xlu1 %2912, %v50_v1  }
  0x6b   :  { %2914 = vset.pattern.permute.xlu1 %v4971_v11 }
  0x7a   :  { %v89_v4 = vpop.permute.xlu1 %88 }
  0x7b   :  { %v63_v5 = vpop.permute.xlu0 %62  ;;  %v95_v6 = vmul.f32 %v89_v4, %v3355_v61 }
  0x7c   :  { %v70_v7 = vmul.f32 %v63_v5, %v3355_v61 }
  0x7d   :  { %v97_v9 = vsel %vm72_vm0, %v95_v6, 0.0 }
  0x7e   :  { %v73_v10 = vsel %vm72_vm0, %v70_v7, 0.0  ;;  %v98_v12 = vrot.slane %v97_v9, 4 }
  0x7f   :  { %v74_v13 = vrot.slane %v73_v10, 4 }
  0x80   :  { %v99_v15 = vadd.f32 %v98_v12, %v97_v9 }
  0x81   :  { %v75_v16 = vadd.f32 %v74_v13, %v73_v10 }
  0x82   :  { %v93_v19 = vpop.permute.xlu1 %92  ;;  %v100_v21 = vrot.slane %v99_v15, 2 }
  0x83   :  { %v68_v20 = vpop.permute.xlu0 %67  ;;  %v96_v22 = vmul.f32 %v93_v19, %v3382_v17  ;;  %v76_v24 = vrot.slane %v75_v16, 2 }
  0x84   :  { %v71_v63 = vmul.f32 %v68_v20, %v3382_v17  ;;  %v101_v30 = vadd.f32 %v100_v21, %v99_v15 }
  0x85   :  { %v104_v26 = vsel %vm72_vm0, %v96_v22, 0.0  ;;  %v77_v31 = vadd.f32 %v76_v24, %v75_v16 }
  0x86   :  { %v80_v27 = vsel %vm72_vm0, %v71_v63, 0.0  ;;  %v105_v28 = vrot.slane %v104_v26, 4  ;;  %v102_v4 = vrot.slane %v101_v30, 1 }
  0x87   :  { %v81_v29 = vrot.slane %v80_v27, 4  ;;  %v78_v36 = vrot.slane %v77_v31, 1 }
  0x88   :  { %v106_v32 = vadd.f32 %v105_v28, %v104_v26  ;;  %v103_v41 = vadd.f32 %v102_v4, %v101_v30  ;;  %v311_v28 = vpop.permute.xlu2 %310 }
  0x89   :  { %v82_v3 = vadd.f32 %v81_v29, %v80_v27  ;;  %v79_v42 = vadd.f32 %v78_v36, %v77_v31 }
  0x8a   :  { %v107_v33 = vrot.slane %v106_v32, 2  ;;  %v3484_v2 = vpop.permute.xlu1 %333 }
  0x8b   :  { %v83_v34 = vrot.slane %v82_v3, 2 }
  0x8c   :  { %v108_v5 = vadd.f32 %v107_v33, %v106_v32 }
  0x8d   :  { %v84_v37 = vadd.f32 %v83_v34, %v82_v3  ;;  %v57_v34 = vld [vmem:[#allocation2] sm:$0xf] }
  0x8e   :  { %v109_v39 = vrot.slane %v108_v5, 1 }
  0x8f   :  { %v85_v40 = vrot.slane %v84_v37, 1 }
  0x90   :  { %v110_v43 = vadd.f32 %v109_v39, %v108_v5  ;;  %v316_v33 = vpop.permute.xlu2 %315 }
  0x91   :  { %v86_v6 = vadd.f32 %v85_v40, %v84_v37 }
  0x92   :  { %v3438_v45 = vsel %vm113_vm1, %v110_v43, %v103_v41 }
  0x93   :  { %v3435_v44 = vsel %vm113_vm1, %v86_v6, %v79_v42  ;;  %220 = vmatmul.f32.vlgmr.msra.gmra.mxu1 %v3438_v45  ;;  %260 = vmatmul.f32.vlgmr.msra.gmra.mxu3 %v3438_v45  ;;  %v293_v27 = vrot.slane %v3438_v45, 6 }
  0x94   :  { %200 = vmatmul.f32.vlgmr.msra.gmra.mxu0 %v3435_v44  ;;  %240 = vmatmul.f32.vlgmr.msra.gmra.mxu2 %v3435_v44 }
  0x95   :  { %v294_v30 = vsel %vm267_vm2, %v3435_v44, %v293_v27 }
  0x98   :  { %v370_v43 = vpop.permute.xlu2 %369 }
  0x9f   :  { %v3490_v0 = vpop.permute.xlu1 %374 }
  0xa0   :  { %v330_v38 = vpop.permute.xlu0 %329 }
  0xa8   :  { %v3492_v8 = vpop.permute.xlu1 %430 }
  0xb1   :  { %v3494_v13 = vpop.permute.xlu1 %650 }
  0xba   :  { %v3496_v25 = vpop.permute.xlu1 %673 }
  0xc3   :  { %v3501_v31 = vpop.permute.xlu1 %714 }
  0xcc   :  { %v3503_v4 = vpop.permute.xlu1 %772 }
 0x110   :  { %v221_v53 = vpop.f32.mrf.mxu1 }
 0x111   :  { %v201_v52 = vpop.f32.mrf.mxu0 }
 0x112   :  { %v222_v57 = vadd.f32 %v221_v53, %v201_v52 }
 0x116   :  { %v261_v55 = vpop.f32.mrf.mxu3 }
 0x117   :  { %v241_v54 = vpop.f32.mrf.mxu2 }
 0x118   :  { %v262_v56 = vadd.f32 %v261_v55, %v241_v54  ;;  %v355_v54 = vpop.permute.xlu1 %354 }
 0x11a   :  { %v266_v59 = vrot.slane %v262_v56, 6 }
 0x11c   :  { %v268_v60 = vsel %vm267_vm2, %v222_v57, %v266_v59  ;;  %v2836_v57 = vld [vmem:[%s4878_s2 + $0x14] sm:$0xf] }
 0x11d   :  { %v270_v62 = vadd.f32 %v268_v60, %v49_v58  ;;  %752 = vperm.xlu0 %2909, %v2836_v57  }
 0x11f   :  { %v2823_v18 = vmul.f32 -1.442695, %v270_v62 }
 0x121   :  { %2958 = vpow2.f32 %v2823_v18 }
 0x127   :  { %v2959_v7 = vpop.eup %2958 }
 0x128   :  { %v274_v9 = vadd.f32 1.0, %v2959_v7 }
 0x12a   :  { %2960 = vrcp.f32 %v274_v9  ;;  %v286_v16 = vand.u32 2147483648, %v274_v9  ;;  %v284_v20 = vand.u32 2147483647, %v274_v9  ;;  %vm280_vm4 = vweird.f32 %v274_v9 }
 0x12c   :  { %v287_v22 = vor.u32 1.1754944e-38, %v286_v16  ;;  %vm285_vm6 = vcmp.eq.f32.partialorder %v284_v20, 8.507059e+37 }
 0x130   :  { %v2961_v10 = vpop.eup %2960 }
 0x131   :  { %v276_v12 = vmul.f32 %v2961_v10, %v274_v9  ;;  %vm281_vm3 = vweird.f32 %v2961_v10 }
 0x132   :  { %vm282_vm5 = vmor %vm280_vm4, %vm281_vm3 }
 0x133   :  { %v277_v15 = vsub.f32 1.0, %v276_v12 }
 0x135   :  { %v278_v19 = vmul.f32 %v2961_v10, %v277_v15 }
 0x137   :  { %v279_v21 = vadd.f32 %v2961_v10, %v278_v19  ;;  %v3523_v19 = vld [vmem:[%s4880_s4 + $0x14] sm:$0xf] }
 0x138   :  { %997 = vperm.xlu0 %2909, %v3523_v19  }
 0x139   :  { %v283_v63 = vsel %vm282_vm5, %v2961_v10, %v279_v21  ;;  %v406_v10 = vpop.permute.xlu2 %405 }
 0x13a   :  { %v288_v23 = vsel %vm285_vm6, %v287_v22, %v283_v63  ;;  %v2837_v63 = vld [vmem:[%s4879_s3 + $0x10] sm:$0xf] }
 0x13b   :  { %v290_v24 = vmul.f32 %v288_v23, %v268_v60 }
 0x13d   :  { %v291_v26 = vadd.f32 %v290_v24, %v49_v58 }
 0x13f   :  { %2962 = vtanh.f32 %v291_v26 }
 0x140   :  { %1051 = vperm.xlu0 %2909, %v2837_v63  }
 0x145   :  { %v2963_v29 = vpop.eup %2962 }
 0x146   :  { %v296_v32 = vsub.f32 %v2963_v29, %v294_v30 }
 0x148   :  { %v297_v3 = vmul.f32 %v296_v32, %v288_v23 }
 0x14a   :  { %299 = vst [vmem:[#allocation1] ss:$4 sm:$0xff] %v297_v3 }
 0x151   :  { %v300_v35 = vld.sshfl [vmem:[#allocation1] sm:$0xff pattern:$0x73625140]  ;;  %v301_v36 = vld.sshfl [vmem:[#allocation1 + $0x8] sm:$0xff pattern:$0x73625140] }
 0x152   :  { %345 = vst [vmem:[#allocation1] ss:$4 sm:$0xff] %v57_v34  ;;  %v304_v5 = vadd.f32 %v300_v35, %v3435_v44  ;;  %v305_v37 = vadd.f32 %v301_v36, %v3438_v45 }
 0x154   :  { %v318_v39 = vperm.slane %v304_v5, 0  ;;  %v307_v40 = vrot.slane %v304_v5, 1  ;;  %v327_v41 = vrot.slane %v305_v37, 1  ;;  %v336_v42 = vperm.slane %v305_v37, 0 }
 0x156   :  { %v322_v6 = vmul.f32 %v318_v39, %v311_v28  ;;  %v319_v46 = vperm.slane %v307_v40, 0  ;;  %v337_v47 = vperm.slane %v327_v41, 0  ;;  %v340_v48 = vmul.f32 %v336_v42, %v330_v38  ;;  %v3547_v41 = vld [vmem:[%s4878_s2 + $0x1c] sm:$0xf] }
 0x157   :  { %4977 = vst [vmem:[#allocation17_spill] sm:$0xff] %v3547_v41  ;;  %1094 = vperm.xlu0 %2909, %v3547_v41   ;;  %v3724_v41 = vld [vmem:[#allocation4 + $0x40] sm:$0xff] }
 0x158   :  { %v323_v49 = vmul.f32 %v319_v46, %v316_v33  ;;  %v341_v51 = vmul.f32 %v337_v47, %v3484_v2  ;;  %v342_v1 = vadd.f32 %v340_v48, %v322_v6  ;;  %v2828_v2 = vld [vmem:[%s4879_s3 + $0x8] sm:$0xf]  ;;  %4993 = vst [vmem:[#allocation33_spill] sm:$0xff] %v3724_v41 }
 0x159   :  { %v346_v52 = vld.sshfl [vmem:[#allocation1] sm:$0xff pattern:$0x73625140]  ;;  %v347_v53 = vld.sshfl [vmem:[#allocation1 + $0x8] sm:$0xff pattern:$0x73625140]  ;;  %709 = vperm.xlu2 %2905, %v2828_v2  }
 0x15a   :  { %v343_v44 = vadd.f32 %v341_v51, %v323_v49  ;;  %v365_v45 = vsub.f32 %v342_v1, %v3355_v61  ;;  %v350_v55 = vsub.f32 %v304_v5, %v346_v52  ;;  %v351_v56 = vsub.f32 %v305_v37, %v347_v53 }
 0x15c   :  { %v366_v58 = vsub.f32 %v343_v44, %v3382_v17  ;;  %v377_v59 = vmul.f32 %v370_v43, %v365_v45  ;;  %v358_v60 = vmul.f32 %v355_v54, %v351_v56  ;;  %v357_v7 = vmul.f32 %v355_v54, %v350_v55  ;;  %v2825_v44 = vld [vmem:[%s4877_s1 + $0x2] sm:$0x3] }
 0x15e   :  { %v378_v62 = vmul.f32 %v3490_v0, %v366_v58  ;;  %v379_v18 = vadd.f32 %v377_v59, %v3355_v61  ;;  %v361_v9 = vrot.slane %v358_v60, 6  ;;  %v411_v0 = vpop.permute.xlu0 %410  ;;  %v2824_v60 = vld [vmem:[%s4876_s0 + $0x4] sm:$0xf] }
 0x15f   :  { %694 = vperm.xlu0 %2909, %v2825_v44   ;;  %v3636_v44 = vld [vmem:[#allocation4 + $0x1b8] sm:$0xff] }
 0x160   :  { %v380_v12 = vadd.f32 %v378_v62, %v3382_v17  ;;  %382 = vst [vmem:[#allocation3] sm:$0xf] %v379_v18  ;;  %v362_v15 = vsel %vm267_vm2, %v357_v7, %v361_v9  ;;  %v435_v17 = vpop.permute.xlu2 %434 }
 0x161   :  { %385 = vst [vmem:[#allocation8] sm:$0xf] %v379_v18  ;;  %v364_v16 = vadd.f32 %v362_v15, %v57_v34  ;;  %747 = vperm.xlu2 %2905, %v3470_v50  }
 0x162   :  { %383 = vst [vmem:[#allocation3 + $0x4] sm:$0xf] %v380_v12 }
 0x163   :  { %386 = vst [vmem:[#allocation8 + $0x4] sm:$0xf] %v380_v12 }
 0x164   :  { %381 = vst [vmem:[#allocation2] sm:$0xf] %v364_v16 }
 0x165   :  { %384 = vst [vmem:[#allocation6] sm:$0xf] %v364_v16 }
 0x167   :  { %v3527_v61 = vld [vmem:[#allocation3] sm:$0xf]  ;;  %2922 = vset.pattern.permute.xlu0 %v4971_v11 }
 0x168   :  { %v413_v20 = vmul.f32 %v406_v10, %v3527_v61  ;;  %v437_v21 = vmul.f32 %v3492_v8, %v3527_v61  ;;  %v3569_v10 = vpop.permute.xlu0 %669 }
 0x169   :  { %v3532_v22 = vld [vmem:[#allocation3 + $0x4] sm:$0xf]  ;;  %2911 = vset.pattern.permute.xlu2 %v4971_v11 }
 0x16a   :  { %v438_v23 = vmul.f32 %v435_v17, %v3532_v22  ;;  %v414_v24 = vmul.f32 %v411_v0, %v3532_v22  ;;  %v415_v50 = vsel %vm72_vm0, %v413_v20, 0.0  ;;  %v439_v26 = vsel %vm72_vm0, %v437_v21, 0.0  ;;  %776 = vperm.xlu2 %2911, %v2836_v57  }
 0x16b   :  { %v416_v27 = vrot.slane %v415_v50, 4  ;;  %v440_v28 = vrot.slane %v439_v26, 4 }
 0x16c   :  { %v446_v29 = vsel %vm72_vm0, %v438_v23, 0.0  ;;  %v422_v8 = vsel %vm72_vm0, %v414_v24, 0.0 }
 0x16d   :  { %v447_v30 = vrot.slane %v446_v29, 4  ;;  %v423_v32 = vrot.slane %v422_v8, 4  ;;  %v417_v3 = vadd.f32 %v416_v27, %v415_v50  ;;  %v441_v33 = vadd.f32 %v440_v28, %v439_v26 }
 0x16f   :  { %v448_v34 = vadd.f32 %v447_v30, %v446_v29  ;;  %v424_v35 = vadd.f32 %v423_v32, %v422_v8  ;;  %v418_v36 = vrot.slane %v417_v3, 2  ;;  %v442_v5 = vrot.slane %v441_v33, 2  ;;  %v3575_v29 = vld [vmem:[#allocation4 + $0xf0] sm:$0xff]  ;;  %v3579_v30 = vld [vmem:[#allocation4 + $0xf8] sm:$0xff] }
 0x170   :  { %v3577_v8 = vld [vmem:[#allocation4 + $0x1f0] sm:$0xff]  ;;  %867 = vmatpush.msra.mxu0 %v3575_v29  ;;  %v3583_v32 = vld [vmem:[#allocation4 + $0x1f8] sm:$0xff]  ;;  %907 = vmatpush.msra.mxu2 %v3579_v30 }
 0x171   :  { %v449_v37 = vrot.slane %v448_v34, 2  ;;  %v425_v38 = vrot.slane %v424_v35, 2  ;;  %v419_v39 = vadd.f32 %v418_v36, %v417_v3  ;;  %v443_v40 = vadd.f32 %v442_v5, %v441_v33  ;;  %887 = vmatpush.msra.mxu1 %v3577_v8  ;;  %927 = vmatpush.msra.mxu3 %v3583_v32  ;;  %v3587_v33 = vld [vmem:[#allocation4 + $0xe0] sm:$0xff]  ;;  %v3595_v36 = vld [vmem:[#allocation4 + $0x1e8] sm:$0xff]  ;;  %v3599_v5 = vld [vmem:[#allocation4 + $0xd0] sm:$0xff] }
 0x172   :  { %2913 = vset.pattern.permute.xlu2 %v4972_v14  ;;  %868 = vmatpush.msra.mxu0 %v3587_v33 }
 0x173   :  { %v450_v42 = vadd.f32 %v449_v37, %v448_v34  ;;  %v426_v43 = vadd.f32 %v425_v38, %v424_v35  ;;  %v420_v6 = vrot.slane %v419_v39, 1  ;;  %v444_v46 = vrot.slane %v443_v40, 1  ;;  %v3589_v34 = vld [vmem:[#allocation4 + $0x1e0] sm:$0xff]  ;;  %v3591_v35 = vld [vmem:[#allocation4 + $0xe8] sm:$0xff]  ;;  %928 = vmatpush.msra.mxu3 %v3595_v36  ;;  %v3601_v37 = vld [vmem:[#allocation4 + $0x1d0] sm:$0xff] }
 0x174   :  { %888 = vmatpush.msra.mxu1 %v3589_v34  ;;  %908 = vmatpush.msra.mxu2 %v3591_v35  ;;  %v3603_v38 = vld [vmem:[#allocation4 + $0xd8] sm:$0xff] }
 0x175   :  { %v451_v47 = vrot.slane %v450_v42, 1  ;;  %v427_v48 = vrot.slane %v426_v43, 1  ;;  %v421_v1 = vadd.f32 %v420_v6, %v419_v39  ;;  %v445_v52 = vadd.f32 %v444_v46, %v443_v40  ;;  %869 = vmatpush.msra.mxu0 %v3599_v5  ;;  %v3608_v40 = vld [vmem:[#allocation4 + $0x1d8] sm:$0xff]  ;;  %v3616_v6 = vld [vmem:[#allocation4 + $0xc8] sm:$0xff] }
 0x176   :  { %889 = vmatpush.msra.mxu1 %v3601_v37  ;;  %909 = vmatpush.msra.mxu2 %v3603_v38  ;;  %v3620_v46 = vld [vmem:[#allocation4 + $0x1c8] sm:$0xff] }
 0x177   :  { %v452_v49 = vadd.f32 %v451_v47, %v450_v42  ;;  %v428_v51 = vadd.f32 %v427_v48, %v426_v43  ;;  %929 = vmatpush.msra.mxu3 %v3608_v40  ;;  %v3612_v42 = vld [vmem:[#allocation4 + $0xc0] sm:$0xff]  ;;  %v3624_v47 = vld [vmem:[#allocation4 + $0xb0] sm:$0xff] }
 0x178   :  { %v3614_v43 = vld [vmem:[#allocation4 + $0x1c0] sm:$0xff]  ;;  %870 = vmatpush.msra.mxu0 %v3612_v42  ;;  %910 = vmatpush.msra.mxu2 %v3616_v6  ;;  %v3626_v48 = vld [vmem:[#allocation4 + $0x1b0] sm:$0xff] }
 0x179   :  { %v3552_v53 = vsel %vm113_vm1, %v428_v51, %v421_v1  ;;  %v3555_v54 = vsel %vm113_vm1, %v452_v49, %v445_v52  ;;  %890 = vmatpush.msra.mxu1 %v3614_v43  ;;  %930 = vmatpush.msra.mxu3 %v3620_v46  ;;  %v3628_v49 = vld [vmem:[#allocation4 + $0xb8] sm:$0xff] }
 0x17a   :  { %541 = vmatmul.f32.vlgmr.msrb.gmra.mxu0 %v3552_v53  ;;  %561 = vmatmul.f32.vlgmr.msrb.gmra.mxu1 %v3555_v54  ;;  %v633_v39 = vrot.slane %v3555_v54, 6 }
 0x17b   :  { %581 = vmatmul.f32.vlgmr.msrb.gmra.mxu2 %v3552_v53  ;;  %601 = vmatmul.f32.vlgmr.msrb.gmra.mxu3 %v3555_v54 }
 0x17c   :  { %v634_v1 = vsel %vm267_vm2, %v3552_v53, %v633_v39  ;;  %871 = vmatpush.msra.mxu0 %v3624_v47  ;;  %891 = vmatpush.msra.mxu1 %v3626_v48  ;;  %v3706_v39 = vld [vmem:[#allocation4 + $0x50] sm:$0xff] }
 0x17d   :  { %911 = vmatpush.msra.mxu2 %v3628_v49  ;;  %931 = vmatpush.msra.mxu3 %v3636_v44  ;;  %4989 = vst [vmem:[#allocation29_spill] sm:$0xff] %v3706_v39 }
 0x18f   :  { %v3571_v17 = vpop.permute.xlu0 %752 }
 0x1aa   :  { %v3573_v28 = vpop.permute.xlu0 %997 }
 0x1ab   :  { %4978 = vst [vmem:[#allocation18_spill] sm:$0xff] %v3573_v28  ;;  %v3722_v28 = vld [vmem:[#allocation4 + $0x158] sm:$0xff] }
 0x1ac   :  { %4992 = vst [vmem:[#allocation32_spill] sm:$0xff] %v3722_v28 }
 0x1b2   :  { %v3632_v52 = vpop.permute.xlu0 %1051 }
 0x1b3   :  { %4979 = vst [vmem:[#allocation19_spill] sm:$0xff] %v3632_v52 }
 0x1f7   :  { %v542_v45 = vpop.f32.mrf.mxu0  ;;  %v562_v55 = vpop.f32.mrf.mxu1 }
 0x1f8   :  { %v563_v59 = vadd.f32 %v562_v55, %v542_v45  ;;  %v3640_v55 = vld [vmem:[#allocation4 + $0xa0] sm:$0xff] }
 0x1f9   :  { %872 = vmatpush.msra.mxu0 %v3640_v55 }
 0x1fe   :  { %v582_v56 = vpop.f32.mrf.mxu2  ;;  %v602_v57 = vpop.f32.mrf.mxu3 }
 0x1ff   :  { %v603_v58 = vadd.f32 %v602_v57, %v582_v56  ;;  %v3642_v56 = vld [vmem:[#allocation4 + $0x1a0] sm:$0xff]  ;;  %v3644_v57 = vld [vmem:[#allocation4 + $0xa8] sm:$0xff] }
 0x200   :  { %892 = vmatpush.msra.mxu1 %v3642_v56  ;;  %912 = vmatpush.msra.mxu2 %v3644_v57 }
 0x201   :  { %v607_v2 = vrot.slane %v603_v58, 6  ;;  %v3648_v58 = vld [vmem:[#allocation4 + $0x1a8] sm:$0xff] }
 0x202   :  { %932 = vmatpush.msra.mxu3 %v3648_v58 }
 0x203   :  { %v608_v62 = vsel %vm267_vm2, %v563_v59, %v607_v2  ;;  %v3654_v2 = vld [vmem:[#allocation4 + $0x190] sm:$0xff] }
 0x204   :  { %v610_v18 = vadd.f32 %v2824_v60, %v608_v62  ;;  %893 = vmatpush.msra.mxu1 %v3654_v2 }
 0x206   :  { %v2832_v7 = vmul.f32 -1.442695, %v610_v18  ;;  %v3660_v18 = vld [vmem:[#allocation4 + $0x198] sm:$0xff] }
 0x207   :  { %933 = vmatpush.msra.mxu3 %v3660_v18 }
 0x208   :  { %2964 = vpow2.f32 %v2832_v7  ;;  %v3664_v7 = vld [vmem:[#allocation4 + $0x80] sm:$0xff] }
 0x20e   :  { %v2965_v9 = vpop.eup %2964 }
 0x20f   :  { %v614_v12 = vadd.f32 1.0, %v2965_v9  ;;  %v3666_v9 = vld [vmem:[#allocation4 + $0x180] sm:$0xff] }
 0x210   :  { %894 = vmatpush.msra.mxu1 %v3666_v9 }
 0x211   :  { %2966 = vrcp.f32 %v614_v12  ;;  %v626_v20 = vand.u32 2147483648, %v614_v12  ;;  %v624_v63 = vand.u32 2147483647, %v614_v12  ;;  %vm620_vm8 = vweird.f32 %v614_v12 }
 0x213   :  { %v627_v24 = vor.u32 1.1754944e-38, %v626_v20  ;;  %vm625_vm10 = vcmp.eq.f32.partialorder %v624_v63, 8.507059e+37  ;;  %v3680_v20 = vld [vmem:[#allocation4 + $0x170] sm:$0xff]  ;;  %v3686_v63 = vld [vmem:[#allocation4 + $0x178] sm:$0xff] }
 0x214   :  { %4981 = vst [vmem:[#allocation21_spill] sm:$0xff] %v3680_v20  ;;  %895 = vmatpush.msra.mxu1 %v3680_v20  ;;  %v3756_v20 = vld [vmem:[#allocation4 + $0x120] sm:$0xff] }
 0x215   :  { %4983 = vst [vmem:[#allocation23_spill] sm:$0xff] %v3686_v63 }
 0x217   :  { %v2967_v15 = vpop.eup %2966 }
 0x218   :  { %v616_v16 = vmul.f32 %v2967_v15, %v614_v12  ;;  %vm621_vm7 = vweird.f32 %v2967_v15  ;;  %v3668_v12 = vld [vmem:[#allocation4 + $0x88] sm:$0xff] }
 0x219   :  { %vm622_vm9 = vmor %vm620_vm8, %vm621_vm7 }
 0x21a   :  { %v617_v0 = vsub.f32 1.0, %v616_v16  ;;  %v3674_v16 = vld [vmem:[#allocation4 + $0x188] sm:$0xff] }
 0x21b   :  { %934 = vmatpush.msra.mxu3 %v3674_v16 }
 0x21c   :  { %v618_v21 = vmul.f32 %v2967_v15, %v617_v0  ;;  %v3678_v0 = vld [vmem:[#allocation4 + $0x70] sm:$0xff] }
 0x21d   :  { %4980 = vst [vmem:[#allocation20_spill] sm:$0xff] %v3678_v0  ;;  %935 = vmatpush.msra.mxu3 %v3686_v63 }
 0x21e   :  { %v619_v23 = vadd.f32 %v2967_v15, %v618_v21  ;;  %v3682_v21 = vld [vmem:[#allocation4 + $0x78] sm:$0xff] }
 0x21f   :  { %4982 = vst [vmem:[#allocation22_spill] sm:$0xff] %v3682_v21 }
 0x220   :  { %v623_v50 = vsel %vm622_vm9, %v2967_v15, %v619_v23  ;;  %v3670_v15 = vpop.permute.xlu2 %655  ;;  %v3690_v23 = vld [vmem:[#allocation4 + $0x60] sm:$0xff] }
 0x221   :  { %v628_v26 = vsel %vm625_vm10, %v627_v24, %v623_v50  ;;  %4984 = vst [vmem:[#allocation24_spill] sm:$0xff] %v3690_v23  ;;  %v3692_v24 = vld [vmem:[#allocation4 + $0x160] sm:$0xff]  ;;  %v3694_v50 = vld [vmem:[#allocation4 + $0x68] sm:$0xff] }
 0x222   :  { %v630_v27 = vmul.f32 %v628_v26, %v608_v62  ;;  %v3656_v62 = vld [vmem:[#allocation4 + $0x98] sm:$0xff]  ;;  %4985 = vst [vmem:[#allocation25_spill] sm:$0xff] %v3692_v24  ;;  %896 = vmatpush.msra.mxu1 %v3692_v24 }
 0x223   :  { %913 = vmatpush.msra.mxu2 %v3656_v62  ;;  %4986 = vst [vmem:[#allocation26_spill] sm:$0xff] %v3694_v50  ;;  %v3748_v24 = vld [vmem:[#allocation4 + $0x138] sm:$0xff] }
 0x224   :  { %v631_v3 = vadd.f32 %v2824_v60, %v630_v27  ;;  %v3652_v60 = vld [vmem:[#allocation4 + $0x90] sm:$0xff]  ;;  %v3698_v27 = vpop.permute.xlu0 %1094  ;;  %5000 = vst [vmem:[#allocation40_spill] sm:$0xff] %v3748_v24 }
 0x225   :  { %873 = vmatpush.msra.mxu0 %v3652_v60  ;;  %914 = vmatpush.msra.mxu2 %v3668_v12  ;;  %4987 = vst [vmem:[#allocation27_spill] sm:$0xff] %v3698_v27 }
 0x226   :  { %2968 = vtanh.f32 %v631_v3  ;;  %v3702_v3 = vld [vmem:[#allocation4 + $0x168] sm:$0xff] }
 0x227   :  { %874 = vmatpush.msra.mxu0 %v3664_v7  ;;  %915 = vmatpush.msra.mxu2 %v3682_v21  ;;  %4988 = vst [vmem:[#allocation28_spill] sm:$0xff] %v3702_v3 }
 0x228   :  { %936 = vmatpush.msra.mxu3 %v3702_v3  ;;  %v3726_v3 = vld [vmem:[#allocation4 + $0x140] sm:$0xff] }
 0x229   :  { %875 = vmatpush.msra.mxu0 %v3678_v0  ;;  %916 = vmatpush.msra.mxu2 %v3694_v50  ;;  %4994 = vst [vmem:[#allocation34_spill] sm:$0xff] %v3726_v3  ;;  %v3746_v50 = vld [vmem:[#allocation4 + $0x38] sm:$0xff] }
 0x22a   :  { %937 = vmatpush.msra.mxu3 %v3722_v28  ;;  %v3742_v28 = vld [vmem:[#allocation4 + $0x130] sm:$0xff]  ;;  %4999 = vst [vmem:[#allocation39_spill] sm:$0xff] %v3746_v50 }
 0x22b   :  { %876 = vmatpush.msra.mxu0 %v3690_v23  ;;  %4998 = vst [vmem:[#allocation38_spill] sm:$0xff] %v3742_v28 }
 0x22c   :  { %v2969_v51 = vpop.eup %2968 }
 0x22d   :  { %v636_v45 = vsub.f32 %v2969_v51, %v634_v1  ;;  %v3708_v51 = vld [vmem:[#allocation4 + $0x150] sm:$0xff]  ;;  %v3710_v1 = vld [vmem:[#allocation4 + $0x58] sm:$0xff]  ;;  %877 = vmatpush.msra.mxu0 %v3706_v39  ;;  %v3732_v39 = vld [vmem:[#allocation4 + $0x148] sm:$0xff] }
 0x22e   :  { %4990 = vst [vmem:[#allocation30_spill] sm:$0xff] %v3708_v51  ;;  %897 = vmatpush.msra.mxu1 %v3708_v51  ;;  %917 = vmatpush.msra.mxu2 %v3710_v1  ;;  %v3730_v51 = vld [vmem:[#allocation4 + $0x48] sm:$0xff] }
 0x22f   :  { %v637_v59 = vmul.f32 %v636_v45, %v628_v26  ;;  %v3696_v26 = vld [vmem:[#allocation2] sm:$0xf]  ;;  %4991 = vst [vmem:[#allocation31_spill] sm:$0xff] %v3710_v1  ;;  %878 = vmatpush.msra.mxu0 %v3724_v41  ;;  %v710_v41 = vpop.permute.xlu2 %709  ;;  %938 = vmatpush.msra.mxu3 %v3732_v39 }
 0x230   :  { %4995 = vst [vmem:[#allocation35_spill] sm:$0xff] %v3730_v51  ;;  %898 = vmatpush.msra.mxu1 %v3726_v3  ;;  %918 = vmatpush.msra.mxu2 %v3730_v51  ;;  %v3740_v1 = vld [vmem:[#allocation4 + $0x30] sm:$0xff]  ;;  %v3754_v51 = vld [vmem:[#allocation4 + $0x20] sm:$0xff] }
 0x231   :  { %639 = vst [vmem:[#allocation1] ss:$4 sm:$0xff] %v637_v59  ;;  %879 = vmatpush.msra.mxu0 %v3740_v1  ;;  %939 = vmatpush.msra.mxu3 %v3748_v24  ;;  %v3774_v24 = vld [vmem:[#allocation4 + $0x118] sm:$0xff] }
 0x232   :  { %4996 = vst [vmem:[#allocation36_spill] sm:$0xff] %v3732_v39  ;;  %899 = vmatpush.msra.mxu1 %v3742_v28  ;;  %919 = vmatpush.msra.mxu2 %v3746_v50  ;;  %v3758_v39 = vld [vmem:[#allocation4 + $0x28] sm:$0xff]  ;;  %v695_v50 = vpop.permute.xlu0 %694 }
 0x233   :  { %4997 = vst [vmem:[#allocation37_spill] sm:$0xff] %v3740_v1  ;;  %880 = vmatpush.msra.mxu0 %v3754_v51  ;;  %v3762_v1 = vld [vmem:[#allocation4 + $0x128] sm:$0xff] }
 0x234   :  { %5001 = vst [vmem:[#allocation41_spill] sm:$0xff] %v3754_v51  ;;  %900 = vmatpush.msra.mxu1 %v3756_v20  ;;  %920 = vmatpush.msra.mxu2 %v3758_v39  ;;  %v3776_v51 = vld [vmem:[#allocation4] sm:$0xff] }
 0x235   :  { %5002 = vst [vmem:[#allocation42_spill] sm:$0xff] %v3762_v1  ;;  %940 = vmatpush.msra.mxu3 %v3762_v1  ;;  %v3790_v1 = vld [vmem:[#allocation4 + $0x108] sm:$0xff] }
 0x236   :  { %5004 = vst [vmem:[#allocation44_spill] sm:$0xff] %v3774_v24 }
 0x237   :  { %941 = vmatpush.msra.mxu3 %v3774_v24 }
 0x238   :  { %v640_v45 = vld.sshfl [vmem:[#allocation1] sm:$0xff pattern:$0x73625140]  ;;  %v641_v59 = vld.sshfl [vmem:[#allocation1 + $0x8] sm:$0xff pattern:$0x73625140] }
 0x239   :  { %685 = vst [vmem:[#allocation1] ss:$4 sm:$0xff] %v3696_v26  ;;  %v3716_v27 = vadd.f32 %v640_v45, %v3552_v53  ;;  %v3719_v52 = vadd.f32 %v641_v59, %v3555_v54  ;;  %942 = vmatpush.msra.mxu3 %v3790_v1 }
 0x23b   :  { %v658_v53 = vperm.slane %v3716_v27, 0  ;;  %v676_v54 = vperm.slane %v3719_v52, 0  ;;  %v647_v45 = vrot.slane %v3716_v27, 1  ;;  %v667_v59 = vrot.slane %v3719_v52, 1  ;;  %1269 = vmatpush.msrb.mxu3 %v3583_v32 }
 0x23d   :  { %v662_v23 = vmul.f32 %v658_v53, %v3494_v13  ;;  %v680_v63 = vmul.f32 %v676_v54, %v3569_v10  ;;  %v659_v3 = vperm.slane %v647_v45, 0  ;;  %v677_v21 = vperm.slane %v667_v59, 0  ;;  %v3764_v13 = vld [vmem:[#allocation4 + $0x10] sm:$0xff]  ;;  %v3772_v59 = vld [vmem:[#allocation4 + $0x18] sm:$0xff]  ;;  %1270 = vmatpush.msrb.mxu3 %v3595_v36 }
 0x23e   :  { %v3766_v10 = vld [vmem:[#allocation4 + $0x110] sm:$0xff]  ;;  %5003 = vst [vmem:[#allocation43_spill] sm:$0xff] %v3772_v59  ;;  %881 = vmatpush.msra.mxu0 %v3764_v13  ;;  %921 = vmatpush.msra.mxu2 %v3772_v59  ;;  %v748_v59 = vpop.permute.xlu2 %747 }
 0x23f   :  { %v682_v53 = vadd.f32 %v680_v63, %v662_v23  ;;  %v663_v54 = vmul.f32 %v659_v3, %v3670_v15  ;;  %v681_v45 = vmul.f32 %v677_v21, %v3496_v25  ;;  %901 = vmatpush.msra.mxu1 %v3766_v10  ;;  %v3784_v23 = vld [vmem:[#allocation4 + $0x100] sm:$0xff]  ;;  %v3786_v3 = vld [vmem:[#allocation4 + $0x8] sm:$0xff]  ;;  %1271 = vmatpush.msrb.mxu3 %v3608_v40 }
 0x240   :  { %v686_v28 = vld.sshfl [vmem:[#allocation1] sm:$0xff pattern:$0x73625140]  ;;  %v687_v0 = vld.sshfl [vmem:[#allocation1 + $0x8] sm:$0xff pattern:$0x73625140]  ;;  %882 = vmatpush.msra.mxu0 %v3776_v51  ;;  %922 = vmatpush.msra.mxu2 %v3786_v3 }
 0x241   :  { %v683_v15 = vadd.f32 %v681_v45, %v663_v54  ;;  %v705_v25 = vsub.f32 %v682_v53, %v3527_v61  ;;  %v690_v21 = vsub.f32 %v3716_v27, %v686_v28  ;;  %v691_v63 = vsub.f32 %v3719_v52, %v687_v0  ;;  %v2839_v53 = vld [vmem:[%s4880_s4 + $0x10] sm:$0xf]  ;;  %902 = vmatpush.msra.mxu1 %v3784_v23 }
 0x242   :  { %1011 = vperm.xlu1 %2914, %v2839_v53   ;;  %992 = vperm.xlu2 %2913, %v2839_v53  }
 0x243   :  { %v706_v28 = vsub.f32 %v683_v15, %v3532_v22  ;;  %v717_v27 = vmul.f32 %v710_v41, %v705_v25  ;;  %v698_v52 = vmul.f32 %v695_v50, %v691_v63  ;;  %v697_v45 = vmul.f32 %v695_v50, %v690_v21  ;;  %1209 = vmatpush.msrb.mxu0 %v3575_v29  ;;  %v5010_v25 = vld [vmem:[#allocation25_spill] sm:$0xff] }
 0x244   :  { %1229 = vmatpush.msrb.mxu1 %v3577_v8  ;;  %1249 = vmatpush.msrb.mxu2 %v3579_v30 }
 0x245   :  { %v718_v0 = vmul.f32 %v3501_v31, %v706_v28  ;;  %v719_v54 = vadd.f32 %v717_v27, %v3527_v61  ;;  %v701_v24 = vrot.slane %v698_v52, 6  ;;  %1210 = vmatpush.msrb.mxu0 %v3587_v33  ;;  %v2838_v61 = vld [vmem:[%s4879_s3 + $0x14] sm:$0xf]  ;;  %1272 = vmatpush.msrb.mxu3 %v3620_v46  ;;  %v5012_v28 = vld [vmem:[#allocation28_spill] sm:$0xff]  ;;  %v5014_v52 = vld [vmem:[#allocation30_spill] sm:$0xff] }
 0x246   :  { %1230 = vmatpush.msrb.mxu1 %v3589_v34  ;;  %1250 = vmatpush.msrb.mxu2 %v3591_v35  ;;  %v777_v29 = vpop.permute.xlu2 %776  ;;  %v5013_v27 = vld [vmem:[#allocation29_spill] sm:$0xff] }
 0x247   :  { %v720_v41 = vadd.f32 %v718_v0, %v3532_v22  ;;  %722 = vst [vmem:[#allocation3] sm:$0xf] %v719_v54  ;;  %v702_v15 = vsel %vm267_vm2, %v697_v45, %v701_v24  ;;  %1211 = vmatpush.msrb.mxu0 %v3599_v5  ;;  %1273 = vmatpush.msrb.mxu3 %v3636_v44  ;;  %v5007_v24 = vld [vmem:[#allocation22_spill] sm:$0xff]  ;;  %v5015_v45 = vld [vmem:[#allocation17_spill] sm:$0xff] }
 0x248   :  { %727 = vst [vmem:[#allocation8 + $0x8] sm:$0xf] %v719_v54  ;;  %v704_v31 = vadd.f32 %v702_v15, %v3696_v26  ;;  %1231 = vmatpush.msrb.mxu1 %v3601_v37  ;;  %1251 = vmatpush.msrb.mxu2 %v3603_v38  ;;  %v5017_v15 = vld [vmem:[#allocation32_spill] sm:$0xff] }
 0x249   :  { %723 = vst [vmem:[#allocation3 + $0x4] sm:$0xf] %v720_v41  ;;  %1212 = vmatpush.msrb.mxu0 %v3612_v42  ;;  %1274 = vmatpush.msrb.mxu3 %v3648_v58 }
 0x24a   :  { %728 = vst [vmem:[#allocation8 + $0xc] sm:$0xf] %v720_v41  ;;  %2916 = vset.pattern.permute.xlu1 %v4972_v14  ;;  %1232 = vmatpush.msrb.mxu1 %v3614_v43  ;;  %v2844_v43 = vld [vmem:[%s4878_s2 + $0x18] sm:$0xf]  ;;  %v5016_v41 = vld [vmem:[#allocation31_spill] sm:$0xff] }
 0x24b   :  { %721 = vst [vmem:[#allocation2] sm:$0xf] %v704_v31  ;;  %1056 = vperm.xlu1 %2916, %v2838_v61   ;;  %2915 = vset.pattern.permute.xlu2 %v4971_v11  ;;  %v5019_v61 = vld [vmem:[#allocation34_spill] sm:$0xff] }
 0x24c   :  { %725 = vst [vmem:[#allocation6 + $0x4] sm:$0xf] %v704_v31  ;;  %1015 = vperm.xlu2 %2915, %v3523_v19   ;;  %1252 = vmatpush.msrb.mxu2 %v3616_v6  ;;  %v5018_v31 = vld [vmem:[#allocation33_spill] sm:$0xff] }
 0x24d   :  { %1213 = vmatpush.msrb.mxu0 %v3624_v47  ;;  %1233 = vmatpush.msrb.mxu1 %v3626_v48 }
 0x24e   :  { %v3823_v22 = vld [vmem:[#allocation3] sm:$0xf]  ;;  %1253 = vmatpush.msrb.mxu2 %v3628_v49  ;;  %1275 = vmatpush.msrb.mxu3 %v3660_v18  ;;  %v5006_v18 = vld [vmem:[#allocation21_spill] sm:$0xff] }
 0x24f   :  { %v755_v8 = vmul.f32 %v748_v59, %v3823_v22  ;;  %v779_v30 = vmul.f32 %v3503_v4, %v3823_v22  ;;  %1214 = vmatpush.msrb.mxu0 %v3640_v55  ;;  %1234 = vmatpush.msrb.mxu1 %v3642_v56  ;;  %v5008_v59 = vld [vmem:[#allocation23_spill] sm:$0xff] }
 0x250   :  { %v3831_v32 = vld [vmem:[#allocation3 + $0x4] sm:$0xf]  ;;  %1254 = vmatpush.msrb.mxu2 %v3644_v57  ;;  %1276 = vmatpush.msrb.mxu3 %v3674_v16  ;;  %v5011_v16 = vld [vmem:[#allocation26_spill] sm:$0xff] }
 0x251   :  { %v757_v33 = vsel %vm72_vm0, %v755_v8, 0.0  ;;  %v780_v34 = vmul.f32 %v777_v29, %v3831_v32  ;;  %v756_v35 = vmul.f32 %v3571_v17, %v3831_v32  ;;  %v781_v36 = vsel %vm72_vm0, %v779_v30, 0.0  ;;  %1215 = vmatpush.msrb.mxu0 %v3652_v60  ;;  %1235 = vmatpush.msrb.mxu1 %v3654_v2  ;;  %v5020_v29 = vld [vmem:[#allocation35_spill] sm:$0xff]  ;;  %v2849_v8 = vld [vmem:[%s4880_s4 + $0x1c] sm:$0xf]  ;;  %v5021_v30 = vld [vmem:[#allocation36_spill] sm:$0xff] }
 0x252   :  { %v758_v4 = vrot.slane %v757_v33, 4  ;;  %v782_v19 = vrot.slane %v781_v36, 4  ;;  %1255 = vmatpush.msrb.mxu2 %v3656_v62  ;;  %v5005_v62 = vld [vmem:[#allocation20_spill] sm:$0xff]  ;;  %1277 = vmatpush.msrb.mxu3 %v5008_v59 }
 0x253   :  { %v788_v5 = vsel %vm72_vm0, %v780_v34, 0.0  ;;  %v764_v37 = vsel %vm72_vm0, %v756_v35, 0.0  ;;  %2918 = vset.pattern.permute.xlu1 %v4971_v11  ;;  %1216 = vmatpush.msrb.mxu0 %v3664_v7  ;;  %v5009_v7 = vld [vmem:[#allocation24_spill] sm:$0xff]  ;;  %v5023_v34 = vld [vmem:[#allocation38_spill] sm:$0xff]  ;;  %v5024_v35 = vld [vmem:[#allocation39_spill] sm:$0xff] }
 0x254   :  { %v759_v17 = vadd.f32 %v758_v4, %v757_v33  ;;  %v789_v38 = vrot.slane %v788_v5, 4  ;;  %v765_v40 = vrot.slane %v764_v37, 4  ;;  %v783_v42 = vadd.f32 %v782_v19, %v781_v36  ;;  %1114 = vperm.xlu1 %2918, %v2844_v43   ;;  %2917 = vset.pattern.permute.xlu2 %v4972_v14  ;;  %v5022_v33 = vld [vmem:[#allocation37_spill] sm:$0xff]  ;;  %v5025_v36 = vld [vmem:[#allocation40_spill] sm:$0xff]  ;;  %v5027_v19 = vld [vmem:[#allocation42_spill] sm:$0xff] }
 0x255   :  { %1089 = vperm.xlu2 %2917, %v2844_v43   ;;  %1236 = vmatpush.msrb.mxu1 %v3666_v9  ;;  %v5026_v4 = vld [vmem:[#allocation41_spill] sm:$0xff] }
 0x256   :  { %v760_v6 = vrot.slane %v759_v17, 2  ;;  %v790_v46 = vadd.f32 %v789_v38, %v788_v5  ;;  %v766_v47 = vadd.f32 %v765_v40, %v764_v37  ;;  %v784_v48 = vrot.slane %v783_v42, 2  ;;  %1256 = vmatpush.msrb.mxu2 %v3668_v12  ;;  %1217 = vmatpush.msrb.mxu0 %v5005_v62  ;;  %v2848_v12 = vld [vmem:[%s4880_s4 + $0x18] sm:$0xf]  ;;  %v5028_v5 = vld [vmem:[#allocation43_spill] sm:$0xff]  ;;  %v5029_v37 = vld [vmem:[#allocation44_spill] sm:$0xff] }
 0x257   :  { %1237 = vmatpush.msrb.mxu1 %v5006_v18  ;;  %1278 = vmatpush.msrb.mxu3 %v5012_v28  ;;  %v2833_v40 = vld [vmem:[%s4876_s0 + $0x8] sm:$0xf] }
 0x258   :  { %v761_v49 = vadd.f32 %v760_v6, %v759_v17  ;;  %v791_v44 = vrot.slane %v790_v46, 2  ;;  %v767_v55 = vrot.slane %v766_v47, 2  ;;  %v785_v56 = vadd.f32 %v784_v48, %v783_v42  ;;  %1257 = vmatpush.msrb.mxu2 %v5007_v24  ;;  %1218 = vmatpush.msrb.mxu0 %v5009_v7 }
 0x259   :  { %1238 = vmatpush.msrb.mxu1 %v5010_v25  ;;  %1279 = vmatpush.msrb.mxu3 %v5017_v15 }
 0x25a   :  { %v762_v57 = vrot.slane %v761_v49, 1  ;;  %v792_v58 = vadd.f32 %v791_v44, %v790_v46  ;;  %v768_v60 = vadd.f32 %v767_v55, %v766_v47  ;;  %v786_v2 = vrot.slane %v785_v56, 1  ;;  %1258 = vmatpush.msrb.mxu2 %v5011_v16  ;;  %1219 = vmatpush.msrb.mxu0 %v5013_v27 }
 0x25b   :  { %1239 = vmatpush.msrb.mxu1 %v5014_v52  ;;  %1280 = vmatpush.msrb.mxu3 %v5021_v30  ;;  %v742_v52 = vld [vmem:[#allocation2] sm:$0xf] }
 0x25c   :  { %v793_v50 = vrot.slane %v792_v58, 1  ;;  %v769_v26 = vrot.slane %v768_v60, 1  ;;  %v763_v9 = vadd.f32 %v762_v57, %v761_v49  ;;  %v787_v53 = vadd.f32 %v786_v2, %v785_v56  ;;  %2920 = vset.pattern.permute.xlu1 %v4972_v14  ;;  %1259 = vmatpush.msrb.mxu2 %v5016_v41 }
 0x25d   :  { %1334 = vperm.xlu1 %2920, %v2848_v12   ;;  %2919 = vset.pattern.permute.xlu2 %v4971_v11 }
 0x25e   :  { %v794_v21 = vadd.f32 %v793_v50, %v792_v58  ;;  %v770_v63 = vadd.f32 %v769_v26, %v768_v60  ;;  %1118 = vperm.xlu2 %2919, %v5015_v45   ;;  %1220 = vmatpush.msrb.mxu0 %v5018_v31 }
 0x25f   :  { %1240 = vmatpush.msrb.mxu1 %v5019_v61  ;;  %1260 = vmatpush.msrb.mxu2 %v5020_v29 }
 0x260   :  { %v3877_v0 = vsel %vm113_vm1, %v770_v63, %v763_v9  ;;  %v3880_v54 = vsel %vm113_vm1, %v794_v21, %v787_v53  ;;  %1221 = vmatpush.msrb.mxu0 %v5022_v33  ;;  %1281 = vmatpush.msrb.mxu3 %v5025_v36 }
 0x261   :  { %883 = vmatmul.f32.vlgmr.msra.gmra.mxu0 %v3877_v0  ;;  %903 = vmatmul.f32.vlgmr.msra.gmra.mxu1 %v3880_v54 }
 0x262   :  { %923 = vmatmul.f32.vlgmr.msra.gmra.mxu2 %v3877_v0  ;;  %943 = vmatmul.f32.vlgmr.msra.gmra.mxu3 %v3880_v54 }
 0x263   :  { %1241 = vmatpush.msrb.mxu1 %v5023_v34  ;;  %1261 = vmatpush.msrb.mxu2 %v5024_v35 }
 0x264   :  { %1222 = vmatpush.msrb.mxu0 %v5026_v4  ;;  %1282 = vmatpush.msrb.mxu3 %v5027_v19 }
 0x265   :  { %2923 = vset.pattern.permute.xlu1 %v4971_v11  ;;  %1242 = vmatpush.msrb.mxu1 %v3756_v20  ;;  %v2847_v20 = vld [vmem:[%s4879_s3 + $0x1c] sm:$0xf] }
 0x266   :  { %1357 = vperm.xlu1 %2923, %v2849_v8   ;;  %1262 = vmatpush.msrb.mxu2 %v3758_v39  ;;  %v3923_v39 = vld [vmem:[%s4878_s2 + $0x20] sm:$0xf] }
 0x267   :  { %1223 = vmatpush.msrb.mxu0 %v3764_v13  ;;  %1243 = vmatpush.msrb.mxu1 %v3766_v10 }
 0x268   :  { %1263 = vmatpush.msrb.mxu2 %v5028_v5  ;;  %1283 = vmatpush.msrb.mxu3 %v5029_v37  ;;  %v5030_v5 = vld [vmem:[#allocation18_spill] sm:$0xff] }
 0x269   :  { %1224 = vmatpush.msrb.mxu0 %v3776_v51  ;;  %1244 = vmatpush.msrb.mxu1 %v3784_v23  ;;  %v2834_v51 = vld [vmem:[%s4877_s1 + $0x4] sm:$0x3] }
 0x26a   :  { %1264 = vmatpush.msrb.mxu2 %v3786_v3  ;;  %1284 = vmatpush.msrb.mxu3 %v3790_v1 }
 0x26b   :  { %1353 = vperm.xlu0 %2922, %v2848_v12   ;;  %2921 = vset.pattern.permute.xlu2 %v4972_v14  ;;  %v975_v12 = vrot.slane %v3880_v54, 6 }
 0x26c   :  { %1339 = vperm.xlu2 %2921, %v2849_v8  }
 0x26d   :  { %v976_v16 = vsel %vm267_vm2, %v3877_v0, %v975_v12 }
 0x26e   :  { %2924 = vset.pattern.permute.xlu1 %v4972_v14 }
 0x26f   :  { %1398 = vperm.xlu1 %2924, %v2847_v20  }
 0x273   :  { %2925 = vset.pattern.permute.xlu0 %v4972_v14 }
 0x277   :  { %2926 = vset.pattern.permute.xlu1 %v4971_v11 }
 0x278   :  { %1456 = vperm.xlu1 %2926, %v3923_v39  }
 0x280   :  { %2928 = vset.pattern.permute.xlu1 %v4972_v14 }
 0x281   :  { %1036 = vperm.xlu1 %2928, %v2834_v51  }
 0x289   :  { %2930 = vset.pattern.permute.xlu1 %v4971_v11 }
 0x29c   :  { %v993_v28 = vpop.permute.xlu2 %992 }
 0x2a6   :  { %v1016_v61 = vpop.permute.xlu2 %1015 }
 0x2b4   :  { %v1012_v1 = vpop.permute.xlu1 %1011 }
 0x2bd   :  { %v3936_v46 = vpop.permute.xlu1 %1056 }
 0x2c6   :  { %v3938_v49 = vpop.permute.xlu1 %1114 }
 0x2cf   :  { %v3940_v57 = vpop.permute.xlu1 %1334 }
 0x2d8   :  { %v3942_v7 = vpop.permute.xlu1 %1357 }
 0x2de   :  { %v884_v13 = vpop.f32.mrf.mxu0  ;;  %v904_v10 = vpop.f32.mrf.mxu1 }
 0x2df   :  { %v905_v38 = vadd.f32 %v904_v10, %v884_v13 }
 0x2e1   :  { %v3947_v21 = vpop.permute.xlu1 %1398 }
 0x2e5   :  { %v924_v23 = vpop.f32.mrf.mxu2  ;;  %v944_v3 = vpop.f32.mrf.mxu3 }
 0x2e6   :  { %v945_v17 = vadd.f32 %v944_v3, %v924_v23 }
 0x2e8   :  { %v949_v42 = vrot.slane %v945_v17, 6  ;;  %v2854_v17 = vld [vmem:[%s4878_s2 + $0x24] sm:$0xf] }
 0x2e9   :  { %1436 = vperm.xlu0 %2925, %v2854_v17  }
 0x2ea   :  { %v950_v43 = vsel %vm267_vm2, %v905_v38, %v949_v42  ;;  %v3949_v27 = vpop.permute.xlu1 %1456 }
 0x2eb   :  { %v952_v6 = vadd.f32 %v2833_v40, %v950_v43 }
 0x2ed   :  { %v2841_v47 = vmul.f32 -1.442695, %v952_v6  ;;  %v1090_v6 = vpop.permute.xlu2 %1089 }
 0x2ef   :  { %2970 = vpow2.f32 %v2841_v47 }
 0x2f3   :  { %v1037_v51 = vpop.permute.xlu1 %1036 }
 0x2f5   :  { %v2971_v48 = vpop.eup %2970 }
 0x2f6   :  { %v956_v44 = vadd.f32 1.0, %v2971_v48 }
 0x2f8   :  { %2972 = vrcp.f32 %v956_v44  ;;  %v968_v60 = vand.u32 2147483648, %v956_v44  ;;  %v966_v62 = vand.u32 2147483647, %v956_v44  ;;  %vm962_vm12 = vweird.f32 %v956_v44 }
 0x2fa   :  { %v969_v24 = vor.u32 1.1754944e-38, %v968_v60  ;;  %vm967_vm14 = vcmp.eq.f32.partialorder %v966_v62, 8.507059e+37 }
 0x2fe   :  { %v2973_v55 = vpop.eup %2972 }
 0x2ff   :  { %v958_v56 = vmul.f32 %v2973_v55, %v956_v44  ;;  %vm963_vm11 = vweird.f32 %v2973_v55 }
 0x300   :  { %vm964_vm13 = vmor %vm962_vm12, %vm963_vm11 }
 0x301   :  { %v959_v58 = vsub.f32 1.0, %v958_v56 }
 0x303   :  { %v960_v2 = vmul.f32 %v2973_v55, %v959_v58 }
 0x305   :  { %v961_v18 = vadd.f32 %v2973_v55, %v960_v2  ;;  %v3970_v2 = vld [vmem:[%s4880_s4 + $0x24] sm:$0xf] }
 0x306   :  { %1681 = vperm.xlu0 %2925, %v3970_v2  }
 0x307   :  { %v965_v50 = vsel %vm964_vm13, %v2973_v55, %v961_v18 }
 0x308   :  { %v970_v26 = vsel %vm967_vm14, %v969_v24, %v965_v50  ;;  %v2855_v24 = vld [vmem:[%s4879_s3 + $0x20] sm:$0xf] }
 0x309   :  { %v972_v59 = vmul.f32 %v970_v26, %v950_v43  ;;  %v2846_v43 = vld [vmem:[%s4879_s3 + $0x18] sm:$0xf] }
 0x30a   :  { %1393 = vperm.xlu2 %2921, %v2846_v43  }
 0x30b   :  { %v973_v9 = vadd.f32 %v2833_v40, %v972_v59 }
 0x30d   :  { %2974 = vtanh.f32 %v973_v9 }
 0x30e   :  { %1735 = vperm.xlu0 %2925, %v2855_v24  }
 0x312   :  { %1431 = vperm.xlu2 %2921, %v3923_v39   ;;  %v5032_v39 = vld [vmem:[#allocation27_spill] sm:$0xff] }
 0x313   :  { %v2975_v25 = vpop.eup %2974 }
 0x314   :  { %v978_v63 = vsub.f32 %v2975_v25, %v976_v16 }
 0x316   :  { %v979_v53 = vmul.f32 %v978_v63, %v970_v26 }
 0x318   :  { %981 = vst [vmem:[#allocation1] ss:$4 sm:$0xff] %v979_v53 }
 0x31a   :  { %2927 = vset.pattern.permute.xlu2 %v4971_v11 }
 0x31b   :  { %1460 = vperm.xlu2 %2927, %v2854_v17  }
 0x31f   :  { %v982_v45 = vld.sshfl [vmem:[#allocation1] sm:$0xff pattern:$0x73625140]  ;;  %v983_v41 = vld.sshfl [vmem:[#allocation1 + $0x8] sm:$0xff pattern:$0x73625140] }
 0x320   :  { %1027 = vst [vmem:[#allocation1] ss:$4 sm:$0xff] %v742_v52  ;;  %v987_v15 = vadd.f32 %v983_v41, %v3880_v54  ;;  %v986_v31 = vadd.f32 %v982_v45, %v3877_v0 }
 0x322   :  { %v1018_v29 = vperm.slane %v987_v15, 0  ;;  %v1000_v8 = vperm.slane %v986_v31, 0  ;;  %v989_v30 = vrot.slane %v986_v31, 1  ;;  %v1009_v33 = vrot.slane %v987_v15, 1 }
 0x323   :  { %2929 = vset.pattern.permute.xlu2 %v4972_v14 }
 0x324   :  { %v1022_v34 = vmul.f32 %v1018_v29, %v1012_v1  ;;  %v1004_v35 = vmul.f32 %v1000_v8, %v993_v28  ;;  %v1001_v36 = vperm.slane %v989_v30, 0  ;;  %v1019_v4 = vperm.slane %v1009_v33, 0  ;;  %v5031_v1 = vld [vmem:[#allocation19_spill] sm:$0xff]  ;;  %v3995_v33 = vld [vmem:[%s4878_s2 + $0x2c] sm:$0xf] }
 0x325   :  { %5033 = vst [vmem:[#allocation20_spill] sm:$0xff] %v3995_v33  ;;  %1778 = vperm.xlu0 %2925, %v3995_v33   ;;  %v4172_v33 = vld [vmem:[#allocation4 + $0x40] sm:$0xff] }
 0x326   :  { %v1024_v19 = vadd.f32 %v1022_v34, %v1004_v35  ;;  %v1005_v37 = vmul.f32 %v1001_v36, %v5030_v5  ;;  %v1023_v20 = vmul.f32 %v1019_v4, %v1016_v61  ;;  %5049 = vst [vmem:[#allocation36_spill] sm:$0xff] %v4172_v33 }
 0x327   :  { %v1028_v13 = vld.sshfl [vmem:[#allocation1] sm:$0xff pattern:$0x73625140]  ;;  %v1029_v10 = vld.sshfl [vmem:[#allocation1 + $0x8] sm:$0xff pattern:$0x73625140] }
 0x328   :  { %v1047_v54 = vsub.f32 %v1024_v19, %v3823_v22  ;;  %v1025_v23 = vadd.f32 %v1023_v20, %v1005_v37  ;;  %v1032_v0 = vsub.f32 %v986_v31, %v1028_v13  ;;  %v1033_v3 = vsub.f32 %v987_v15, %v1029_v10 }
 0x32a   :  { %v1059_v38 = vmul.f32 %v5031_v1, %v1047_v54  ;;  %v1048_v40 = vsub.f32 %v1025_v23, %v3831_v32  ;;  %v1040_v42 = vmul.f32 %v1037_v51, %v1033_v3  ;;  %v1039_v44 = vmul.f32 %v1037_v51, %v1032_v0  ;;  %v2843_v23 = vld [vmem:[%s4877_s1 + $0x6] sm:$0x3] }
 0x32c   :  { %v1061_v47 = vadd.f32 %v1059_v38, %v3823_v22  ;;  %v1060_v48 = vmul.f32 %v3936_v46, %v1048_v40  ;;  %v1043_v55 = vrot.slane %v1040_v42, 6  ;;  %v2842_v42 = vld [vmem:[%s4876_s0 + $0xc] sm:$0xf] }
 0x32d   :  { %1378 = vperm.xlu0 %2925, %v2843_v23   ;;  %v4084_v23 = vld [vmem:[#allocation4 + $0x1b8] sm:$0xff] }
 0x32e   :  { %1064 = vst [vmem:[#allocation3] sm:$0xf] %v1061_v47  ;;  %v1062_v56 = vadd.f32 %v1060_v48, %v3831_v32  ;;  %v1044_v58 = vsel %vm267_vm2, %v1039_v44, %v1043_v55  ;;  %v1119_v32 = vpop.permute.xlu2 %1118  ;;  %v4017_v55 = vpop.permute.xlu0 %1353 }
 0x32f   :  { %1069 = vst [vmem:[#allocation8 + $0x10] sm:$0xf] %v1061_v47  ;;  %v1046_v60 = vadd.f32 %v1044_v58, %v742_v52 }
 0x330   :  { %1065 = vst [vmem:[#allocation3 + $0x4] sm:$0xf] %v1062_v56 }
 0x331   :  { %1070 = vst [vmem:[#allocation8 + $0x14] sm:$0xf] %v1062_v56 }
 0x332   :  { %1063 = vst [vmem:[#allocation2] sm:$0xf] %v1046_v60 }
 0x333   :  { %1067 = vst [vmem:[#allocation6 + $0x8] sm:$0xf] %v1046_v60 }
 0x335   :  { %v3974_v22 = vld [vmem:[#allocation3] sm:$0xf]  ;;  %2938 = vset.pattern.permute.xlu0 %v4971_v11 }
 0x336   :  { %v1097_v46 = vmul.f32 %v1090_v6, %v3974_v22  ;;  %v1121_v62 = vmul.f32 %v3938_v49, %v3974_v22 }
 0x337   :  { %v3979_v18 = vld [vmem:[#allocation3 + $0x4] sm:$0xf] }
 0x338   :  { %v1099_v50 = vsel %vm72_vm0, %v1097_v46, 0.0  ;;  %v1122_v26 = vmul.f32 %v1119_v32, %v3979_v18  ;;  %v1098_v59 = vmul.f32 %v5032_v39, %v3979_v18  ;;  %v1123_v9 = vsel %vm72_vm0, %v1121_v62, 0.0 }
 0x339   :  { %v1100_v12 = vrot.slane %v1099_v50, 4  ;;  %v1124_v25 = vrot.slane %v1123_v9, 4 }
 0x33a   :  { %v1130_v16 = vsel %vm72_vm0, %v1122_v26, 0.0  ;;  %v1106_v49 = vsel %vm72_vm0, %v1098_v59, 0.0 }
 0x33b   :  { %v1101_v63 = vadd.f32 %v1100_v12, %v1099_v50  ;;  %v1131_v53 = vrot.slane %v1130_v16, 4  ;;  %v1107_v28 = vrot.slane %v1106_v49, 4  ;;  %v1125_v52 = vadd.f32 %v1124_v25, %v1123_v9 }
 0x33d   :  { %v1102_v45 = vrot.slane %v1101_v63, 2  ;;  %v1132_v41 = vadd.f32 %v1131_v53, %v1130_v16  ;;  %v1108_v15 = vadd.f32 %v1107_v28, %v1106_v49  ;;  %v1126_v31 = vrot.slane %v1125_v52, 2  ;;  %v4023_v16 = vld [vmem:[#allocation4 + $0xf0] sm:$0xff]  ;;  %v4031_v28 = vld [vmem:[#allocation4 + $0x1f8] sm:$0xff] }
 0x33e   :  { %v4025_v49 = vld [vmem:[#allocation4 + $0x1f0] sm:$0xff]  ;;  %1551 = vmatpush.msra.mxu0 %v4023_v16  ;;  %1611 = vmatpush.msra.mxu3 %v4031_v28 }
 0x33f   :  { %v1103_v61 = vadd.f32 %v1102_v45, %v1101_v63  ;;  %v1133_v29 = vrot.slane %v1132_v41, 2  ;;  %v1109_v8 = vrot.slane %v1108_v15, 2  ;;  %v1127_v30 = vadd.f32 %v1126_v31, %v1125_v52  ;;  %v4027_v63 = vld [vmem:[#allocation4 + $0xf8] sm:$0xff]  ;;  %1571 = vmatpush.msra.mxu1 %v4025_v49  ;;  %v4035_v52 = vld [vmem:[#allocation4 + $0xe0] sm:$0xff]  ;;  %v4047_v31 = vld [vmem:[#allocation4 + $0xd0] sm:$0xff] }
 0x340   :  { %1591 = vmatpush.msra.mxu2 %v4027_v63  ;;  %v4037_v45 = vld [vmem:[#allocation4 + $0x1e0] sm:$0xff]  ;;  %1552 = vmatpush.msra.mxu0 %v4035_v52 }
 0x341   :  { %v1104_v34 = vrot.slane %v1103_v61, 1  ;;  %v1134_v35 = vadd.f32 %v1133_v29, %v1132_v41  ;;  %v1110_v36 = vadd.f32 %v1109_v8, %v1108_v15  ;;  %v1128_v4 = vrot.slane %v1127_v30, 1  ;;  %v4039_v41 = vld [vmem:[#allocation4 + $0xe8] sm:$0xff]  ;;  %1572 = vmatpush.msra.mxu1 %v4037_v45  ;;  %v4051_v29 = vld [vmem:[#allocation4 + $0xd8] sm:$0xff] }
 0x342   :  { %v4043_v15 = vld [vmem:[#allocation4 + $0x1e8] sm:$0xff]  ;;  %1592 = vmatpush.msra.mxu2 %v4039_v41  ;;  %1553 = vmatpush.msra.mxu0 %v4047_v31 }
 0x343   :  { %v1135_v19 = vrot.slane %v1134_v35, 1  ;;  %v1111_v5 = vrot.slane %v1110_v36, 1  ;;  %v1105_v37 = vadd.f32 %v1104_v34, %v1103_v61  ;;  %v1129_v13 = vadd.f32 %v1128_v4, %v1127_v30  ;;  %1612 = vmatpush.msra.mxu3 %v4043_v15  ;;  %v4049_v61 = vld [vmem:[#allocation4 + $0x1d0] sm:$0xff]  ;;  %v4056_v30 = vld [vmem:[#allocation4 + $0x1d8] sm:$0xff]  ;;  %v4060_v34 = vld [vmem:[#allocation4 + $0xc0] sm:$0xff] }
 0x344   :  { %1573 = vmatpush.msra.mxu1 %v4049_v61  ;;  %1593 = vmatpush.msra.mxu2 %v4051_v29  ;;  %v4068_v4 = vld [vmem:[#allocation4 + $0x1c8] sm:$0xff] }
 0x345   :  { %v1136_v20 = vadd.f32 %v1135_v19, %v1134_v35  ;;  %v1112_v51 = vadd.f32 %v1111_v5, %v1110_v36  ;;  %1613 = vmatpush.msra.mxu3 %v4056_v30  ;;  %v4062_v35 = vld [vmem:[#allocation4 + $0x1c0] sm:$0xff]  ;;  %v4064_v36 = vld [vmem:[#allocation4 + $0xc8] sm:$0xff]  ;;  %1554 = vmatpush.msra.mxu0 %v4060_v34  ;;  %v4072_v19 = vld [vmem:[#allocation4 + $0xb0] sm:$0xff] }
 0x346   :  { %1574 = vmatpush.msra.mxu1 %v4062_v35  ;;  %1594 = vmatpush.msra.mxu2 %v4064_v36  ;;  %v4074_v5 = vld [vmem:[#allocation4 + $0x1b0] sm:$0xff] }
 0x347   :  { %v4000_v10 = vsel %vm113_vm1, %v1112_v51, %v1105_v37  ;;  %v4003_v54 = vsel %vm113_vm1, %v1136_v20, %v1129_v13  ;;  %1614 = vmatpush.msra.mxu3 %v4068_v4  ;;  %v4076_v37 = vld [vmem:[#allocation4 + $0xb8] sm:$0xff]  ;;  %1555 = vmatpush.msra.mxu0 %v4072_v19 }
 0x348   :  { %1225 = vmatmul.f32.vlgmr.msrb.gmra.mxu0 %v4000_v10  ;;  %1245 = vmatmul.f32.vlgmr.msrb.gmra.mxu1 %v4003_v54  ;;  %v1317_v8 = vrot.slane %v4003_v54, 6 }
 0x349   :  { %1265 = vmatmul.f32.vlgmr.msrb.gmra.mxu2 %v4000_v10  ;;  %1285 = vmatmul.f32.vlgmr.msrb.gmra.mxu3 %v4003_v54 }
 0x34a   :  { %v1318_v51 = vsel %vm267_vm2, %v4000_v10, %v1317_v8  ;;  %1575 = vmatpush.msra.mxu1 %v4074_v5  ;;  %1595 = vmatpush.msra.mxu2 %v4076_v37  ;;  %v4154_v8 = vld [vmem:[#allocation4 + $0x50] sm:$0xff] }
 0x34b   :  { %1615 = vmatpush.msra.mxu3 %v4084_v23  ;;  %5045 = vst [vmem:[#allocation32_spill] sm:$0xff] %v4154_v8 }
 0x35b   :  { %v4019_v32 = vpop.permute.xlu0 %1436 }
 0x378   :  { %v4021_v25 = vpop.permute.xlu0 %1681 }
 0x379   :  { %5034 = vst [vmem:[#allocation21_spill] sm:$0xff] %v4021_v25  ;;  %v4170_v25 = vld [vmem:[#allocation4 + $0x158] sm:$0xff] }
 0x37a   :  { %5048 = vst [vmem:[#allocation35_spill] sm:$0xff] %v4170_v25 }
 0x380   :  { %v4080_v13 = vpop.permute.xlu0 %1735 }
 0x381   :  { %5035 = vst [vmem:[#allocation22_spill] sm:$0xff] %v4080_v13 }
 0x3c5   :  { %v1226_v0 = vpop.f32.mrf.mxu0  ;;  %v1246_v3 = vpop.f32.mrf.mxu1 }
 0x3c6   :  { %v1247_v40 = vadd.f32 %v1246_v3, %v1226_v0  ;;  %v4088_v3 = vld [vmem:[#allocation4 + $0xa0] sm:$0xff] }
 0x3c7   :  { %1556 = vmatpush.msra.mxu0 %v4088_v3 }
 0x3cc   :  { %v1266_v17 = vpop.f32.mrf.mxu2  ;;  %v1286_v1 = vpop.f32.mrf.mxu3 }
 0x3cd   :  { %v1287_v38 = vadd.f32 %v1286_v1, %v1266_v17  ;;  %v4090_v17 = vld [vmem:[#allocation4 + $0x1a0] sm:$0xff]  ;;  %v4092_v1 = vld [vmem:[#allocation4 + $0xa8] sm:$0xff] }
 0x3ce   :  { %1576 = vmatpush.msra.mxu1 %v4090_v17  ;;  %1596 = vmatpush.msra.mxu2 %v4092_v1 }
 0x3cf   :  { %v1291_v43 = vrot.slane %v1287_v38, 6  ;;  %v4096_v38 = vld [vmem:[#allocation4 + $0x1a8] sm:$0xff] }
 0x3d0   :  { %1616 = vmatpush.msra.mxu3 %v4096_v38 }
 0x3d1   :  { %v1292_v6 = vsel %vm267_vm2, %v1247_v40, %v1291_v43  ;;  %v4102_v43 = vld [vmem:[#allocation4 + $0x190] sm:$0xff] }
 0x3d2   :  { %v1294_v47 = vadd.f32 %v2842_v42, %v1292_v6  ;;  %1577 = vmatpush.msra.mxu1 %v4102_v43 }
 0x3d4   :  { %v2850_v48 = vmul.f32 -1.442695, %v1294_v47  ;;  %v4108_v47 = vld [vmem:[#allocation4 + $0x198] sm:$0xff] }
 0x3d5   :  { %1617 = vmatpush.msra.mxu3 %v4108_v47 }
 0x3d6   :  { %2976 = vpow2.f32 %v2850_v48  ;;  %v4112_v48 = vld [vmem:[#allocation4 + $0x80] sm:$0xff] }
 0x3dc   :  { %v2977_v44 = vpop.eup %2976 }
 0x3dd   :  { %v1298_v56 = vadd.f32 1.0, %v2977_v44  ;;  %v4114_v44 = vld [vmem:[#allocation4 + $0x180] sm:$0xff] }
 0x3de   :  { %1578 = vmatpush.msra.mxu1 %v4114_v44 }
 0x3df   :  { %2978 = vrcp.f32 %v1298_v56  ;;  %v1310_v62 = vand.u32 2147483648, %v1298_v56  ;;  %v1308_v50 = vand.u32 2147483647, %v1298_v56  ;;  %vm1304_vm3 = vweird.f32 %v1298_v56 }
 0x3e1   :  { %v1311_v39 = vor.u32 1.1754944e-38, %v1310_v62  ;;  %vm1309_vm5 = vcmp.eq.f32.partialorder %v1308_v50, 8.507059e+37  ;;  %v4128_v62 = vld [vmem:[#allocation4 + $0x170] sm:$0xff]  ;;  %v4134_v50 = vld [vmem:[#allocation4 + $0x178] sm:$0xff] }
 0x3e2   :  { %5037 = vst [vmem:[#allocation24_spill] sm:$0xff] %v4128_v62  ;;  %1579 = vmatpush.msra.mxu1 %v4128_v62  ;;  %v4204_v62 = vld [vmem:[#allocation4 + $0x120] sm:$0xff] }
 0x3e3   :  { %5039 = vst [vmem:[#allocation26_spill] sm:$0xff] %v4134_v50 }
 0x3e5   :  { %v2979_v58 = vpop.eup %2978 }
 0x3e6   :  { %v1300_v60 = vmul.f32 %v2979_v58, %v1298_v56  ;;  %vm1305_vm15 = vweird.f32 %v2979_v58  ;;  %v4116_v56 = vld [vmem:[#allocation4 + $0x88] sm:$0xff] }
 0x3e7   :  { %vm1306_vm4 = vmor %vm1304_vm3, %vm1305_vm15 }
 0x3e8   :  { %v1301_v46 = vsub.f32 1.0, %v1300_v60  ;;  %v4122_v60 = vld [vmem:[#allocation4 + $0x188] sm:$0xff] }
 0x3e9   :  { %1618 = vmatpush.msra.mxu3 %v4122_v60 }
 0x3ea   :  { %v1302_v24 = vmul.f32 %v2979_v58, %v1301_v46  ;;  %v4126_v46 = vld [vmem:[#allocation4 + $0x70] sm:$0xff] }
 0x3eb   :  { %5036 = vst [vmem:[#allocation23_spill] sm:$0xff] %v4126_v46  ;;  %1619 = vmatpush.msra.mxu3 %v4134_v50 }
 0x3ec   :  { %v1303_v26 = vadd.f32 %v2979_v58, %v1302_v24  ;;  %v4130_v24 = vld [vmem:[#allocation4 + $0x78] sm:$0xff] }
 0x3ed   :  { %5038 = vst [vmem:[#allocation25_spill] sm:$0xff] %v4130_v24 }
 0x3ee   :  { %v1307_v59 = vsel %vm1306_vm4, %v2979_v58, %v1303_v26  ;;  %v4118_v58 = vpop.permute.xlu2 %1339  ;;  %v4138_v26 = vld [vmem:[#allocation4 + $0x60] sm:$0xff] }
 0x3ef   :  { %v1312_v9 = vsel %vm1309_vm5, %v1311_v39, %v1307_v59  ;;  %5040 = vst [vmem:[#allocation28_spill] sm:$0xff] %v4138_v26  ;;  %v4140_v39 = vld [vmem:[#allocation4 + $0x160] sm:$0xff]  ;;  %v4142_v59 = vld [vmem:[#allocation4 + $0x68] sm:$0xff] }
 0x3f0   :  { %v1314_v12 = vmul.f32 %v1312_v9, %v1292_v6  ;;  %v4104_v6 = vld [vmem:[#allocation4 + $0x98] sm:$0xff]  ;;  %5041 = vst [vmem:[#allocation29_spill] sm:$0xff] %v4140_v39  ;;  %1580 = vmatpush.msra.mxu1 %v4140_v39 }
 0x3f1   :  { %1597 = vmatpush.msra.mxu2 %v4104_v6  ;;  %5042 = vst [vmem:[#allocation30_spill] sm:$0xff] %v4142_v59  ;;  %v4196_v39 = vld [vmem:[#allocation4 + $0x138] sm:$0xff] }
 0x3f2   :  { %v1315_v53 = vadd.f32 %v2842_v42, %v1314_v12  ;;  %v4100_v42 = vld [vmem:[#allocation4 + $0x90] sm:$0xff]  ;;  %5056 = vst [vmem:[#allocation43_spill] sm:$0xff] %v4196_v39 }
 0x3f3   :  { %1557 = vmatpush.msra.mxu0 %v4100_v42  ;;  %1598 = vmatpush.msra.mxu2 %v4116_v56  ;;  %v4146_v12 = vld [vmem:[#allocation2] sm:$0xf] }
 0x3f4   :  { %2980 = vtanh.f32 %v1315_v53  ;;  %v4150_v53 = vld [vmem:[#allocation4 + $0x168] sm:$0xff] }
 0x3f5   :  { %1558 = vmatpush.msra.mxu0 %v4112_v48  ;;  %1599 = vmatpush.msra.mxu2 %v4130_v24  ;;  %5044 = vst [vmem:[#allocation31_spill] sm:$0xff] %v4150_v53 }
 0x3f6   :  { %1620 = vmatpush.msra.mxu3 %v4150_v53  ;;  %v4174_v53 = vld [vmem:[#allocation4 + $0x140] sm:$0xff] }
 0x3f7   :  { %1559 = vmatpush.msra.mxu0 %v4126_v46  ;;  %1600 = vmatpush.msra.mxu2 %v4142_v59  ;;  %5050 = vst [vmem:[#allocation37_spill] sm:$0xff] %v4174_v53  ;;  %v4194_v59 = vld [vmem:[#allocation4 + $0x38] sm:$0xff] }
 0x3f8   :  { %1621 = vmatpush.msra.mxu3 %v4170_v25  ;;  %v4190_v25 = vld [vmem:[#allocation4 + $0x130] sm:$0xff]  ;;  %5055 = vst [vmem:[#allocation42_spill] sm:$0xff] %v4194_v59 }
 0x3f9   :  { %1560 = vmatpush.msra.mxu0 %v4138_v26  ;;  %5054 = vst [vmem:[#allocation41_spill] sm:$0xff] %v4190_v25 }
 0x3fa   :  { %v2981_v20 = vpop.eup %2980 }
 0x3fb   :  { %v1320_v0 = vsub.f32 %v2981_v20, %v1318_v51  ;;  %v4156_v20 = vld [vmem:[#allocation4 + $0x150] sm:$0xff]  ;;  %v4158_v51 = vld [vmem:[#allocation4 + $0x58] sm:$0xff]  ;;  %1561 = vmatpush.msra.mxu0 %v4154_v8 }
 0x3fc   :  { %5046 = vst [vmem:[#allocation33_spill] sm:$0xff] %v4156_v20  ;;  %1581 = vmatpush.msra.mxu1 %v4156_v20  ;;  %1601 = vmatpush.msra.mxu2 %v4158_v51  ;;  %v4178_v20 = vld [vmem:[#allocation4 + $0x48] sm:$0xff]  ;;  %v4188_v8 = vld [vmem:[#allocation4 + $0x30] sm:$0xff] }
 0x3fd   :  { %v1321_v40 = vmul.f32 %v1320_v0, %v1312_v9  ;;  %v4144_v9 = vpop.permute.xlu0 %1778  ;;  %5047 = vst [vmem:[#allocation34_spill] sm:$0xff] %v4158_v51  ;;  %1562 = vmatpush.msra.mxu0 %v4172_v33  ;;  %v1394_v33 = vpop.permute.xlu2 %1393 }
 0x3fe   :  { %5043 = vst [vmem:[#allocation17_spill] sm:$0xff] %v4144_v9  ;;  %1582 = vmatpush.msra.mxu1 %v4174_v53  ;;  %1602 = vmatpush.msra.mxu2 %v4178_v20 }
 0x3ff   :  { %1323 = vst [vmem:[#allocation1] ss:$4 sm:$0xff] %v1321_v40  ;;  %1563 = vmatpush.msra.mxu0 %v4188_v8 }
 0x400   :  { %5051 = vst [vmem:[#allocation38_spill] sm:$0xff] %v4178_v20  ;;  %1583 = vmatpush.msra.mxu1 %v4190_v25  ;;  %1603 = vmatpush.msra.mxu2 %v4194_v59  ;;  %v4202_v20 = vld [vmem:[#allocation4 + $0x20] sm:$0xff] }
 0x401   :  { %5053 = vst [vmem:[#allocation40_spill] sm:$0xff] %v4188_v8  ;;  %1564 = vmatpush.msra.mxu0 %v4202_v20  ;;  %v4210_v8 = vld [vmem:[#allocation4 + $0x128] sm:$0xff] }
 0x402   :  { %5057 = vst [vmem:[#allocation44_spill] sm:$0xff] %v4202_v20  ;;  %1584 = vmatpush.msra.mxu1 %v4204_v62  ;;  %v4224_v20 = vld [vmem:[#allocation4] sm:$0xff] }
 0x403   :  { %5058 = vst [vmem:[#allocation18_spill] sm:$0xff] %v4210_v8 }
 0x405   :  { %v1379_v59 = vpop.permute.xlu0 %1378 }
 0x406   :  { %v1324_v0 = vld.sshfl [vmem:[#allocation1] sm:$0xff pattern:$0x73625140]  ;;  %v1325_v40 = vld.sshfl [vmem:[#allocation1 + $0x8] sm:$0xff pattern:$0x73625140] }
 0x407   :  { %v4163_v9 = vadd.f32 %v1324_v0, %v4000_v10  ;;  %v4166_v13 = vadd.f32 %v1325_v40, %v4003_v54  ;;  %1369 = vst [vmem:[#allocation1] ss:$4 sm:$0xff] %v4146_v12  ;;  %v4180_v10 = vld [vmem:[#allocation4 + $0x148] sm:$0xff] }
 0x408   :  { %5052 = vst [vmem:[#allocation39_spill] sm:$0xff] %v4180_v10  ;;  %1622 = vmatpush.msra.mxu3 %v4180_v10  ;;  %v4206_v10 = vld [vmem:[#allocation4 + $0x28] sm:$0xff] }
 0x409   :  { %v1342_v54 = vperm.slane %v4163_v9, 0  ;;  %v1360_v0 = vperm.slane %v4166_v13, 0  ;;  %v1331_v40 = vrot.slane %v4163_v9, 1  ;;  %v1351_v51 = vrot.slane %v4166_v13, 1  ;;  %1604 = vmatpush.msra.mxu2 %v4206_v10 }
 0x40a   :  { %1623 = vmatpush.msra.mxu3 %v4196_v39  ;;  %v4222_v39 = vld [vmem:[#allocation4 + $0x118] sm:$0xff] }
 0x40b   :  { %v1346_v26 = vmul.f32 %v1342_v54, %v3940_v57  ;;  %v1364_v50 = vmul.f32 %v1360_v0, %v4017_v55  ;;  %v1343_v53 = vperm.slane %v1331_v40, 0  ;;  %v1361_v24 = vperm.slane %v1351_v51, 0  ;;  %v4212_v57 = vld [vmem:[#allocation4 + $0x10] sm:$0xff]  ;;  %v4220_v40 = vld [vmem:[#allocation4 + $0x18] sm:$0xff]  ;;  %5060 = vst [vmem:[#allocation27_spill] sm:$0xff] %v4222_v39 }
 0x40c   :  { %v4214_v55 = vld [vmem:[#allocation4 + $0x110] sm:$0xff]  ;;  %5059 = vst [vmem:[#allocation19_spill] sm:$0xff] %v4220_v40  ;;  %1624 = vmatpush.msra.mxu3 %v4210_v8  ;;  %1565 = vmatpush.msra.mxu0 %v4212_v57  ;;  %v4238_v8 = vld [vmem:[#allocation4 + $0x108] sm:$0xff] }
 0x40d   :  { %v1366_v51 = vadd.f32 %v1364_v50, %v1346_v26  ;;  %v1347_v54 = vmul.f32 %v1343_v53, %v4118_v58  ;;  %v1365_v0 = vmul.f32 %v1361_v24, %v3942_v7  ;;  %1585 = vmatpush.msra.mxu1 %v4214_v55  ;;  %v4232_v26 = vld [vmem:[#allocation4 + $0x100] sm:$0xff]  ;;  %v4234_v53 = vld [vmem:[#allocation4 + $0x8] sm:$0xff]  ;;  %1605 = vmatpush.msra.mxu2 %v4220_v40  ;;  %v1432_v40 = vpop.permute.xlu2 %1431 }
 0x40e   :  { %v1370_v25 = vld.sshfl [vmem:[#allocation1] sm:$0xff pattern:$0x73625140]  ;;  %v1371_v46 = vld.sshfl [vmem:[#allocation1 + $0x8] sm:$0xff pattern:$0x73625140]  ;;  %1625 = vmatpush.msra.mxu3 %v4222_v39  ;;  %1566 = vmatpush.msra.mxu0 %v4224_v20 }
 0x40f   :  { %v1367_v58 = vadd.f32 %v1365_v0, %v1347_v54  ;;  %v1389_v7 = vsub.f32 %v1366_v51, %v3974_v22  ;;  %v1374_v24 = vsub.f32 %v4163_v9, %v1370_v25  ;;  %v1375_v50 = vsub.f32 %v4166_v13, %v1371_v46  ;;  %v2857_v51 = vld [vmem:[%s4880_s4 + $0x20] sm:$0xf]  ;;  %1586 = vmatpush.msra.mxu1 %v4232_v26 }
 0x410   :  { %1606 = vmatpush.msra.mxu2 %v4234_v53  ;;  %1626 = vmatpush.msra.mxu3 %v4238_v8 }
 0x411   :  { %v1390_v25 = vsub.f32 %v1367_v58, %v3979_v18  ;;  %v1401_v9 = vmul.f32 %v1394_v33, %v1389_v7  ;;  %v1382_v13 = vmul.f32 %v1379_v59, %v1375_v50  ;;  %v1381_v0 = vmul.f32 %v1379_v59, %v1374_v24  ;;  %1695 = vperm.xlu1 %2930, %v2857_v51   ;;  %v5066_v7 = vld [vmem:[#allocation29_spill] sm:$0xff] }
 0x412   :  { %1676 = vperm.xlu2 %2929, %v2857_v51   ;;  %1893 = vmatpush.msrb.mxu0 %v4023_v16 }
 0x413   :  { %v1402_v46 = vmul.f32 %v3947_v21, %v1390_v25  ;;  %v1403_v54 = vadd.f32 %v1401_v9, %v3974_v22  ;;  %v1385_v39 = vrot.slane %v1382_v13, 6  ;;  %1913 = vmatpush.msrb.mxu1 %v4025_v49  ;;  %1933 = vmatpush.msrb.mxu2 %v4027_v63  ;;  %v2856_v22 = vld [vmem:[%s4879_s3 + $0x24] sm:$0xf]  ;;  %v5069_v9 = vld [vmem:[#allocation32_spill] sm:$0xff]  ;;  %v5070_v13 = vld [vmem:[#allocation33_spill] sm:$0xff] }
 0x414   :  { %1953 = vmatpush.msrb.mxu3 %v4031_v28  ;;  %1894 = vmatpush.msrb.mxu0 %v4035_v52  ;;  %v5068_v25 = vld [vmem:[#allocation31_spill] sm:$0xff] }
 0x415   :  { %v1404_v33 = vadd.f32 %v1402_v46, %v3979_v18  ;;  %1406 = vst [vmem:[#allocation3] sm:$0xf] %v1403_v54  ;;  %v1386_v58 = vsel %vm267_vm2, %v1381_v0, %v1385_v39  ;;  %1914 = vmatpush.msrb.mxu1 %v4037_v45  ;;  %1934 = vmatpush.msrb.mxu2 %v4039_v41  ;;  %v1461_v16 = vpop.permute.xlu2 %1460  ;;  %v5063_v39 = vld [vmem:[#allocation25_spill] sm:$0xff]  ;;  %v5071_v0 = vld [vmem:[#allocation20_spill] sm:$0xff] }
 0x416   :  { %1411 = vst [vmem:[#allocation8 + $0x18] sm:$0xf] %v1403_v54  ;;  %v1388_v21 = vadd.f32 %v1386_v58, %v4146_v12  ;;  %1954 = vmatpush.msrb.mxu3 %v4043_v15  ;;  %1895 = vmatpush.msrb.mxu0 %v4047_v31  ;;  %v5073_v58 = vld [vmem:[#allocation35_spill] sm:$0xff] }
 0x417   :  { %1407 = vst [vmem:[#allocation3 + $0x4] sm:$0xf] %v1404_v33  ;;  %1915 = vmatpush.msrb.mxu1 %v4049_v61  ;;  %1935 = vmatpush.msrb.mxu2 %v4051_v29 }
 0x418   :  { %1412 = vst [vmem:[#allocation8 + $0x1c] sm:$0xf] %v1404_v33  ;;  %1955 = vmatpush.msrb.mxu3 %v4056_v30  ;;  %1896 = vmatpush.msrb.mxu0 %v4060_v34  ;;  %v5072_v33 = vld [vmem:[#allocation34_spill] sm:$0xff] }
 0x419   :  { %1405 = vst [vmem:[#allocation2] sm:$0xf] %v1388_v21  ;;  %2932 = vset.pattern.permute.xlu1 %v4972_v14  ;;  %1916 = vmatpush.msrb.mxu1 %v4062_v35  ;;  %v2862_v35 = vld [vmem:[%s4878_s2 + $0x28] sm:$0xf] }
 0x41a   :  { %1409 = vst [vmem:[#allocation6 + $0xc] sm:$0xf] %v1388_v21  ;;  %1740 = vperm.xlu1 %2932, %v2856_v22   ;;  %2931 = vset.pattern.permute.xlu2 %v4971_v11  ;;  %v5074_v21 = vld [vmem:[#allocation36_spill] sm:$0xff]  ;;  %v5075_v22 = vld [vmem:[#allocation37_spill] sm:$0xff] }
 0x41b   :  { %1699 = vperm.xlu2 %2931, %v3970_v2   ;;  %1936 = vmatpush.msrb.mxu2 %v4064_v36 }
 0x41c   :  { %v4271_v18 = vld [vmem:[#allocation3] sm:$0xf]  ;;  %1956 = vmatpush.msrb.mxu3 %v4068_v4  ;;  %1897 = vmatpush.msrb.mxu0 %v4072_v19 }
 0x41d   :  { %v1439_v49 = vmul.f32 %v1432_v40, %v4271_v18  ;;  %v1463_v63 = vmul.f32 %v3949_v27, %v4271_v18  ;;  %1917 = vmatpush.msrb.mxu1 %v4074_v5  ;;  %1937 = vmatpush.msrb.mxu2 %v4076_v37  ;;  %v5064_v40 = vld [vmem:[#allocation26_spill] sm:$0xff] }
 0x41e   :  { %v4279_v28 = vld [vmem:[#allocation3 + $0x4] sm:$0xf]  ;;  %1957 = vmatpush.msrb.mxu3 %v4084_v23  ;;  %1898 = vmatpush.msrb.mxu0 %v4088_v3 }
 0x41f   :  { %v1441_v52 = vsel %vm72_vm0, %v1439_v49, 0.0  ;;  %v1464_v45 = vmul.f32 %v1461_v16, %v4279_v28  ;;  %v1440_v41 = vmul.f32 %v4019_v32, %v4279_v28  ;;  %v1465_v15 = vsel %vm72_vm0, %v1463_v63, 0.0  ;;  %1918 = vmatpush.msrb.mxu1 %v4090_v17  ;;  %1938 = vmatpush.msrb.mxu2 %v4092_v1  ;;  %v5076_v16 = vld [vmem:[#allocation38_spill] sm:$0xff]  ;;  %v2867_v49 = vld [vmem:[%s4880_s4 + $0x2c] sm:$0xf]  ;;  %v5077_v63 = vld [vmem:[#allocation39_spill] sm:$0xff] }
 0x420   :  { %v1442_v27 = vrot.slane %v1441_v52, 4  ;;  %v1466_v2 = vrot.slane %v1465_v15, 4  ;;  %1958 = vmatpush.msrb.mxu3 %v4096_v38  ;;  %1899 = vmatpush.msrb.mxu0 %v4100_v42 }
 0x421   :  { %v1472_v31 = vsel %vm72_vm0, %v1464_v45, 0.0  ;;  %v1448_v61 = vsel %vm72_vm0, %v1440_v41, 0.0  ;;  %1919 = vmatpush.msrb.mxu1 %v4102_v43  ;;  %1939 = vmatpush.msrb.mxu2 %v4104_v6  ;;  %v5061_v6 = vld [vmem:[#allocation23_spill] sm:$0xff]  ;;  %v5079_v45 = vld [vmem:[#allocation41_spill] sm:$0xff]  ;;  %v5080_v41 = vld [vmem:[#allocation42_spill] sm:$0xff] }
 0x422   :  { %v1443_v32 = vadd.f32 %v1442_v27, %v1441_v52  ;;  %v1473_v29 = vrot.slane %v1472_v31, 4  ;;  %v1449_v30 = vrot.slane %v1448_v61, 4  ;;  %v1467_v34 = vadd.f32 %v1466_v2, %v1465_v15  ;;  %2934 = vset.pattern.permute.xlu1 %v4971_v11  ;;  %1959 = vmatpush.msrb.mxu3 %v4108_v47  ;;  %v5062_v47 = vld [vmem:[#allocation24_spill] sm:$0xff]  ;;  %v5081_v15 = vld [vmem:[#allocation43_spill] sm:$0xff]  ;;  %v5083_v2 = vld [vmem:[#allocation18_spill] sm:$0xff] }
 0x423   :  { %1798 = vperm.xlu1 %2934, %v2862_v35   ;;  %2933 = vset.pattern.permute.xlu2 %v4972_v14  ;;  %v5078_v52 = vld [vmem:[#allocation40_spill] sm:$0xff] }
 0x424   :  { %v1444_v36 = vrot.slane %v1443_v32, 2  ;;  %v1474_v4 = vadd.f32 %v1473_v29, %v1472_v31  ;;  %v1450_v19 = vadd.f32 %v1449_v30, %v1448_v61  ;;  %v1468_v5 = vrot.slane %v1467_v34, 2  ;;  %1773 = vperm.xlu2 %2933, %v2862_v35   ;;  %1900 = vmatpush.msrb.mxu0 %v4112_v48  ;;  %v5065_v48 = vld [vmem:[#allocation28_spill] sm:$0xff]  ;;  %v5084_v31 = vld [vmem:[#allocation19_spill] sm:$0xff] }
 0x425   :  { %1920 = vmatpush.msrb.mxu1 %v4114_v44  ;;  %1940 = vmatpush.msrb.mxu2 %v4116_v56  ;;  %v2866_v56 = vld [vmem:[%s4880_s4 + $0x28] sm:$0xf]  ;;  %v5082_v27 = vld [vmem:[#allocation44_spill] sm:$0xff] }
 0x426   :  { %v1445_v37 = vadd.f32 %v1444_v36, %v1443_v32  ;;  %v1475_v23 = vrot.slane %v1474_v4, 2  ;;  %v1451_v3 = vrot.slane %v1450_v19, 2  ;;  %v1469_v17 = vadd.f32 %v1468_v5, %v1467_v34  ;;  %1960 = vmatpush.msrb.mxu3 %v4122_v60  ;;  %1901 = vmatpush.msrb.mxu0 %v5061_v6  ;;  %v5067_v60 = vld [vmem:[#allocation30_spill] sm:$0xff]  ;;  %v5085_v61 = vld [vmem:[#allocation27_spill] sm:$0xff]  ;;  %v2851_v30 = vld [vmem:[%s4876_s0 + $0x10] sm:$0xf] }
 0x427   :  { %1921 = vmatpush.msrb.mxu1 %v5062_v47  ;;  %1941 = vmatpush.msrb.mxu2 %v5063_v39 }
 0x428   :  { %v1446_v1 = vrot.slane %v1445_v37, 1  ;;  %v1476_v38 = vadd.f32 %v1475_v23, %v1474_v4  ;;  %v1452_v42 = vadd.f32 %v1451_v3, %v1450_v19  ;;  %v1470_v43 = vrot.slane %v1469_v17, 1  ;;  %1961 = vmatpush.msrb.mxu3 %v5064_v40  ;;  %1902 = vmatpush.msrb.mxu0 %v5065_v48 }
 0x429   :  { %1922 = vmatpush.msrb.mxu1 %v5066_v7  ;;  %1942 = vmatpush.msrb.mxu2 %v5067_v60 }
 0x42a   :  { %v1477_v59 = vrot.slane %v1476_v38, 1  ;;  %v1453_v12 = vrot.slane %v1452_v42, 1  ;;  %v1447_v44 = vadd.f32 %v1446_v1, %v1445_v37  ;;  %v1471_v51 = vadd.f32 %v1470_v43, %v1469_v17  ;;  %1962 = vmatpush.msrb.mxu3 %v5068_v25  ;;  %1903 = vmatpush.msrb.mxu0 %v5069_v9 }
 0x42b   :  { %2936 = vset.pattern.permute.xlu1 %v4972_v14  ;;  %1923 = vmatpush.msrb.mxu1 %v5070_v13  ;;  %v1426_v13 = vld [vmem:[#allocation2] sm:$0xf] }
 0x42c   :  { %v1478_v24 = vadd.f32 %v1477_v59, %v1476_v38  ;;  %v1454_v50 = vadd.f32 %v1453_v12, %v1452_v42  ;;  %2018 = vperm.xlu1 %2936, %v2866_v56   ;;  %2935 = vset.pattern.permute.xlu2 %v4971_v11 }
 0x42d   :  { %1802 = vperm.xlu2 %2935, %v5071_v0   ;;  %1943 = vmatpush.msrb.mxu2 %v5072_v33 }
 0x42e   :  { %v4325_v46 = vsel %vm113_vm1, %v1454_v50, %v1447_v44  ;;  %v4328_v54 = vsel %vm113_vm1, %v1478_v24, %v1471_v51  ;;  %1963 = vmatpush.msrb.mxu3 %v5073_v58  ;;  %1904 = vmatpush.msrb.mxu0 %v5074_v21 }
 0x42f   :  { %1567 = vmatmul.f32.vlgmr.msra.gmra.mxu0 %v4325_v46  ;;  %1587 = vmatmul.f32.vlgmr.msra.gmra.mxu1 %v4328_v54 }
 0x430   :  { %1607 = vmatmul.f32.vlgmr.msra.gmra.mxu2 %v4325_v46  ;;  %1627 = vmatmul.f32.vlgmr.msra.gmra.mxu3 %v4328_v54 }
 0x431   :  { %1924 = vmatpush.msrb.mxu1 %v5075_v22  ;;  %1944 = vmatpush.msrb.mxu2 %v5076_v16 }
 0x432   :  { %1964 = vmatpush.msrb.mxu3 %v5077_v63  ;;  %1905 = vmatpush.msrb.mxu0 %v5078_v52 }
 0x433   :  { %1925 = vmatpush.msrb.mxu1 %v5079_v45  ;;  %1945 = vmatpush.msrb.mxu2 %v5080_v41 }
 0x434   :  { %2939 = vset.pattern.permute.xlu1 %v4971_v11  ;;  %1965 = vmatpush.msrb.mxu3 %v5081_v15 }
 0x435   :  { %2041 = vperm.xlu1 %2939, %v2867_v49   ;;  %1906 = vmatpush.msrb.mxu0 %v5082_v27 }
 0x436   :  { %1926 = vmatpush.msrb.mxu1 %v4204_v62  ;;  %1946 = vmatpush.msrb.mxu2 %v4206_v10  ;;  %v2865_v62 = vld [vmem:[%s4879_s3 + $0x2c] sm:$0xf] }
 0x437   :  { %1966 = vmatpush.msrb.mxu3 %v5083_v2  ;;  %1907 = vmatpush.msrb.mxu0 %v4212_v57 }
 0x438   :  { %1927 = vmatpush.msrb.mxu1 %v4214_v55  ;;  %1947 = vmatpush.msrb.mxu2 %v5084_v31  ;;  %v5086_v31 = vld [vmem:[#allocation21_spill] sm:$0xff] }
 0x439   :  { %1967 = vmatpush.msrb.mxu3 %v5085_v61  ;;  %1908 = vmatpush.msrb.mxu0 %v4224_v20  ;;  %v4371_v20 = vld [vmem:[%s4878_s2 + $0x30] sm:$0xf] }
 0x43a   :  { %1928 = vmatpush.msrb.mxu1 %v4232_v26  ;;  %1948 = vmatpush.msrb.mxu2 %v4234_v53 }
 0x43b   :  { %1968 = vmatpush.msrb.mxu3 %v4238_v8  ;;  %2037 = vperm.xlu0 %2938, %v2866_v56   ;;  %v2852_v8 = vld [vmem:[%s4877_s1 + $0x8] sm:$0x3]  ;;  %v1659_v56 = vrot.slane %v4328_v54, 6 }
 0x43c   :  { %2937 = vset.pattern.permute.xlu2 %v4972_v14 }
 0x43d   :  { %2940 = vset.pattern.permute.xlu1 %v4972_v14  ;;  %2023 = vperm.xlu2 %2937, %v2867_v49   ;;  %v1660_v60 = vsel %vm267_vm2, %v4325_v46, %v1659_v56 }
 0x43e   :  { %2082 = vperm.xlu1 %2940, %v2865_v62  }
 0x443   :  { %2941 = vset.pattern.permute.xlu0 %v4972_v14 }
 0x446   :  { %2942 = vset.pattern.permute.xlu1 %v4971_v11 }
 0x447   :  { %2140 = vperm.xlu1 %2942, %v4371_v20  }
 0x44f   :  { %2944 = vset.pattern.permute.xlu1 %v4972_v14 }
 0x450   :  { %1720 = vperm.xlu1 %2944, %v2852_v8  }
 0x458   :  { %2946 = vset.pattern.permute.xlu1 %v4971_v11 }
 0x46c   :  { %v1677_v25 = vpop.permute.xlu2 %1676 }
 0x475   :  { %v1700_v22 = vpop.permute.xlu2 %1699 }
 0x483   :  { %v1696_v10 = vpop.permute.xlu1 %1695 }
 0x48c   :  { %v4384_v4 = vpop.permute.xlu1 %1740 }
 0x495   :  { %v4386_v37 = vpop.permute.xlu1 %1798 }
 0x49e   :  { %v4388_v1 = vpop.permute.xlu1 %2018 }
 0x4a7   :  { %v4390_v48 = vpop.permute.xlu1 %2041 }
 0x4ac   :  { %v1568_v57 = vpop.f32.mrf.mxu0  ;;  %v1588_v55 = vpop.f32.mrf.mxu1 }
 0x4ad   :  { %v1589_v29 = vadd.f32 %v1588_v55, %v1568_v57 }
 0x4b0   :  { %v4395_v24 = vpop.permute.xlu1 %2082 }
 0x4b3   :  { %v1608_v26 = vpop.f32.mrf.mxu2  ;;  %v1628_v53 = vpop.f32.mrf.mxu3 }
 0x4b4   :  { %v1629_v32 = vadd.f32 %v1628_v53, %v1608_v26 }
 0x4b6   :  { %v1633_v34 = vrot.slane %v1629_v32, 6  ;;  %v2872_v32 = vld [vmem:[%s4878_s2 + $0x34] sm:$0xf] }
 0x4b7   :  { %2120 = vperm.xlu0 %2941, %v2872_v32  }
 0x4b8   :  { %v1634_v35 = vsel %vm267_vm2, %v1589_v29, %v1633_v34 }
 0x4b9   :  { %v1636_v36 = vadd.f32 %v2851_v30, %v1634_v35  ;;  %v4397_v9 = vpop.permute.xlu1 %2140 }
 0x4bb   :  { %v2859_v19 = vmul.f32 -1.442695, %v1636_v36  ;;  %v1774_v36 = vpop.permute.xlu2 %1773 }
 0x4bd   :  { %2982 = vpow2.f32 %v2859_v19 }
 0x4c2   :  { %v1721_v8 = vpop.permute.xlu1 %1720 }
 0x4c3   :  { %v2983_v5 = vpop.eup %2982 }
 0x4c4   :  { %v1640_v23 = vadd.f32 1.0, %v2983_v5 }
 0x4c6   :  { %2984 = vrcp.f32 %v1640_v23  ;;  %v1652_v42 = vand.u32 2147483648, %v1640_v23  ;;  %v1650_v6 = vand.u32 2147483647, %v1640_v23  ;;  %vm1646_vm7 = vweird.f32 %v1640_v23 }
 0x4c8   :  { %v1653_v39 = vor.u32 1.1754944e-38, %v1652_v42  ;;  %vm1651_vm9 = vcmp.eq.f32.partialorder %v1650_v6, 8.507059e+37 }
 0x4cc   :  { %v2985_v3 = vpop.eup %2984 }
 0x4cd   :  { %v1642_v17 = vmul.f32 %v2985_v3, %v1640_v23  ;;  %vm1647_vm6 = vweird.f32 %v2985_v3 }
 0x4ce   :  { %vm1648_vm8 = vmor %vm1646_vm7, %vm1647_vm6 }
 0x4cf   :  { %v1643_v38 = vsub.f32 1.0, %v1642_v17 }
 0x4d1   :  { %v1644_v43 = vmul.f32 %v2985_v3, %v1643_v38 }
 0x4d3   :  { %v1645_v47 = vadd.f32 %v2985_v3, %v1644_v43  ;;  %v4418_v43 = vld [vmem:[%s4880_s4 + $0x34] sm:$0xf] }
 0x4d4   :  { %2365 = vperm.xlu0 %2941, %v4418_v43  }
 0x4d5   :  { %v1649_v59 = vsel %vm1648_vm8, %v2985_v3, %v1645_v47 }
 0x4d6   :  { %v1654_v12 = vsel %vm1651_vm9, %v1653_v39, %v1649_v59  ;;  %v2873_v39 = vld [vmem:[%s4879_s3 + $0x30] sm:$0xf] }
 0x4d7   :  { %v1656_v40 = vmul.f32 %v1654_v12, %v1634_v35  ;;  %v2864_v35 = vld [vmem:[%s4879_s3 + $0x28] sm:$0xf] }
 0x4d8   :  { %2077 = vperm.xlu2 %2937, %v2864_v35  }
 0x4d9   :  { %v1657_v44 = vadd.f32 %v2851_v30, %v1656_v40 }
 0x4db   :  { %2986 = vtanh.f32 %v1657_v44 }
 0x4dc   :  { %2419 = vperm.xlu0 %2941, %v2873_v39  }
 0x4e0   :  { %2115 = vperm.xlu2 %2937, %v4371_v20   ;;  %v5088_v20 = vld [vmem:[#allocation17_spill] sm:$0xff] }
 0x4e1   :  { %v2987_v7 = vpop.eup %2986 }
 0x4e2   :  { %v1662_v50 = vsub.f32 %v2987_v7, %v1660_v60 }
 0x4e4   :  { %v1663_v51 = vmul.f32 %v1662_v50, %v1654_v12 }
 0x4e6   :  { %1665 = vst [vmem:[#allocation1] ss:$4 sm:$0xff] %v1663_v51 }
 0x4e8   :  { %2943 = vset.pattern.permute.xlu2 %v4971_v11 }
 0x4e9   :  { %2144 = vperm.xlu2 %2943, %v2872_v32  }
 0x4ed   :  { %v1667_v0 = vld.sshfl [vmem:[#allocation1 + $0x8] sm:$0xff pattern:$0x73625140]  ;;  %v1666_v33 = vld.sshfl [vmem:[#allocation1] sm:$0xff pattern:$0x73625140] }
 0x4ee   :  { %v1671_v58 = vadd.f32 %v1667_v0, %v4328_v54  ;;  %v1670_v21 = vadd.f32 %v1666_v33, %v4325_v46  ;;  %1711 = vst [vmem:[#allocation1] ss:$4 sm:$0xff] %v1426_v13 }
 0x4f0   :  { %v1702_v16 = vperm.slane %v1671_v58, 0  ;;  %v1684_v49 = vperm.slane %v1670_v21, 0  ;;  %v1673_v63 = vrot.slane %v1670_v21, 1  ;;  %v1693_v52 = vrot.slane %v1671_v58, 1 }
 0x4f1   :  { %2945 = vset.pattern.permute.xlu2 %v4972_v14 }
 0x4f2   :  { %v1706_v45 = vmul.f32 %v1702_v16, %v1696_v10  ;;  %v1688_v41 = vmul.f32 %v1684_v49, %v1677_v25  ;;  %v1685_v15 = vperm.slane %v1673_v63, 0  ;;  %v1703_v27 = vperm.slane %v1693_v52, 0  ;;  %v5087_v10 = vld [vmem:[#allocation22_spill] sm:$0xff] }
 0x4f3   :  { %v4443_v52 = vld [vmem:[%s4878_s2 + $0x3c] sm:$0xf] }
 0x4f4   :  { %v1708_v2 = vadd.f32 %v1706_v45, %v1688_v41  ;;  %v1689_v61 = vmul.f32 %v1685_v15, %v5086_v31  ;;  %v1707_v62 = vmul.f32 %v1703_v27, %v1700_v22  ;;  %5089 = vst [vmem:[#allocation23_spill] sm:$0xff] %v4443_v52  ;;  %2462 = vperm.xlu0 %2941, %v4443_v52   ;;  %v4626_v52 = vld [vmem:[#allocation4 + $0x158] sm:$0xff] }
 0x4f5   :  { %v1712_v57 = vld.sshfl [vmem:[#allocation1] sm:$0xff pattern:$0x73625140]  ;;  %v1713_v55 = vld.sshfl [vmem:[#allocation1 + $0x8] sm:$0xff pattern:$0x73625140] }
 0x4f6   :  { %v1731_v54 = vsub.f32 %v1708_v2, %v4271_v18  ;;  %v1709_v46 = vadd.f32 %v1707_v62, %v1689_v61  ;;  %v1716_v26 = vsub.f32 %v1670_v21, %v1712_v57  ;;  %v1717_v53 = vsub.f32 %v1671_v58, %v1713_v55  ;;  %5103 = vst [vmem:[#allocation37_spill] sm:$0xff] %v4626_v52 }
 0x4f8   :  { %v1743_v29 = vmul.f32 %v5087_v10, %v1731_v54  ;;  %v1732_v30 = vsub.f32 %v1709_v46, %v4279_v28  ;;  %v1724_v34 = vmul.f32 %v1721_v8, %v1717_v53  ;;  %v1723_v23 = vmul.f32 %v1721_v8, %v1716_v26  ;;  %v2861_v46 = vld [vmem:[%s4877_s1 + $0xa] sm:$0x3]  ;;  %v4463_v26 = vld [vmem:[%s4880_s4 + $0x3c] sm:$0xf]  ;;  %v2879_v53 = vld [vmem:[%s4877_s1 + $0xe] sm:$0x3] }
 0x4f9   :  { %5090 = vst [vmem:[#allocation24_spill] sm:$0xff] %v4463_v26 }
 0x4fa   :  { %v1745_v19 = vadd.f32 %v1743_v29, %v4271_v18  ;;  %v1744_v5 = vmul.f32 %v4384_v4, %v1732_v30  ;;  %v1727_v3 = vrot.slane %v1724_v34, 6 }
 0x4fc   :  { %1748 = vst [vmem:[#allocation3] sm:$0xf] %v1745_v19  ;;  %v1746_v17 = vadd.f32 %v1744_v5, %v4279_v28  ;;  %v1728_v38 = vsel %vm267_vm2, %v1723_v23, %v1727_v3  ;;  %v1803_v28 = vpop.permute.xlu2 %1802  ;;  %2062 = vperm.xlu0 %2941, %v2861_v46  }
 0x4fd   :  { %1753 = vst [vmem:[#allocation8 + $0x20] sm:$0xf] %v1745_v19  ;;  %v1730_v42 = vadd.f32 %v1728_v38, %v1426_v13 }
 0x4fe   :  { %1749 = vst [vmem:[#allocation3 + $0x4] sm:$0xf] %v1746_v17 }
 0x4ff   :  { %1754 = vst [vmem:[#allocation8 + $0x24] sm:$0xf] %v1746_v17 }
 0x500   :  { %1747 = vst [vmem:[#allocation2] sm:$0xf] %v1730_v42 }
 0x501   :  { %1751 = vst [vmem:[#allocation6 + $0x10] sm:$0xf] %v1730_v42  ;;  %v4473_v42 = vpop.permute.xlu0 %2037 }
 0x503   :  { %v4422_v18 = vld [vmem:[#allocation3] sm:$0xf] }
 0x504   :  { %v1781_v4 = vmul.f32 %v1774_v36, %v4422_v18  ;;  %v1805_v6 = vmul.f32 %v4386_v37, %v4422_v18  ;;  %2707 = vperm.xlu0 %2941, %v4463_v26   ;;  %v2860_v36 = vld [vmem:[%s4876_s0 + $0x14] sm:$0xf] }
 0x505   :  { %v4427_v47 = vld [vmem:[#allocation3 + $0x4] sm:$0xf] }
 0x506   :  { %v1783_v59 = vsel %vm72_vm0, %v1781_v4, 0.0  ;;  %v1806_v12 = vmul.f32 %v1803_v28, %v4427_v47  ;;  %v1782_v40 = vmul.f32 %v5088_v20, %v4427_v47  ;;  %v1807_v44 = vsel %vm72_vm0, %v1805_v6, 0.0 }
 0x507   :  { %v1784_v56 = vrot.slane %v1783_v59, 4  ;;  %v1808_v7 = vrot.slane %v1807_v44, 4 }
 0x508   :  { %v1814_v60 = vsel %vm72_vm0, %v1806_v12, 0.0  ;;  %v1790_v37 = vsel %vm72_vm0, %v1782_v40, 0.0 }
 0x509   :  { %v1785_v50 = vadd.f32 %v1784_v56, %v1783_v59  ;;  %v1815_v51 = vrot.slane %v1814_v60, 4  ;;  %v1791_v25 = vrot.slane %v1790_v37, 4  ;;  %v1809_v13 = vadd.f32 %v1808_v7, %v1807_v44 }
 0x50b   :  { %v1786_v0 = vrot.slane %v1785_v50, 2  ;;  %v1816_v33 = vadd.f32 %v1815_v51, %v1814_v60  ;;  %v1792_v58 = vadd.f32 %v1791_v25, %v1790_v37  ;;  %v1810_v21 = vrot.slane %v1809_v13, 2  ;;  %v4477_v37 = vld [vmem:[#allocation4 + $0xf0] sm:$0xff]  ;;  %v4481_v51 = vld [vmem:[#allocation4 + $0xf8] sm:$0xff] }
 0x50c   :  { %2746 = vperm.xlu0 %2941, %v2879_v53   ;;  %2235 = vmatpush.msra.mxu0 %v4477_v37  ;;  %v4538_v53 = vld [vmem:[#allocation4 + $0x1b8] sm:$0xff] }
 0x50d   :  { %v1787_v22 = vadd.f32 %v1786_v0, %v1785_v50  ;;  %v1817_v16 = vrot.slane %v1816_v33, 2  ;;  %v1793_v49 = vrot.slane %v1792_v58, 2  ;;  %v1811_v63 = vadd.f32 %v1810_v21, %v1809_v13  ;;  %v4479_v50 = vld [vmem:[#allocation4 + $0x1f0] sm:$0xff]  ;;  %v4487_v0 = vld [vmem:[#allocation4 + $0x1f8] sm:$0xff]  ;;  %2275 = vmatpush.msra.mxu2 %v4481_v51  ;;  %v4495_v21 = vld [vmem:[#allocation4 + $0xe8] sm:$0xff] }
 0x50e   :  { %2255 = vmatpush.msra.mxu1 %v4479_v50  ;;  %2295 = vmatpush.msra.mxu3 %v4487_v0 }
 0x50f   :  { %v1788_v45 = vrot.slane %v1787_v22, 1  ;;  %v1818_v41 = vadd.f32 %v1817_v16, %v1816_v33  ;;  %v1794_v15 = vadd.f32 %v1793_v49, %v1792_v58  ;;  %v1812_v27 = vrot.slane %v1811_v63, 1  ;;  %v4491_v33 = vld [vmem:[#allocation4 + $0xe0] sm:$0xff]  ;;  %2276 = vmatpush.msra.mxu2 %v4495_v21  ;;  %v4503_v16 = vld [vmem:[#allocation4 + $0xd0] sm:$0xff] }
 0x510   :  { %v4493_v58 = vld [vmem:[#allocation4 + $0x1e0] sm:$0xff]  ;;  %2236 = vmatpush.msra.mxu0 %v4491_v33  ;;  %v4505_v49 = vld [vmem:[#allocation4 + $0x1d0] sm:$0xff] }
 0x511   :  { %v1819_v2 = vrot.slane %v1818_v41, 1  ;;  %v1795_v31 = vrot.slane %v1794_v15, 1  ;;  %v1789_v61 = vadd.f32 %v1788_v45, %v1787_v22  ;;  %v1813_v57 = vadd.f32 %v1812_v27, %v1811_v63  ;;  %2256 = vmatpush.msra.mxu1 %v4493_v58  ;;  %v4499_v22 = vld [vmem:[#allocation4 + $0x1e8] sm:$0xff]  ;;  %v4507_v63 = vld [vmem:[#allocation4 + $0xd8] sm:$0xff]  ;;  %v4518_v27 = vld [vmem:[#allocation4 + $0x1c0] sm:$0xff] }
 0x512   :  { %2296 = vmatpush.msra.mxu3 %v4499_v22  ;;  %2237 = vmatpush.msra.mxu0 %v4503_v16 }
 0x513   :  { %v1820_v62 = vadd.f32 %v1819_v2, %v1818_v41  ;;  %v1796_v8 = vadd.f32 %v1795_v31, %v1794_v15  ;;  %2257 = vmatpush.msra.mxu1 %v4505_v49  ;;  %v4512_v41 = vld [vmem:[#allocation4 + $0x1d8] sm:$0xff]  ;;  %2277 = vmatpush.msra.mxu2 %v4507_v63  ;;  %v4516_v15 = vld [vmem:[#allocation4 + $0xc0] sm:$0xff]  ;;  %v4520_v2 = vld [vmem:[#allocation4 + $0xc8] sm:$0xff] }
 0x514   :  { %2297 = vmatpush.msra.mxu3 %v4512_v41  ;;  %2238 = vmatpush.msra.mxu0 %v4516_v15  ;;  %v4524_v31 = vld [vmem:[#allocation4 + $0x1c8] sm:$0xff] }
 0x515   :  { %v4448_v55 = vsel %vm113_vm1, %v1796_v8, %v1789_v61  ;;  %v4451_v54 = vsel %vm113_vm1, %v1820_v62, %v1813_v57  ;;  %2258 = vmatpush.msra.mxu1 %v4518_v27  ;;  %2278 = vmatpush.msra.mxu2 %v4520_v2  ;;  %v4528_v61 = vld [vmem:[#allocation4 + $0xb0] sm:$0xff]  ;;  %v4532_v8 = vld [vmem:[#allocation4 + $0xb8] sm:$0xff] }
 0x516   :  { %1909 = vmatmul.f32.vlgmr.msrb.gmra.mxu0 %v4448_v55  ;;  %1929 = vmatmul.f32.vlgmr.msrb.gmra.mxu1 %v4451_v54  ;;  %v2001_v45 = vrot.slane %v4451_v54, 6  ;;  %v4530_v62 = vld [vmem:[#allocation4 + $0x1b0] sm:$0xff] }
 0x517   :  { %1949 = vmatmul.f32.vlgmr.msrb.gmra.mxu2 %v4448_v55  ;;  %1969 = vmatmul.f32.vlgmr.msrb.gmra.mxu3 %v4451_v54 }
 0x518   :  { %2298 = vmatpush.msra.mxu3 %v4524_v31  ;;  %v2002_v46 = vsel %vm267_vm2, %v4448_v55, %v2001_v45  ;;  %2239 = vmatpush.msra.mxu0 %v4528_v61  ;;  %v4608_v45 = vld [vmem:[#allocation4 + $0x50] sm:$0xff] }
 0x519   :  { %2259 = vmatpush.msra.mxu1 %v4530_v62  ;;  %2279 = vmatpush.msra.mxu2 %v4532_v8  ;;  %5099 = vst [vmem:[#allocation20_spill] sm:$0xff] %v4608_v45 }
 0x51a   :  { %2299 = vmatpush.msra.mxu3 %v4538_v53 }
 0x529   :  { %v4475_v39 = vpop.permute.xlu0 %2120 }
 0x546   :  { %v4483_v13 = vpop.permute.xlu0 %2365 }
 0x547   :  { %5091 = vst [vmem:[#allocation25_spill] sm:$0xff] %v4483_v13 }
 0x593   :  { %v1910_v32 = vpop.f32.mrf.mxu0  ;;  %v1930_v10 = vpop.f32.mrf.mxu1 }
 0x594   :  { %v1931_v35 = vadd.f32 %v1930_v10, %v1910_v32  ;;  %v4542_v10 = vld [vmem:[#allocation4 + $0xa0] sm:$0xff] }
 0x595   :  { %2240 = vmatpush.msra.mxu0 %v4542_v10 }
 0x59a   :  { %v1950_v29 = vpop.f32.mrf.mxu2  ;;  %v1970_v30 = vpop.f32.mrf.mxu3 }
 0x59b   :  { %v1971_v34 = vadd.f32 %v1970_v30, %v1950_v29  ;;  %v4544_v29 = vld [vmem:[#allocation4 + $0x1a0] sm:$0xff]  ;;  %v4546_v30 = vld [vmem:[#allocation4 + $0xa8] sm:$0xff] }
 0x59c   :  { %2260 = vmatpush.msra.mxu1 %v4544_v29  ;;  %2280 = vmatpush.msra.mxu2 %v4546_v30 }
 0x59d   :  { %v1975_v19 = vrot.slane %v1971_v34, 6  ;;  %v4548_v34 = vpop.permute.xlu0 %2419 }
 0x59e   :  { %5092 = vst [vmem:[#allocation26_spill] sm:$0xff] %v4548_v34 }
 0x59f   :  { %v1976_v5 = vsel %vm267_vm2, %v1931_v35, %v1975_v19  ;;  %v4552_v35 = vld [vmem:[#allocation4 + $0x1a8] sm:$0xff]  ;;  %v4556_v19 = vld [vmem:[#allocation4 + $0x90] sm:$0xff] }
 0x5a0   :  { %v1978_v23 = vadd.f32 %v2860_v36, %v1976_v5  ;;  %2300 = vmatpush.msra.mxu3 %v4552_v35  ;;  %2241 = vmatpush.msra.mxu0 %v4556_v19 }
 0x5a2   :  { %v2868_v3 = vmul.f32 -1.442695, %v1978_v23  ;;  %v4560_v23 = vld [vmem:[#allocation4 + $0x98] sm:$0xff] }
 0x5a3   :  { %2281 = vmatpush.msra.mxu2 %v4560_v23 }
 0x5a4   :  { %2988 = vpow2.f32 %v2868_v3  ;;  %v4564_v3 = vld [vmem:[#allocation4 + $0x198] sm:$0xff] }
 0x5a5   :  { %2301 = vmatpush.msra.mxu3 %v4564_v3  ;;  %v4614_v26 = vpop.permute.xlu0 %2462 }
 0x5a6   :  { %5102 = vst [vmem:[#allocation36_spill] sm:$0xff] %v4614_v26  ;;  %v4634_v26 = vld [vmem:[#allocation4 + $0x48] sm:$0xff] }
 0x5a7   :  { %5106 = vst [vmem:[#allocation40_spill] sm:$0xff] %v4634_v26 }
 0x5aa   :  { %v2989_v17 = vpop.eup %2988 }
 0x5ab   :  { %v1982_v38 = vadd.f32 1.0, %v2989_v17  ;;  %v4568_v17 = vld [vmem:[#allocation4 + $0x80] sm:$0xff] }
 0x5ac   :  { %2242 = vmatpush.msra.mxu0 %v4568_v17 }
 0x5ad   :  { %2990 = vrcp.f32 %v1982_v38  ;;  %v1994_v59 = vand.u32 2147483648, %v1982_v38  ;;  %v1992_v20 = vand.u32 2147483647, %v1982_v38  ;;  %vm1988_vm11 = vweird.f32 %v1982_v38 }
 0x5af   :  { %v1995_v44 = vor.u32 1.1754944e-38, %v1994_v59  ;;  %vm1993_vm13 = vcmp.eq.f32.partialorder %v1992_v20, 8.507059e+37  ;;  %v4582_v59 = vld [vmem:[#allocation4 + $0x70] sm:$0xff]  ;;  %v4586_v20 = vld [vmem:[#allocation4 + $0x78] sm:$0xff] }
 0x5b0   :  { %5093 = vst [vmem:[#allocation28_spill] sm:$0xff] %v4586_v20  ;;  %2243 = vmatpush.msra.mxu0 %v4582_v59 }
 0x5b3   :  { %v2991_v28 = vpop.eup %2990 }
 0x5b4   :  { %v1984_v4 = vmul.f32 %v2991_v28, %v1982_v38  ;;  %vm1989_vm10 = vweird.f32 %v2991_v28  ;;  %v4570_v38 = vld [vmem:[#allocation4 + $0x180] sm:$0xff] }
 0x5b5   :  { %vm1990_vm12 = vmor %vm1988_vm11, %vm1989_vm10 }
 0x5b6   :  { %v1985_v6 = vsub.f32 1.0, %v1984_v4  ;;  %v4576_v4 = vld [vmem:[#allocation4 + $0x188] sm:$0xff] }
 0x5b7   :  { %2302 = vmatpush.msra.mxu3 %v4576_v4 }
 0x5b8   :  { %v1986_v12 = vmul.f32 %v2991_v28, %v1985_v6  ;;  %v4578_v6 = vpop.permute.xlu2 %2023 }
 0x5ba   :  { %v1987_v40 = vadd.f32 %v2991_v28, %v1986_v12  ;;  %v4584_v12 = vld [vmem:[#allocation4 + $0x170] sm:$0xff] }
 0x5bc   :  { %v1991_v56 = vsel %vm1990_vm12, %v2991_v28, %v1987_v40  ;;  %v4572_v28 = vld [vmem:[#allocation4 + $0x88] sm:$0xff]  ;;  %v4590_v40 = vld [vmem:[#allocation4 + $0x178] sm:$0xff] }
 0x5bd   :  { %v1996_v7 = vsel %vm1993_vm13, %v1995_v44, %v1991_v56  ;;  %2282 = vmatpush.msra.mxu2 %v4572_v28  ;;  %5094 = vst [vmem:[#allocation29_spill] sm:$0xff] %v4590_v40  ;;  %2303 = vmatpush.msra.mxu3 %v4590_v40  ;;  %v4594_v44 = vld [vmem:[#allocation4 + $0x60] sm:$0xff] }
 0x5be   :  { %v1998_v60 = vmul.f32 %v1996_v7, %v1976_v5  ;;  %v4558_v5 = vld [vmem:[#allocation4 + $0x190] sm:$0xff]  ;;  %5095 = vst [vmem:[#allocation30_spill] sm:$0xff] %v4594_v44  ;;  %v4596_v56 = vld [vmem:[#allocation4 + $0x160] sm:$0xff]  ;;  %2244 = vmatpush.msra.mxu0 %v4594_v44 }
 0x5bf   :  { %2261 = vmatpush.msra.mxu1 %v4558_v5  ;;  %2283 = vmatpush.msra.mxu2 %v4586_v20  ;;  %5096 = vst [vmem:[#allocation31_spill] sm:$0xff] %v4596_v56 }
 0x5c0   :  { %v1999_v25 = vadd.f32 %v2860_v36, %v1998_v60  ;;  %v4600_v60 = vld [vmem:[#allocation2] sm:$0xf]  ;;  %2245 = vmatpush.msra.mxu0 %v4608_v45  ;;  %v4652_v45 = vld [vmem:[#allocation4 + $0x138] sm:$0xff]  ;;  %v2078_v20 = vpop.permute.xlu2 %2077 }
 0x5c1   :  { %2262 = vmatpush.msra.mxu1 %v4570_v38  ;;  %5111 = vst [vmem:[#allocation18_spill] sm:$0xff] %v4652_v45 }
 0x5c2   :  { %2992 = vtanh.f32 %v1999_v25  ;;  %v4604_v25 = vld [vmem:[#allocation4 + $0x168] sm:$0xff] }
 0x5c3   :  { %2263 = vmatpush.msra.mxu1 %v4584_v12  ;;  %5098 = vst [vmem:[#allocation33_spill] sm:$0xff] %v4604_v25  ;;  %2304 = vmatpush.msra.mxu3 %v4604_v25  ;;  %v4628_v25 = vld [vmem:[#allocation4 + $0x40] sm:$0xff] }
 0x5c4   :  { %5104 = vst [vmem:[#allocation38_spill] sm:$0xff] %v4628_v25  ;;  %2246 = vmatpush.msra.mxu0 %v4628_v25  ;;  %v4650_v25 = vld [vmem:[#allocation4 + $0x38] sm:$0xff] }
 0x5c5   :  { %2264 = vmatpush.msra.mxu1 %v4596_v56  ;;  %2305 = vmatpush.msra.mxu3 %v4626_v52  ;;  %v4646_v52 = vld [vmem:[#allocation4 + $0x130] sm:$0xff]  ;;  %5110 = vst [vmem:[#allocation44_spill] sm:$0xff] %v4650_v25 }
 0x5c6   :  { %5109 = vst [vmem:[#allocation43_spill] sm:$0xff] %v4646_v52 }
 0x5c8   :  { %v2993_v57 = vpop.eup %2992 }
 0x5c9   :  { %v2004_v32 = vsub.f32 %v2993_v57, %v2002_v46  ;;  %v4610_v57 = vld [vmem:[#allocation4 + $0x150] sm:$0xff]  ;;  %v4612_v46 = vld [vmem:[#allocation4 + $0x58] sm:$0xff] }
 0x5ca   :  { %5100 = vst [vmem:[#allocation34_spill] sm:$0xff] %v4610_v57  ;;  %2265 = vmatpush.msra.mxu1 %v4610_v57  ;;  %v4644_v57 = vld [vmem:[#allocation4 + $0x30] sm:$0xff] }
 0x5cb   :  { %v2005_v36 = vmul.f32 %v2004_v32, %v1996_v7  ;;  %v4598_v7 = vld [vmem:[#allocation4 + $0x68] sm:$0xff]  ;;  %5101 = vst [vmem:[#allocation35_spill] sm:$0xff] %v4612_v46  ;;  %2247 = vmatpush.msra.mxu0 %v4644_v57 }
 0x5cc   :  { %5097 = vst [vmem:[#allocation32_spill] sm:$0xff] %v4598_v7  ;;  %2284 = vmatpush.msra.mxu2 %v4598_v7  ;;  %v4630_v7 = vld [vmem:[#allocation4 + $0x140] sm:$0xff] }
 0x5cd   :  { %2007 = vst [vmem:[#allocation1] ss:$4 sm:$0xff] %v2005_v36  ;;  %2266 = vmatpush.msra.mxu1 %v4630_v7 }
 0x5ce   :  { %2285 = vmatpush.msra.mxu2 %v4612_v46  ;;  %5105 = vst [vmem:[#allocation39_spill] sm:$0xff] %v4630_v7 }
 0x5cf   :  { %5108 = vst [vmem:[#allocation42_spill] sm:$0xff] %v4644_v57  ;;  %2267 = vmatpush.msra.mxu1 %v4646_v52  ;;  %v4662_v57 = vld [vmem:[#allocation4 + $0x28] sm:$0xff] }
 0x5d0   :  { %2286 = vmatpush.msra.mxu2 %v4634_v26  ;;  %v4658_v26 = vld [vmem:[#allocation4 + $0x20] sm:$0xff]  ;;  %5113 = vst [vmem:[#allocation27_spill] sm:$0xff] %v4662_v57 }
 0x5d1   :  { %2248 = vmatpush.msra.mxu0 %v4658_v26 }
 0x5d2   :  { %2287 = vmatpush.msra.mxu2 %v4650_v25  ;;  %v4676_v25 = vld [vmem:[#allocation4 + $0x18] sm:$0xff] }
 0x5d3   :  { %5115 = vst [vmem:[#allocation22_spill] sm:$0xff] %v4676_v25 }
 0x5d4   :  { %v2008_v32 = vld.sshfl [vmem:[#allocation1] sm:$0xff pattern:$0x73625140]  ;;  %v2009_v36 = vld.sshfl [vmem:[#allocation1 + $0x8] sm:$0xff pattern:$0x73625140]  ;;  %2288 = vmatpush.msra.mxu2 %v4662_v57 }
 0x5d5   :  { %v4619_v34 = vadd.f32 %v2008_v32, %v4448_v55  ;;  %v4622_v13 = vadd.f32 %v2009_v36, %v4451_v54  ;;  %2053 = vst [vmem:[#allocation1] ss:$4 sm:$0xff] %v4600_v60  ;;  %v4636_v55 = vld [vmem:[#allocation4 + $0x148] sm:$0xff]  ;;  %v4688_v57 = vld [vmem:[#allocation4 + $0x100] sm:$0xff] }
 0x5d6   :  { %5107 = vst [vmem:[#allocation41_spill] sm:$0xff] %v4636_v55  ;;  %2306 = vmatpush.msra.mxu3 %v4636_v55  ;;  %v4660_v55 = vld [vmem:[#allocation4 + $0x120] sm:$0xff]  ;;  %2289 = vmatpush.msra.mxu2 %v4676_v25 }
 0x5d7   :  { %v2026_v54 = vperm.slane %v4619_v34, 0  ;;  %v2044_v32 = vperm.slane %v4622_v13, 0  ;;  %v2015_v36 = vrot.slane %v4619_v34, 1  ;;  %v2035_v46 = vrot.slane %v4622_v13, 1  ;;  %5112 = vst [vmem:[#allocation19_spill] sm:$0xff] %v4660_v55  ;;  %2268 = vmatpush.msra.mxu1 %v4660_v55  ;;  %v2063_v55 = vpop.permute.xlu0 %2062 }
 0x5d8   :  { %2307 = vmatpush.msra.mxu3 %v4652_v45 }
 0x5d9   :  { %v2030_v56 = vmul.f32 %v2026_v54, %v4388_v1  ;;  %v2048_v44 = vmul.f32 %v2044_v32, %v4473_v42  ;;  %v2027_v40 = vperm.slane %v2015_v36, 0  ;;  %v2045_v7 = vperm.slane %v2035_v46, 0  ;;  %v4666_v1 = vld [vmem:[#allocation4 + $0x128] sm:$0xff]  ;;  %v4672_v32 = vld [vmem:[#allocation4 + $0x10] sm:$0xff] }
 0x5da   :  { %v4674_v36 = vld [vmem:[#allocation4 + $0x110] sm:$0xff]  ;;  %2308 = vmatpush.msra.mxu3 %v4666_v1  ;;  %2249 = vmatpush.msra.mxu0 %v4672_v32 }
 0x5db   :  { %v2050_v42 = vadd.f32 %v2048_v44, %v2030_v56  ;;  %v2031_v46 = vmul.f32 %v2027_v40, %v4578_v6  ;;  %v2049_v54 = vmul.f32 %v2045_v7, %v4390_v48  ;;  %5114 = vst [vmem:[#allocation21_spill] sm:$0xff] %v4674_v36  ;;  %2269 = vmatpush.msra.mxu1 %v4674_v36  ;;  %v4684_v56 = vld [vmem:[#allocation4 + $0x118] sm:$0xff]  ;;  %v4686_v7 = vld [vmem:[#allocation4] sm:$0xff] }
 0x5dc   :  { %v2054_v45 = vld.sshfl [vmem:[#allocation1] sm:$0xff pattern:$0x73625140]  ;;  %v2055_v52 = vld.sshfl [vmem:[#allocation1 + $0x8] sm:$0xff pattern:$0x73625140]  ;;  %2309 = vmatpush.msra.mxu3 %v4684_v56  ;;  %2250 = vmatpush.msra.mxu0 %v4686_v7 }
 0x5dd   :  { %v2051_v44 = vadd.f32 %v2049_v54, %v2031_v46  ;;  %v2073_v6 = vsub.f32 %v2050_v42, %v4422_v18  ;;  %v2058_v48 = vsub.f32 %v4619_v34, %v2054_v45  ;;  %v2059_v40 = vsub.f32 %v4622_v13, %v2055_v52  ;;  %5116 = vst [vmem:[#allocation17_spill] sm:$0xff] %v4684_v56  ;;  %v4692_v46 = vld [vmem:[#allocation4 + $0x8] sm:$0xff]  ;;  %v2875_v45 = vld [vmem:[%s4880_s4 + $0x30] sm:$0xf] }
 0x5de   :  { %v4694_v42 = vld [vmem:[#allocation4 + $0x108] sm:$0xff]  ;;  %2270 = vmatpush.msra.mxu1 %v4688_v57  ;;  %2290 = vmatpush.msra.mxu2 %v4692_v46 }
 0x5df   :  { %v2074_v34 = vsub.f32 %v2051_v44, %v4427_v47  ;;  %v2085_v52 = vmul.f32 %v2078_v20, %v2073_v6  ;;  %v2066_v13 = vmul.f32 %v2063_v55, %v2059_v40  ;;  %v2065_v25 = vmul.f32 %v2063_v55, %v2058_v48  ;;  %2310 = vmatpush.msra.mxu3 %v4694_v42  ;;  %v2116_v44 = vpop.permute.xlu2 %2115  ;;  %v5122_v55 = vld [vmem:[#allocation33_spill] sm:$0xff] }
 0x5e0   :  { %2379 = vperm.xlu1 %2946, %v2875_v45   ;;  %2360 = vperm.xlu2 %2945, %v2875_v45   ;;  %v5126_v45 = vld [vmem:[#allocation35_spill] sm:$0xff] }
 0x5e1   :  { %v2086_v54 = vmul.f32 %v4395_v24, %v2074_v34  ;;  %v2087_v56 = vadd.f32 %v2085_v52, %v4422_v18  ;;  %v2069_v36 = vrot.slane %v2066_v13, 6  ;;  %2577 = vmatpush.msrb.mxu0 %v4477_v37  ;;  %2597 = vmatpush.msrb.mxu1 %v4479_v50  ;;  %v2874_v18 = vld [vmem:[%s4879_s3 + $0x34] sm:$0xf]  ;;  %v5125_v13 = vld [vmem:[#allocation23_spill] sm:$0xff] }
 0x5e2   :  { %2617 = vmatpush.msrb.mxu2 %v4481_v51  ;;  %2637 = vmatpush.msrb.mxu3 %v4487_v0 }
 0x5e3   :  { %v2088_v20 = vadd.f32 %v2086_v54, %v4427_v47  ;;  %2095 = vst [vmem:[#allocation8 + $0x28] sm:$0xf] %v2087_v56  ;;  %v2070_v6 = vsel %vm267_vm2, %v2065_v25, %v2069_v36  ;;  %2578 = vmatpush.msrb.mxu0 %v4491_v33  ;;  %2598 = vmatpush.msrb.mxu1 %v4493_v58  ;;  %v5127_v54 = vld [vmem:[#allocation37_spill] sm:$0xff] }
 0x5e4   :  { %2090 = vst [vmem:[#allocation3] sm:$0xf] %v2087_v56  ;;  %v2072_v24 = vadd.f32 %v2070_v6, %v4600_v60  ;;  %2618 = vmatpush.msrb.mxu2 %v4495_v21  ;;  %2638 = vmatpush.msrb.mxu3 %v4499_v22  ;;  %v5124_v56 = vld [vmem:[#allocation34_spill] sm:$0xff]  ;;  %v5130_v6 = vld [vmem:[#allocation40_spill] sm:$0xff] }
 0x5e5   :  { %2096 = vst [vmem:[#allocation8 + $0x2c] sm:$0xf] %v2088_v20  ;;  %2579 = vmatpush.msrb.mxu0 %v4503_v16  ;;  %2599 = vmatpush.msrb.mxu1 %v4505_v49 }
 0x5e6   :  { %2091 = vst [vmem:[#allocation3 + $0x4] sm:$0xf] %v2088_v20  ;;  %2619 = vmatpush.msrb.mxu2 %v4507_v63  ;;  %2639 = vmatpush.msrb.mxu3 %v4512_v41  ;;  %v5128_v20 = vld [vmem:[#allocation38_spill] sm:$0xff] }
 0x5e7   :  { %2089 = vst [vmem:[#allocation2] sm:$0xf] %v2072_v24  ;;  %2580 = vmatpush.msrb.mxu0 %v4516_v15  ;;  %2600 = vmatpush.msrb.mxu1 %v4518_v27  ;;  %v2145_v37 = vpop.permute.xlu2 %2144 }
 0x5e8   :  { %2093 = vst [vmem:[#allocation6 + $0x14] sm:$0xf] %v2072_v24  ;;  %2948 = vset.pattern.permute.xlu1 %v4972_v14  ;;  %2947 = vset.pattern.permute.xlu2 %v4971_v11  ;;  %v5131_v24 = vld [vmem:[#allocation41_spill] sm:$0xff] }
 0x5e9   :  { %2424 = vperm.xlu1 %2948, %v2874_v18   ;;  %2383 = vperm.xlu2 %2947, %v4418_v43   ;;  %v5132_v18 = vld [vmem:[#allocation42_spill] sm:$0xff] }
 0x5ea   :  { %2620 = vmatpush.msrb.mxu2 %v4520_v2  ;;  %2640 = vmatpush.msrb.mxu3 %v4524_v31 }
 0x5eb   :  { %v4728_v47 = vld [vmem:[#allocation3] sm:$0xf]  ;;  %2581 = vmatpush.msrb.mxu0 %v4528_v61  ;;  %2601 = vmatpush.msrb.mxu1 %v4530_v62 }
 0x5ec   :  { %v2123_v50 = vmul.f32 %v2116_v44, %v4728_v47  ;;  %v2147_v51 = vmul.f32 %v4397_v9, %v4728_v47  ;;  %2621 = vmatpush.msrb.mxu2 %v4532_v8  ;;  %2641 = vmatpush.msrb.mxu3 %v4538_v53  ;;  %v5129_v44 = vld [vmem:[#allocation39_spill] sm:$0xff] }
 0x5ed   :  { %v4737_v0 = vld [vmem:[#allocation3 + $0x4] sm:$0xf]  ;;  %2582 = vmatpush.msrb.mxu0 %v4542_v10  ;;  %2602 = vmatpush.msrb.mxu1 %v4544_v29 }
 0x5ee   :  { %v2125_v33 = vsel %vm72_vm0, %v2123_v50, 0.0  ;;  %v2148_v43 = vmul.f32 %v2145_v37, %v4737_v0  ;;  %v2124_v58 = vmul.f32 %v4475_v39, %v4737_v0  ;;  %v2149_v21 = vsel %vm72_vm0, %v2147_v51, 0.0  ;;  %2622 = vmatpush.msrb.mxu2 %v4546_v30  ;;  %v2880_v39 = vld [vmem:[%s4878_s2 + $0x38] sm:$0xf]  ;;  %2642 = vmatpush.msrb.mxu3 %v4552_v35  ;;  %v5133_v37 = vld [vmem:[#allocation43_spill] sm:$0xff]  ;;  %v5134_v50 = vld [vmem:[#allocation44_spill] sm:$0xff] }
 0x5ef   :  { %v2126_v9 = vrot.slane %v2125_v33, 4  ;;  %v2150_v22 = vrot.slane %v2149_v21, 4  ;;  %2583 = vmatpush.msrb.mxu0 %v4556_v19  ;;  %2603 = vmatpush.msrb.mxu1 %v4558_v5  ;;  %v5135_v51 = vld [vmem:[#allocation18_spill] sm:$0xff] }
 0x5f0   :  { %v2156_v16 = vsel %vm72_vm0, %v2148_v43, 0.0  ;;  %v2132_v49 = vsel %vm72_vm0, %v2124_v58, 0.0  ;;  %2623 = vmatpush.msrb.mxu2 %v4560_v23  ;;  %2643 = vmatpush.msrb.mxu3 %v4564_v3  ;;  %v5117_v23 = vld [vmem:[#allocation28_spill] sm:$0xff]  ;;  %v5118_v3 = vld [vmem:[#allocation29_spill] sm:$0xff]  ;;  %v5137_v43 = vld [vmem:[#allocation27_spill] sm:$0xff] }
 0x5f1   :  { %v2127_v63 = vadd.f32 %v2126_v9, %v2125_v33  ;;  %v2157_v41 = vrot.slane %v2156_v16, 4  ;;  %v2133_v15 = vrot.slane %v2132_v49, 4  ;;  %v2151_v27 = vadd.f32 %v2150_v22, %v2149_v21  ;;  %2950 = vset.pattern.permute.xlu1 %v4971_v11  ;;  %2949 = vset.pattern.permute.xlu2 %v4972_v14  ;;  %v5136_v33 = vld [vmem:[#allocation19_spill] sm:$0xff]  ;;  %v5138_v58 = vld [vmem:[#allocation21_spill] sm:$0xff]  ;;  %v5139_v21 = vld [vmem:[#allocation22_spill] sm:$0xff] }
 0x5f2   :  { %2482 = vperm.xlu1 %2950, %v2880_v39   ;;  %2457 = vperm.xlu2 %2949, %v2880_v39   ;;  %v5140_v9 = vld [vmem:[#allocation17_spill] sm:$0xff] }
 0x5f3   :  { %v2128_v2 = vrot.slane %v2127_v63, 2  ;;  %v2158_v31 = vadd.f32 %v2157_v41, %v2156_v16  ;;  %v2134_v61 = vadd.f32 %v2133_v15, %v2132_v49  ;;  %v2152_v62 = vrot.slane %v2151_v27, 2  ;;  %2584 = vmatpush.msrb.mxu0 %v4568_v17  ;;  %2604 = vmatpush.msrb.mxu1 %v4570_v38  ;;  %v5119_v17 = vld [vmem:[#allocation30_spill] sm:$0xff] }
 0x5f4   :  { %2624 = vmatpush.msrb.mxu2 %v4572_v28  ;;  %2644 = vmatpush.msrb.mxu3 %v4576_v4  ;;  %v2870_v28 = vld [vmem:[%s4877_s1 + $0xc] sm:$0x3]  ;;  %v5120_v4 = vld [vmem:[#allocation31_spill] sm:$0xff] }
 0x5f5   :  { %v2129_v8 = vadd.f32 %v2128_v2, %v2127_v63  ;;  %v2159_v53 = vrot.slane %v2158_v31, 2  ;;  %v2135_v10 = vrot.slane %v2134_v61, 2  ;;  %v2153_v29 = vadd.f32 %v2152_v62, %v2151_v27  ;;  %2585 = vmatpush.msrb.mxu0 %v4582_v59  ;;  %2605 = vmatpush.msrb.mxu1 %v4584_v12  ;;  %v5121_v59 = vld [vmem:[#allocation32_spill] sm:$0xff] }
 0x5f6   :  { %2625 = vmatpush.msrb.mxu2 %v5117_v23  ;;  %2645 = vmatpush.msrb.mxu3 %v5118_v3  ;;  %v5123_v12 = vld [vmem:[#allocation20_spill] sm:$0xff] }
 0x5f7   :  { %v2130_v30 = vrot.slane %v2129_v8, 1  ;;  %v2160_v35 = vadd.f32 %v2159_v53, %v2158_v31  ;;  %v2136_v19 = vadd.f32 %v2135_v10, %v2134_v61  ;;  %v2154_v5 = vrot.slane %v2153_v29, 1  ;;  %2586 = vmatpush.msrb.mxu0 %v5119_v17  ;;  %2606 = vmatpush.msrb.mxu1 %v5120_v4 }
 0x5f8   :  { %2626 = vmatpush.msrb.mxu2 %v5121_v59  ;;  %2646 = vmatpush.msrb.mxu3 %v5122_v55  ;;  %v2110_v59 = vld [vmem:[#allocation2] sm:$0xf] }
 0x5f9   :  { %v2161_v60 = vrot.slane %v2160_v35, 1  ;;  %v2137_v38 = vrot.slane %v2136_v19, 1  ;;  %v2131_v25 = vadd.f32 %v2130_v30, %v2129_v8  ;;  %2587 = vmatpush.msrb.mxu0 %v5123_v12  ;;  %v2155_v40 = vadd.f32 %v2154_v5, %v2153_v29  ;;  %2607 = vmatpush.msrb.mxu1 %v5124_v56 }
 0x5fa   :  { %2952 = vset.pattern.permute.xlu1 %v4972_v14  ;;  %2951 = vset.pattern.permute.xlu2 %v4971_v11 }
 0x5fb   :  { %v2162_v36 = vadd.f32 %v2161_v60, %v2160_v35  ;;  %v2138_v48 = vadd.f32 %v2137_v38, %v2136_v19  ;;  %2404 = vperm.xlu1 %2952, %v2870_v28   ;;  %2486 = vperm.xlu2 %2951, %v5125_v13  }
 0x5fc   :  { %2627 = vmatpush.msrb.mxu2 %v5126_v45  ;;  %2647 = vmatpush.msrb.mxu3 %v5127_v54 }
 0x5fd   :  { %v4782_v34 = vsel %vm113_vm1, %v2138_v48, %v2131_v25  ;;  %v4785_v52 = vsel %vm113_vm1, %v2162_v36, %v2155_v40  ;;  %2588 = vmatpush.msrb.mxu0 %v5128_v20  ;;  %2608 = vmatpush.msrb.mxu1 %v5129_v44 }
 0x5fe   :  { %2251 = vmatmul.f32.vlgmr.msra.gmra.mxu0 %v4782_v34  ;;  %2271 = vmatmul.f32.vlgmr.msra.gmra.mxu1 %v4785_v52  ;;  %v2343_v5 = vrot.slane %v4785_v52, 6 }
 0x5ff   :  { %2291 = vmatmul.f32.vlgmr.msra.gmra.mxu2 %v4782_v34  ;;  %2311 = vmatmul.f32.vlgmr.msra.gmra.mxu3 %v4785_v52 }
 0x600   :  { %2628 = vmatpush.msrb.mxu2 %v5130_v6  ;;  %2648 = vmatpush.msrb.mxu3 %v5131_v24  ;;  %v2344_v3 = vsel %vm267_vm2, %v4782_v34, %v2343_v5 }
 0x601   :  { %2589 = vmatpush.msrb.mxu0 %v5132_v18  ;;  %2609 = vmatpush.msrb.mxu1 %v5133_v37  ;;  %v5141_v18 = vld [vmem:[#allocation25_spill] sm:$0xff] }
 0x602   :  { %2629 = vmatpush.msrb.mxu2 %v5134_v50  ;;  %2649 = vmatpush.msrb.mxu3 %v5135_v51 }
 0x603   :  { %2590 = vmatpush.msrb.mxu0 %v4658_v26  ;;  %2610 = vmatpush.msrb.mxu1 %v5136_v33 }
 0x604   :  { %2630 = vmatpush.msrb.mxu2 %v5137_v43  ;;  %2650 = vmatpush.msrb.mxu3 %v4666_v1 }
 0x605   :  { %2591 = vmatpush.msrb.mxu0 %v4672_v32  ;;  %2611 = vmatpush.msrb.mxu1 %v5138_v58 }
 0x606   :  { %2631 = vmatpush.msrb.mxu2 %v5139_v21  ;;  %2651 = vmatpush.msrb.mxu3 %v5140_v9  ;;  %v5142_v9 = vld [vmem:[#allocation26_spill] sm:$0xff] }
 0x607   :  { %2592 = vmatpush.msrb.mxu0 %v4686_v7  ;;  %2612 = vmatpush.msrb.mxu1 %v4688_v57  ;;  %v2869_v7 = vld [vmem:[%s4876_s0 + $0x18] sm:$0xf] }
 0x608   :  { %2632 = vmatpush.msrb.mxu2 %v4692_v46  ;;  %2652 = vmatpush.msrb.mxu3 %v4694_v42 }
 0x609   :  { %2954 = vset.pattern.permute.xlu1 %v4971_v11  ;;  %2953 = vset.pattern.permute.xlu2 %v4972_v14 }
 0x63a   :  { %v2361_v28 = vpop.permute.xlu2 %2360 }
 0x643   :  { %v2384_v56 = vpop.permute.xlu2 %2383 }
 0x652   :  { %v2380_v35 = vpop.permute.xlu1 %2379 }
 0x65b   :  { %v2425_v17 = vpop.permute.xlu1 %2424 }
 0x664   :  { %v2483_v4 = vpop.permute.xlu1 %2482 }
 0x66d   :  { %v2405_v51 = vpop.permute.xlu1 %2404 }
 0x67b   :  { %v2252_v26 = vpop.f32.mrf.mxu0  ;;  %v2272_v1 = vpop.f32.mrf.mxu1 }
 0x67c   :  { %v2273_v49 = vadd.f32 %v2272_v1, %v2252_v26 }
 0x682   :  { %v2292_v32 = vpop.f32.mrf.mxu2  ;;  %v2312_v22 = vpop.f32.mrf.mxu3 }
 0x683   :  { %v2313_v16 = vadd.f32 %v2312_v22, %v2292_v32  ;;  %v2884_v22 = vld [vmem:[%s4880_s4 + $0x38] sm:$0xf] }
 0x684   :  { %2721 = vperm.xlu1 %2954, %v2884_v22   ;;  %2702 = vperm.xlu2 %2953, %v2884_v22  }
 0x685   :  { %v2317_v39 = vrot.slane %v2313_v16, 6 }
 0x687   :  { %v2318_v57 = vsel %vm267_vm2, %v2273_v49, %v2317_v39 }
 0x688   :  { %v2320_v46 = vadd.f32 %v2869_v7, %v2318_v57 }
 0x68a   :  { %v2877_v63 = vmul.f32 -1.442695, %v2320_v46 }
 0x68c   :  { %2994 = vpow2.f32 %v2877_v63  ;;  %2956 = vset.pattern.permute.xlu1 %v4972_v14  ;;  %2955 = vset.pattern.permute.xlu2 %v4971_v11 }
 0x692   :  { %v2995_v42 = vpop.eup %2994 }
 0x693   :  { %v2324_v41 = vadd.f32 1.0, %v2995_v42 }
 0x695   :  { %2996 = vrcp.f32 %v2324_v41  ;;  %v2336_v31 = vand.u32 2147483648, %v2324_v41  ;;  %v2334_v62 = vand.u32 2147483647, %v2324_v41  ;;  %vm2330_vm15 = vweird.f32 %v2324_v41 }
 0x697   :  { %v2337_v53 = vor.u32 1.1754944e-38, %v2336_v31  ;;  %vm2335_vm4 = vcmp.eq.f32.partialorder %v2334_v62, 8.507059e+37 }
 0x69b   :  { %v2997_v15 = vpop.eup %2996 }
 0x69c   :  { %v2326_v27 = vmul.f32 %v2997_v15, %v2324_v41  ;;  %vm2331_vm14 = vweird.f32 %v2997_v15  ;;  %v2882_v41 = vld [vmem:[%s4879_s3 + $0x38] sm:$0xf] }
 0x69d   :  { %vm2332_vm3 = vmor %vm2330_vm15, %vm2331_vm14  ;;  %2761 = vperm.xlu1 %2956, %v2882_v41  }
 0x69e   :  { %v2327_v2 = vsub.f32 1.0, %v2326_v27 }
 0x6a0   :  { %v2328_v61 = vmul.f32 %v2997_v15, %v2327_v2 }
 0x6a2   :  { %v2329_v8 = vadd.f32 %v2997_v15, %v2328_v61 }
 0x6a4   :  { %v2333_v10 = vsel %vm2332_vm3, %v2997_v15, %v2329_v8  ;;  %v5144_v8 = vld [vmem:[#allocation36_spill] sm:$0xff] }
 0x6a5   :  { %v2338_v29 = vsel %vm2335_vm4, %v2337_v53, %v2333_v10 }
 0x6a6   :  { %v2340_v30 = vmul.f32 %v2338_v29, %v2318_v57  ;;  %v2458_v57 = vpop.permute.xlu2 %2457 }
 0x6a8   :  { %v2341_v19 = vadd.f32 %v2869_v7, %v2340_v30  ;;  %v2883_v30 = vld [vmem:[%s4879_s3 + $0x3c] sm:$0xf] }
 0x6aa   :  { %2998 = vtanh.f32 %v2341_v19 }
 0x6ae   :  { %v2487_v15 = vpop.permute.xlu2 %2486 }
 0x6b0   :  { %v2999_v23 = vpop.eup %2998 }
 0x6b1   :  { %v2346_v60 = vsub.f32 %v2999_v23, %v2344_v3 }
 0x6b3   :  { %v2347_v38 = vmul.f32 %v2346_v60, %v2338_v29 }
 0x6b5   :  { %2349 = vst [vmem:[#allocation1] ss:$4 sm:$0xff] %v2347_v38 }
 0x6bc   :  { %v2351_v25 = vld.sshfl [vmem:[#allocation1 + $0x8] sm:$0xff pattern:$0x73625140]  ;;  %v2350_v55 = vld.sshfl [vmem:[#allocation1] sm:$0xff pattern:$0x73625140] }
 0x6bd   :  { %v2355_v12 = vadd.f32 %v2351_v25, %v4785_v52  ;;  %v2354_v36 = vadd.f32 %v2350_v55, %v4782_v34  ;;  %2395 = vst [vmem:[#allocation1] ss:$4 sm:$0xff] %v2110_v59 }
 0x6bf   :  { %v2386_v48 = vperm.slane %v2355_v12, 0  ;;  %v2368_v40 = vperm.slane %v2354_v36, 0  ;;  %v2357_v13 = vrot.slane %v2354_v36, 1  ;;  %v2377_v45 = vrot.slane %v2355_v12, 1 }
 0x6c1   :  { %v2390_v54 = vmul.f32 %v2386_v48, %v2380_v35  ;;  %v2372_v20 = vmul.f32 %v2368_v40, %v2361_v28  ;;  %v2369_v44 = vperm.slane %v2357_v13, 0  ;;  %v2387_v6 = vperm.slane %v2377_v45, 0 }
 0x6c3   :  { %v2392_v24 = vadd.f32 %v2390_v54, %v2372_v20  ;;  %v2373_v37 = vmul.f32 %v2369_v44, %v5141_v18  ;;  %v2391_v50 = vmul.f32 %v2387_v6, %v2384_v56 }
 0x6c4   :  { %v2396_v33 = vld.sshfl [vmem:[#allocation1] sm:$0xff pattern:$0x73625140]  ;;  %v2397_v43 = vld.sshfl [vmem:[#allocation1 + $0x8] sm:$0xff pattern:$0x73625140] }
 0x6c5   :  { %v2415_v52 = vsub.f32 %v2392_v24, %v4728_v47  ;;  %v2393_v34 = vadd.f32 %v2391_v50, %v2373_v37  ;;  %v2400_v58 = vsub.f32 %v2354_v36, %v2396_v33  ;;  %v2401_v21 = vsub.f32 %v2355_v12, %v2397_v43 }
 0x6c7   :  { %v2427_v26 = vmul.f32 %v5142_v9, %v2415_v52  ;;  %v2416_v1 = vsub.f32 %v2393_v34, %v4737_v0  ;;  %v2408_v32 = vmul.f32 %v2405_v51, %v2401_v21  ;;  %v2407_v7 = vmul.f32 %v2405_v51, %v2400_v58  ;;  %v2878_v52 = vld [vmem:[%s4876_s0 + $0x1c] sm:$0xf]  ;;  %s3088_s0 = smov [#allocation6]  }
 0x6c8   :  { %s2785_s9 = sshll.u32 %s3088_s0, 4  ;;  %s2786_s9 = int_to_ptr.vmem [resolvable:$true] %s2785_s9 }
 0x6c9   :  { %v2429_v16 = vadd.f32 %v2427_v26, %v4728_v47  ;;  %v2428_v49 = vmul.f32 %v2425_v17, %v2416_v1  ;;  %v2411_v39 = vrot.slane %v2408_v32, 6  ;;  %v5143_v47 = vld [vmem:[#allocation24_spill] sm:$0xff] }
 0x6ca   :  { %2725 = vperm.xlu2 %2955, %v5143_v47  }
 0x6cb   :  { %2437 = vst [vmem:[#allocation8 + $0x30] sm:$0xf] %v2429_v16  ;;  %v2430_v46 = vadd.f32 %v2428_v49, %v4737_v0  ;;  %v2412_v63 = vsel %vm267_vm2, %v2407_v7, %v2411_v39 }
 0x6cc   :  { %2432 = vst [vmem:[#allocation3] sm:$0xf] %v2429_v16  ;;  %v2414_v42 = vadd.f32 %v2412_v63, %v2110_v59 }
 0x6cd   :  { %2438 = vst [vmem:[#allocation8 + $0x34] sm:$0xf] %v2430_v46 }
 0x6ce   :  { %2433 = vst [vmem:[#allocation3 + $0x4] sm:$0xf] %v2430_v46 }
 0x6cf   :  { %2431 = vst [vmem:[#allocation2] sm:$0xf] %v2414_v42 }
 0x6d0   :  { %2435 = vst [vmem:[#allocation6 + $0x18] sm:$0xf] %v2414_v42 }
 0x6d2   :  { %2957 = vset.pattern.permute.xlu2 %v4972_v14 }
 0x6d3   :  { %v4841_v0 = vld [vmem:[#allocation3] sm:$0xf]  ;;  %2766 = vperm.xlu2 %2957, %v2883_v30  }
 0x6d4   :  { %v2489_v27 = vmul.f32 %v2483_v4, %v4841_v0  ;;  %v2465_v2 = vmul.f32 %v2458_v57, %v4841_v0 }
 0x6d5   :  { %v4845_v31 = vld [vmem:[#allocation3 + $0x4] sm:$0xf] }
 0x6d6   :  { %v2491_v61 = vsel %vm72_vm0, %v2489_v27, 0.0  ;;  %v2467_v62 = vsel %vm72_vm0, %v2465_v2, 0.0  ;;  %v2466_v53 = vmul.f32 %v5144_v8, %v4845_v31  ;;  %v2490_v11 = vmul.f32 %v2487_v15, %v4845_v31 }
 0x6d7   :  { %v2492_v10 = vrot.slane %v2491_v61, 4  ;;  %v2468_v29 = vrot.slane %v2467_v62, 4 }
 0x6d8   :  { %v2498_v35 = vsel %vm72_vm0, %v2490_v11, 0.0  ;;  %v2474_v19 = vsel %vm72_vm0, %v2466_v53, 0.0  ;;  %v2452_v11 = vld [vmem:[#allocation2] sm:$0xf] }
 0x6d9   :  { %v2493_v5 = vadd.f32 %v2492_v10, %v2491_v61  ;;  %v2469_v23 = vadd.f32 %v2468_v29, %v2467_v62  ;;  %v2499_v3 = vrot.slane %v2498_v35, 4  ;;  %v2475_v17 = vrot.slane %v2474_v19, 4  ;;  %v2708_v10 = vpop.permute.xlu0 %2707 }
 0x6db   :  { %v2494_v60 = vrot.slane %v2493_v5, 2  ;;  %v2470_v38 = vrot.slane %v2469_v23, 2  ;;  %v2500_v28 = vadd.f32 %v2499_v3, %v2498_v35  ;;  %v2476_v4 = vadd.f32 %v2475_v17, %v2474_v19 }
 0x6dd   :  { %v2495_v59 = vadd.f32 %v2494_v60, %v2493_v5  ;;  %v2471_v25 = vadd.f32 %v2470_v38, %v2469_v23  ;;  %v2501_v55 = vrot.slane %v2500_v28, 2  ;;  %v2477_v12 = vrot.slane %v2476_v4, 2 }
 0x6de   :  { %v2703_v62 = vpop.permute.xlu2 %2702 }
 0x6df   :  { %v2496_v36 = vrot.slane %v2495_v59, 1  ;;  %v2472_v48 = vrot.slane %v2471_v25, 1  ;;  %v2502_v40 = vadd.f32 %v2501_v55, %v2500_v28  ;;  %v2478_v56 = vadd.f32 %v2477_v12, %v2476_v4 }
 0x6e1   :  { %v2503_v13 = vrot.slane %v2502_v40, 1  ;;  %v2479_v45 = vrot.slane %v2478_v56, 1  ;;  %v2497_v54 = vadd.f32 %v2496_v36, %v2495_v59  ;;  %v2473_v20 = vadd.f32 %v2472_v48, %v2471_v25 }
 0x6e3   :  { %v2504_v44 = vadd.f32 %v2503_v13, %v2502_v40  ;;  %v2480_v6 = vadd.f32 %v2479_v45, %v2478_v56 }
 0x6e5   :  { %v2507_v14 = vsel %vm113_vm1, %v2480_v6, %v2473_v20  ;;  %v2511_v24 = vsel %vm113_vm1, %v2504_v44, %v2497_v54  ;;  %v2747_v20 = vpop.permute.xlu0 %2746 }
 0x6e6   :  { %2593 = vmatmul.f32.vlgmr.msrb.gmra.mxu0 %v2507_v14  ;;  %2613 = vmatmul.f32.vlgmr.msrb.gmra.mxu1 %v2511_v24  ;;  %v2685_v15 = vrot.slane %v2511_v24, 6 }
 0x6e7   :  { %2633 = vmatmul.f32.vlgmr.msrb.gmra.mxu2 %v2507_v14  ;;  %2653 = vmatmul.f32.vlgmr.msrb.gmra.mxu3 %v2511_v24 }
 0x6e8   :  { %v2686_v2 = vsel %vm267_vm2, %v2507_v14, %v2685_v15 }
 0x6f6   :  { %v2722_v53 = vpop.permute.xlu1 %2721 }
 0x70f   :  { %v2762_v40 = vpop.permute.xlu1 %2761 }
 0x724   :  { %v2726_v35 = vpop.permute.xlu2 %2725 }
 0x72d   :  { %v2767_v44 = vpop.permute.xlu2 %2766 }
 0x763   :  { %v2594_v18 = vpop.f32.mrf.mxu0  ;;  %v2614_v37 = vpop.f32.mrf.mxu1 }
 0x764   :  { %v2615_v43 = vadd.f32 %v2614_v37, %v2594_v18 }
 0x76a   :  { %v2634_v50 = vpop.f32.mrf.mxu2  ;;  %v2654_v51 = vpop.f32.mrf.mxu3 }
 0x76b   :  { %v2655_v33 = vadd.f32 %v2654_v51, %v2634_v50 }
 0x76d   :  { %v2659_v34 = vrot.slane %v2655_v33, 6 }
 0x76f   :  { %v2660_v58 = vsel %vm267_vm2, %v2615_v43, %v2659_v34 }
 0x770   :  { %v2662_v21 = vadd.f32 %v2878_v52, %v2660_v58 }
 0x772   :  { %v2886_v9 = vmul.f32 -1.442695, %v2662_v21 }
 0x774   :  { %3000 = vpow2.f32 %v2886_v9 }
 0x77a   :  { %v3001_v26 = vpop.eup %3000 }
 0x77b   :  { %v2666_v1 = vadd.f32 1.0, %v3001_v26 }
 0x77d   :  { %3002 = vrcp.f32 %v2666_v1  ;;  %v2678_v49 = vand.u32 2147483648, %v2666_v1  ;;  %v2676_v39 = vand.u32 2147483647, %v2666_v1  ;;  %vm2672_vm1 = vweird.f32 %v2666_v1 }
 0x77f   :  { %v2679_v46 = vor.u32 1.1754944e-38, %v2678_v49  ;;  %vm2677_vm6 = vcmp.eq.f32.partialorder %v2676_v39, 8.507059e+37 }
 0x783   :  { %v3003_v32 = vpop.eup %3002 }
 0x784   :  { %v2668_v22 = vmul.f32 %v3003_v32, %v2666_v1  ;;  %vm2673_vm0 = vweird.f32 %v3003_v32 }
 0x785   :  { %vm2674_vm5 = vmor %vm2672_vm1, %vm2673_vm0 }
 0x786   :  { %v2669_v16 = vsub.f32 1.0, %v2668_v22 }
 0x788   :  { %v2670_v7 = vmul.f32 %v3003_v32, %v2669_v16 }
 0x78a   :  { %v2671_v57 = vadd.f32 %v3003_v32, %v2670_v7 }
 0x78c   :  { %v2675_v63 = vsel %vm2674_vm5, %v3003_v32, %v2671_v57 }
 0x78d   :  { %v2680_v42 = vsel %vm2677_vm6, %v2679_v46, %v2675_v63 }
 0x78e   :  { %v2682_v41 = vmul.f32 %v2680_v42, %v2660_v58 }
 0x790   :  { %v2683_v47 = vadd.f32 %v2878_v52, %v2682_v41 }
 0x792   :  { %3004 = vtanh.f32 %v2683_v47 }
 0x798   :  { %v3005_v27 = vpop.eup %3004 }
 0x799   :  { %v2688_v61 = vsub.f32 %v3005_v27, %v2686_v2 }
 0x79b   :  { %v2689_v8 = vmul.f32 %v2688_v61, %v2680_v42 }
 0x79d   :  { %2691 = vst [vmem:[#allocation1] ss:$4 sm:$0xff] %v2689_v8 }
 0x7a4   :  { %v2692_v29 = vld.sshfl [vmem:[#allocation1] sm:$0xff pattern:$0x73625140]  ;;  %v2693_v30 = vld.sshfl [vmem:[#allocation1 + $0x8] sm:$0xff pattern:$0x73625140] }
 0x7a5   :  { %v2696_v19 = vadd.f32 %v2692_v29, %v2507_v14  ;;  %2737 = vst [vmem:[#allocation1] ss:$4 sm:$0xff] %v2452_v11  ;;  %v2697_v5 = vadd.f32 %v2693_v30, %v2511_v24 }
 0x7a7   :  { %v2710_v23 = vperm.slane %v2696_v19, 0  ;;  %v2728_v3 = vperm.slane %v2697_v5, 0  ;;  %v2699_v17 = vrot.slane %v2696_v19, 1  ;;  %v2719_v60 = vrot.slane %v2697_v5, 1 }
 0x7a9   :  { %v2714_v38 = vmul.f32 %v2710_v23, %v2703_v62  ;;  %v2732_v28 = vmul.f32 %v2728_v3, %v2722_v53  ;;  %v2711_v4 = vperm.slane %v2699_v17, 0  ;;  %v2729_v59 = vperm.slane %v2719_v60, 0 }
 0x7ab   :  { %v2734_v25 = vadd.f32 %v2732_v28, %v2714_v38  ;;  %v2715_v55 = vmul.f32 %v2711_v4, %v2708_v10  ;;  %v2733_v12 = vmul.f32 %v2729_v59, %v2726_v35 }
 0x7ac   :  { %v2738_v36 = vld.sshfl [vmem:[#allocation1] sm:$0xff pattern:$0x73625140]  ;;  %v2739_v48 = vld.sshfl [vmem:[#allocation1 + $0x8] sm:$0xff pattern:$0x73625140] }
 0x7ad   :  { %v2742_v56 = vsub.f32 %v2696_v19, %v2738_v36  ;;  %v2743_v13 = vsub.f32 %v2697_v5, %v2739_v48  ;;  %v2735_v45 = vadd.f32 %v2733_v12, %v2715_v55  ;;  %v2757_v54 = vsub.f32 %v2734_v25, %v4841_v0 }
 0x7af   :  { %v2750_v6 = vmul.f32 %v2747_v20, %v2743_v13  ;;  %v2769_v14 = vmul.f32 %v2762_v40, %v2757_v54  ;;  %v2758_v24 = vsub.f32 %v2735_v45, %v4845_v31  ;;  %v2749_v18 = vmul.f32 %v2747_v20, %v2742_v56 }
 0x7b1   :  { %v2753_v37 = vrot.slane %v2750_v6, 6  ;;  %v2771_v50 = vadd.f32 %v2769_v14, %v4841_v0  ;;  %v2770_v51 = vmul.f32 %v2767_v44, %v2758_v24 }
 0x7b3   :  { %v2754_v33 = vsel %vm267_vm2, %v2749_v18, %v2753_v37  ;;  %2774 = vst [vmem:[#allocation3] sm:$0xf] %v2771_v50  ;;  %v2772_v43 = vadd.f32 %v2770_v51, %v4845_v31 }
 0x7b4   :  { %v2756_v52 = vadd.f32 %v2754_v33, %v2452_v11  ;;  %2779 = vst [vmem:[#allocation8 + $0x38] sm:$0xf] %v2771_v50 }
 0x7b5   :  { %2775 = vst [vmem:[#allocation3 + $0x4] sm:$0xf] %v2772_v43 }
 0x7b6   :  { %2773 = vst [vmem:[#allocation2] sm:$0xf] %v2756_v52 }
 0x7b7   :  { %2777 = vst [vmem:[#allocation6 + $0x1c] sm:$0xf] %v2756_v52 }
 0x7b8   :  { %2780 = vst [vmem:[#allocation8 + $0x3c] sm:$0xf] %v2772_v43  ;;  %2793 = dma.vmem_to_hbm [thread:$0]  %s2786_s9, 512, %s2788_s12, [#allocation7], %s3090_s6, %s3090_s6, %s3091_s18  }
 0x7b9   :  { %2806 = dma.vmem_to_hbm [thread:$0]  %s2799_s14, 1024, %s2801_s17, [#allocation9], %s3090_s6, %s3090_s6, %s3091_s18  }
 0x7ba   :  { %3080 = dma.done.wait [#allocation7], 512  }
 0x7bb   :  { %3081 = vsyncadd [#allocation7], 4294966784 }
 0x7bc   :  { %3082 = dma.done.wait [#allocation9], 1024  }
 0x7bd   :  { %3083 = vsyncadd [#allocation9], 4294966272 }
 0x7be   :  { %2815 = vsyncpa [#allocation7], 1 }
 0x7bf   :  { %2816 = vsyncpa [#allocation9], 1 }
 0x7c0   :  { %2817 = vsyncmov [#allocation5] }
 0x7c3   :  { %s2818_s7 = vpop.sfrf %2817 }
 0x7c4   :  { %p2887_p0 = scmp.ne.s32.totalorder %s2818_s7, 0 }
 0x7c6   :  { %2822 = shalt.err (%p2887_p0)  }

</bundles_post_ra>
